<compile_context>
chip_gen: v6e
topology: v6e:2x2x1
jax: 0.10.0
libtpu: 0.0.40
codegen_flags: <defaults>
</compile_context>

<pallas_src>
import functools

import jax
import jax.numpy as jnp
from jax.experimental import pallas as pl
from jax.experimental.pallas import tpu as pltpu


# ----------------------------------------------------------------------------
# Helpers
# ----------------------------------------------------------------------------
def _round_up(x, m):
    return (x + m - 1) // m * m


def _vmem_limit_bytes():
    """Per-generation scoped VMEM limit: half the physical VMEM, capped at 64 MiB
    (v5e/v6e have 128 MiB, v7x has 64 MiB -> 32 MiB scoped)."""
    try:
        cap = int(pltpu.get_tpu_info().vmem_capacity_bytes)
    except Exception:
        cap = 64 * 1024 * 1024  # conservative fallback (works on v7x too)
    return int(min(cap // 2, 64 * 1024 * 1024))


def _derive_tile_p(*, batch, npoint_pad, nsample, cin_pad, cdims_pad, vmem_limit):
    """Largest multiple-of-128 tile of points that (a) divides npoint_pad evenly
    (no extra padding of the grouped tensor) and (b) keeps the double-buffered
    working set within half the scoped VMEM limit."""
    budget = vmem_limit // 2  # headroom for Mosaic internals / pipelining
    cin_l = _round_up(cin_pad, 128)               # lane padding inside VMEM
    cmax_l = max(_round_up(c, 128) for c in cdims_pad)
    cout_l = _round_up(cdims_pad[-1], 128)

    w_bytes = 0
    prev = cin_pad
    for c in cdims_pad:
        w_bytes += 2 * _round_up(prev, 128) * _round_up(c, 128) * 2  # bf16 weights x2
        w_bytes += 2 * _round_up(c, 128) * 4                          # f32 shifts x2
        prev = c

    def usage(tp):
        in_b = 2 * tp * nsample * cin_l * 2          # double-buffered bf16 input block
        mid_b = tp * nsample * cmax_l * (4 + 2)      # f32 accumulator + bf16 recast
        out_b = 2 * cout_l * tp * 4                  # double-buffered f32 output block
        return in_b + mid_b + out_b + w_bytes

    cap = min(2048, npoint_pad)
    candidates = [t for t in range(128, cap + 1, 128) if npoint_pad % t == 0]
    tile_p = 128
    for t in sorted(candidates, reverse=True):
        if usage(t) <= budget:
            tile_p = t
            break
    # Keep at least 2 grid steps when a smaller divisor exists (both v7x TCs busy).
    if batch * (npoint_pad // tile_p) < 2:
        smaller = [t for t in candidates if t < tile_p]
        if smaller:
            tile_p = max(smaller)
    return tile_p


# ----------------------------------------------------------------------------
# Pallas kernel: SharedMLP (1x1 conv with folded BN scale -> shift -> ReLU)
# chain + max over the nsample axis, output stored transposed (C_out, tile_p).
# ----------------------------------------------------------------------------
def _make_mlp_maxpool_kernel(num_layers):
    def kernel(*refs):
        x_ref = refs[0]
        w_refs = refs[1:1 + num_layers]
        b_refs = refs[1 + num_layers:1 + 2 * num_layers]
        out_ref = refs[-1]

        h = x_ref[0]                                        # (TP, S, C_in) bf16
        for l in range(num_layers):
            # 1x1 conv == contraction over the channel axis (MXU, bf16 -> f32 acc).
            acc = jax.lax.dot_general(
                h, w_refs[l][...],
                dimension_numbers=(((2,), (0,)), ((), ())),
                preferred_element_type=jnp.float32)         # (TP, S, C_{l+1}) f32
            if (l + 1) < num_layers:
                # folded-BN shift + ReLU in f32 (safe on v5e: no bf16 VPU math).
                acc = jnp.maximum(acc + b_refs[l][...].reshape(1, 1, -1), 0.0)
                h = acc.astype(jnp.bfloat16)
            else:
                # shift+ReLU are per-channel monotone, so they commute with the
                # max over the sample axis: max_S(ReLU(a+b)) == ReLU(max_S(a)+b).
                # Reduce first, then do the elementwise work on the Sx-smaller
                # tensor (== F.max_pool2d(kernel_size=[1, nsample]) semantics).
                y = jnp.max(acc, axis=1)                     # (TP, C_out) f32
                y = jnp.maximum(y + b_refs[l][...], 0.0)
                # Store transposed so kernel output is already (B, C_out, npoint).
                out_ref[0] = jnp.transpose(y).astype(out_ref.dtype)   # (C_out, TP)
    return kernel


def shared_mlp_maxpool(grouped, weights, shifts):
    """grouped: (B, npoint_pad, S, Cin_pad) bf16 (channels-last, npoint_pad % 128 == 0).
       weights[l]: (Cl_pad, C{l+1}_pad) bf16 (BN scale folded in).
       shifts[l]:  (1, C{l+1}_pad) f32.
       Returns (B, Cout_pad, npoint_pad) f32."""
    B, npoint_pad, S, Cin = grouped.shape
    num_layers = len(weights)
    Cout = weights[-1].shape[1]
    cdims = [w.shape[1] for w in weights]

    vmem_limit = _vmem_limit_bytes()
    tile_p = _derive_tile_p(batch=B, npoint_pad=npoint_pad, nsample=S,
                            cin_pad=Cin, cdims_pad=cdims, vmem_limit=vmem_limit)
    assert npoint_pad % tile_p == 0

    grid = (B, npoint_pad // tile_p)

    in_specs = [pl.BlockSpec((1, tile_p, S, Cin), lambda b, j: (b, j, 0, 0))]
    for w in weights:
        in_specs.append(pl.BlockSpec(w.shape, lambda b, j: (0, 0)))
    for s in shifts:
        in_specs.append(pl.BlockSpec(s.shape, lambda b, j: (0, 0)))
    out_spec = pl.BlockSpec((1, Cout, tile_p), lambda b, j: (b, 0, j))

    kernel = _make_mlp_maxpool_kernel(num_layers)
    return pl.pallas_call(
        kernel,
        out_shape=jax.ShapeDtypeStruct((B, Cout, npoint_pad), jnp.float32),
        grid_spec=pltpu.PrefetchScalarGridSpec(
            num_scalar_prefetch=0,
            grid=grid,
            in_specs=in_specs,
            out_specs=out_spec),
        compiler_params=pltpu.CompilerParams(
            dimension_semantics=("parallel", "parallel"),
            vmem_limit_bytes=vmem_limit),
    )(grouped, *weights, *shifts)


# ----------------------------------------------------------------------------
# Plain-JAX glue reproducing pointnet2_utils semantics.
# ----------------------------------------------------------------------------
def furthest_point_sample(xyz, npoint):
    """Matches pointnet2 CUDA FPS: first index 0, dists init 1e10."""
    B, N, _ = xyz.shape

    def body(i, carry):
        inds, dists, last = carry
        last_xyz = jnp.take_along_axis(xyz, last[:, None, None], axis=1)   # (B,1,3)
        d = jnp.sum((xyz - last_xyz) ** 2, axis=-1)                        # (B,N)
        dists = jnp.minimum(dists, d)
        nxt = jnp.argmax(dists, axis=-1).astype(jnp.int32)
        inds = inds.at[:, i].set(nxt)
        return inds, dists, nxt

    inds0 = jnp.zeros((B, npoint), jnp.int32)
    dists0 = jnp.full((B, N), 1e10, jnp.float32)
    last0 = jnp.zeros((B,), jnp.int32)
    inds, _, _ = jax.lax.fori_loop(1, npoint, body, (inds0, dists0, last0))
    return inds


def ball_query(radius, nsample, xyz, new_xyz):
    """First-nsample-within-radius per query ball; unfilled slots padded with the
    first in-ball index (0 if the ball is empty).  Memory-light: a scan over the
    nsample slots, no (B, npoint, nsample, N) intermediate."""
    B, N, _ = xyz.shape
    d2 = jnp.sum((new_xyz[:, :, None, :] - xyz[:, None, :, :]) ** 2, axis=-1)  # (B,np,N)
    within = d2 < radius * radius
    ar = jnp.arange(N, dtype=jnp.int32)
    cum = jnp.cumsum(within.astype(jnp.int32), axis=-1)
    slot = jnp.where(within, cum - 1, nsample)               # slot this point fills
    first = jnp.min(jnp.where(within, ar[None, None, :], N), axis=-1)
    first = jnp.where(first == N, 0, first).astype(jnp.int32)

    def fill(k, _):
        match = slot == k                                    # (B,np,N)
        cand = jnp.where(match, ar[None, None, :], N)
        got = jnp.min(cand, axis=-1).astype(jnp.int32)       # N if slot unfilled
        return k + 1, jnp.where(got == N, first, got)

    _, idx = jax.lax.scan(fill, 0, None, length=nsample)     # (nsample, B, np)
    return jnp.moveaxis(idx, 0, -1)                          # (B, np, nsample)


def _gather_points(points, idx):
    # points: (B, N, D), idx: (B, ...) int -> (B, ..., D)
    return jax.vmap(lambda p, i: p[i])(points, idx)


# ----------------------------------------------------------------------------
# Module: parameters + forward
# ----------------------------------------------------------------------------
def init_params(key, mlps, use_xyz=True, bn_eps=1e-5):
    """Deterministic weights; BN folded as eval-mode affine (gamma=1, beta=0,
    running_mean=0, running_var=1).  BN scale is folded into the weights, which
    are zero-padded to lane-friendly shapes and cast to bf16 for the MXU."""
    params = []
    for spec in mlps:
        spec = list(spec)
        if use_xyz:
            spec = [spec[0] + 3] + spec[1:]
        # padded channel dims: input -> multiple of 8, hidden/output -> multiple of 128
        dims_pad = [_round_up(spec[0], 8)] + [_round_up(c, 128) for c in spec[1:]]
        ws, bs = [], []
        for l in range(len(spec) - 1):
            key, kw = jax.random.split(key)
            cin, cout = spec[l], spec[l + 1]
            cin_p, cout_p = dims_pad[l], dims_pad[l + 1]
            w = jax.random.normal(kw, (cin, cout), jnp.float32) * (2.0 / cin) ** 0.5 * 0.5
            gamma = jnp.ones((cout,), jnp.float32)
            beta = jnp.zeros((cout,), jnp.float32)
            rmean = jnp.zeros((cout,), jnp.float32)
            rvar = jnp.ones((cout,), jnp.float32)
            scale = gamma / jnp.sqrt(rvar + bn_eps)
            shift = beta - rmean * scale
            w_folded = w * scale[None, :]                    # fold BN scale into conv
            w_pad = jnp.zeros((cin_p, cout_p), jnp.float32).at[:cin, :cout].set(w_folded)
            b_pad = jnp.zeros((1, cout_p), jnp.float32).at[:, :cout].set(shift[None, :])
            ws.append(w_pad.astype(jnp.bfloat16))
            bs.append(b_pad)
        params.append({"weights": ws, "shifts": bs,
                       "cin": spec[0], "cin_pad": dims_pad[0], "cout": spec[-1]})
    return params


def pointnet_sa_msg_votes_forward(params, xyz, features=None, inds=None, *,
                                  npoint, radii, nsamples, use_xyz=True):
    """xyz: (B,N,3); features: (B,C,N); inds: (B,npoint) or None.
    Returns new_xyz (B,npoint,3), new_features (B,sum(C_out),npoint), inds (B,npoint)."""
    B, N, _ = xyz.shape
    if inds is None:
        inds = furthest_point_sample(xyz, npoint)
    # gather_operation(xyz_flipped, inds).transpose(1,2) == gather rows of xyz
    new_xyz = _gather_points(xyz, inds)                                  # (B,npoint,3)

    # Pad the query set once to a multiple of 128 so every downstream tensor is
    # born grid-aligned (no post-hoc jnp.pad / HBM copy of the 4D grouped tensor).
    npoint_pad = _round_up(npoint, 128)
    if npoint_pad != npoint:
        new_xyz_q = jnp.pad(new_xyz, ((0, 0), (0, npoint_pad - npoint), (0, 0)))
    else:
        new_xyz_q = new_xyz

    # bf16 before the gather halves gather + concat HBM traffic (MXU input anyway).
    feats_nl = (None if features is None
                else jnp.transpose(features, (0, 2, 1)).astype(jnp.bfloat16))

    outs = []
    for i, (radius, nsample) in enumerate(zip(radii, nsamples)):
        p = params[i]
        cin_pad, cout = p["cin_pad"], p["cout"]

        idx = ball_query(radius, nsample, xyz, new_xyz_q)                # (B,np_pad,ns)
        grouped_xyz = (_gather_points(xyz, idx)
                       - new_xyz_q[:, :, None, :]).astype(jnp.bfloat16)  # (B,np_pad,ns,3)

        parts = []
        if use_xyz:
            parts.append(grouped_xyz)
        if feats_nl is not None:
            parts.append(_gather_points(feats_nl, idx))                  # (B,np_pad,ns,C)
        if not parts:                                                    # degenerate case
            parts.append(grouped_xyz)
        c_raw = sum(q.shape[-1] for q in parts)
        assert c_raw <= cin_pad
        if cin_pad != c_raw:
            # Fold the channel padding into the single concat (one HBM pass total).
            parts.append(jnp.zeros((B, npoint_pad, nsample, cin_pad - c_raw),
                                   jnp.bfloat16))
        grouped = parts[0] if len(parts) == 1 else jnp.concatenate(parts, axis=-1)

        # Pallas kernel: SharedMLP + max-pool, output already (B, Cout_pad, np_pad)
        y = shared_mlp_maxpool(grouped, p["weights"], p["shifts"])
        outs.append(y[:, :cout, :npoint])                                # strip padding
    return new_xyz, jnp.concatenate(outs, axis=1), inds


# TODO(synk): sample_uniformly=True (random resampling inside the ball) is stochastic
# in the reference CUDA op and is not implemented here (default is False).

if __name__ == "__main__":
    key = jax.random.PRNGKey(0)
    B, N, C = 2, 64, 4
    npoint = 16
    radii = [0.2, 0.4]
    nsamples = [8, 16]
    mlps = [[C, 16, 32], [C, 16, 32]]
    use_xyz = True

    kx, kf, kp = jax.random.split(key, 3)
    xyz = jax.random.uniform(kx, (B, N, 3), jnp.float32)
    features = jax.random.normal(kf, (B, C, N), jnp.float32)
    params = init_params(kp, mlps, use_xyz=use_xyz)

    fwd = functools.partial(pointnet_sa_msg_votes_forward,
                            npoint=npoint, radii=radii, nsamples=nsamples,
                            use_xyz=use_xyz)
    new_xyz, new_features, inds = fwd(params, xyz, features, None)
    jax.block_until_ready((new_xyz, new_features, inds))

    assert new_xyz.shape == (B, npoint, 3)
    assert new_features.shape == (B, sum(m[-1] for m in mlps), npoint)
    assert inds.shape == (B, npoint)
    assert bool(jnp.all(jnp.isfinite(new_features)))
    print("KERNEL_OK")
</pallas_src>

<mosaic_0001>
module attributes {stable_mosaic.version = 11 : i64} {
  func.func @kernel(%arg0: i32, %arg1: i32, %arg2: memref<1x128x8x8xbf16, #tpu.memory_space<vmem>>, %arg3: memref<8x128xbf16, #tpu.memory_space<vmem>>, %arg4: memref<128x128xbf16, #tpu.memory_space<vmem>>, %arg5: memref<1x128xf32, #tpu.memory_space<vmem>>, %arg6: memref<1x128xf32, #tpu.memory_space<vmem>>, %arg7: memref<1x128x128xf32, #tpu.memory_space<vmem>>) attributes {dimension_semantics = [#tpu.dimension_semantics<parallel>, #tpu.dimension_semantics<parallel>], iteration_bounds = array<i64: 2, 1>, scalar_prefetch = 0 : i64, scratch_operands = 0 : i64, tpu.core_type = #tpu.core_type<tc>, window_params = [{transform_indices = @transform_0, window_bounds = array<i64: 1, 128, 8, 8>}, {pipeline_mode = #tpu.pipeline_mode<synchronous>, transform_indices = @transform_1, window_bounds = array<i64: 8, 128>}, {pipeline_mode = #tpu.pipeline_mode<synchronous>, transform_indices = @transform_2, window_bounds = array<i64: 128, 128>}, {pipeline_mode = #tpu.pipeline_mode<synchronous>, transform_indices = @transform_3, window_bounds = array<i64: 1, 128>}, {pipeline_mode = #tpu.pipeline_mode<synchronous>, transform_indices = @transform_4, window_bounds = array<i64: 1, 128>}, {transform_indices = @transform_5, window_bounds = array<i64: 1, 128, 128>}]} {
    %c0 = arith.constant 0 : index
    %c0_0 = arith.constant 0 : index
    %c0_1 = arith.constant 0 : index
    %c0_2 = arith.constant 0 : index
    %0 = vector.load %arg2[%c0, %c0_0, %c0_1, %c0_2] : memref<1x128x8x8xbf16, #tpu.memory_space<vmem>>, vector<1x128x8x8xbf16>
    %1 = vector.shape_cast %0 : vector<1x128x8x8xbf16> to vector<128x8x8xbf16>
    %c0_3 = arith.constant 0 : index
    %c0_4 = arith.constant 0 : index
    %2 = vector.load %arg3[%c0_3, %c0_4] : memref<8x128xbf16, #tpu.memory_space<vmem>>, vector<8x128xbf16>
    %cst = arith.constant dense<0.000000e+00> : vector<128x8x128xf32>
    %3 = tpu.matmul %1, %2, %cst {dimension_numbers = #tpu.dot_dimension_numbers<[2], [0], [0, 1], [1], [0, 0, 0, 1, 1, 1], [], []>} : vector<128x8x8xbf16>, vector<8x128xbf16>, vector<128x8x128xf32> -> vector<128x8x128xf32>
    %c0_5 = arith.constant 0 : index
    %c0_6 = arith.constant 0 : index
    %4 = vector.load %arg5[%c0_5, %c0_6] : memref<1x128xf32, #tpu.memory_space<vmem>>, vector<1x128xf32>
    %5 = vector.shape_cast %4 : vector<1x128xf32> to vector<1x1x128xf32>
    %6 = vector.broadcast %5 : vector<1x1x128xf32> to vector<128x8x128xf32>
    %7 = arith.addf %3, %6 : vector<128x8x128xf32>
    %cst_7 = arith.constant 0.000000e+00 : f32
    %8 = vector.broadcast %cst_7 : f32 to vector<128x8x128xf32>
    %9 = arith.maximumf %7, %8 : vector<128x8x128xf32>
    %10 = arith.truncf %9 : vector<128x8x128xf32> to vector<128x8x128xbf16>
    %c0_8 = arith.constant 0 : index
    %c0_9 = arith.constant 0 : index
    %11 = vector.load %arg4[%c0_8, %c0_9] : memref<128x128xbf16, #tpu.memory_space<vmem>>, vector<128x128xbf16>
    %cst_10 = arith.constant dense<0.000000e+00> : vector<128x8x128xf32>
    %12 = tpu.matmul %10, %11, %cst_10 {dimension_numbers = #tpu.dot_dimension_numbers<[2], [0], [0, 1], [1], [0, 0, 0, 1, 1, 1], [], []>} : vector<128x8x128xbf16>, vector<128x128xbf16>, vector<128x8x128xf32> -> vector<128x8x128xf32>
    %cst_11 = arith.constant dense<0xFF800000> : vector<128x128xf32>
    %13 = vector.multi_reduction <maximumf>, %12, %cst_11 [1] : vector<128x8x128xf32> to vector<128x128xf32>
    %c0_12 = arith.constant 0 : index
    %c0_13 = arith.constant 0 : index
    %14 = vector.load %arg6[%c0_12, %c0_13] : memref<1x128xf32, #tpu.memory_space<vmem>>, vector<1x128xf32>
    %15 = vector.broadcast %14 : vector<1x128xf32> to vector<128x128xf32>
    %16 = arith.addf %13, %15 : vector<128x128xf32>
    %cst_14 = arith.constant 0.000000e+00 : f32
    %17 = vector.broadcast %cst_14 : f32 to vector<128x128xf32>
    %18 = arith.maximumf %16, %17 : vector<128x128xf32>
    %19 = tpu.transpose %18, [1, 0] : vector<128x128xf32> -> vector<128x128xf32>
    %c0_15 = arith.constant 0 : index
    %c0_16 = arith.constant 0 : index
    %c0_17 = arith.constant 0 : index
    %20 = vector.load %arg7[%c0_15, %c0_16, %c0_17] : memref<1x128x128xf32, #tpu.memory_space<vmem>>, vector<1x128x128xf32>
    %21 = vector.shape_cast %20 : vector<1x128x128xf32> to vector<128x128xf32>
    %22 = vector.shape_cast %19 : vector<128x128xf32> to vector<1x128x128xf32>
    tpu.vector_store %arg7[%c0_15, %c0_16, %c0_17], %22 {strides = array<i32>} : memref<1x128x128xf32, #tpu.memory_space<vmem>>, vector<1x128x128xf32>,
    return
  }
  func.func @transform_0(%arg0: i32, %arg1: i32) -> (i32, i32, i32, i32) {
    %c0_i32 = arith.constant 0 : i32
    %c0_i32_0 = arith.constant 0 : i32
    %c0_i32_1 = arith.constant 0 : i32
    return %arg0, %arg1, %c0_i32, %c0_i32_0 : i32, i32, i32, i32
  }
  func.func @transform_1(%arg0: i32, %arg1: i32) -> (i32, i32) {
    %c0_i32 = arith.constant 0 : i32
    %c0_i32_0 = arith.constant 0 : i32
    %c0_i32_1 = arith.constant 0 : i32
    return %c0_i32, %c0_i32_0 : i32, i32
  }
  func.func @transform_2(%arg0: i32, %arg1: i32) -> (i32, i32) {
    %c0_i32 = arith.constant 0 : i32
    %c0_i32_0 = arith.constant 0 : i32
    %c0_i32_1 = arith.constant 0 : i32
    return %c0_i32, %c0_i32_0 : i32, i32
  }
  func.func @transform_3(%arg0: i32, %arg1: i32) -> (i32, i32) {
    %c0_i32 = arith.constant 0 : i32
    %c0_i32_0 = arith.constant 0 : i32
    %c0_i32_1 = arith.constant 0 : i32
    return %c0_i32, %c0_i32_0 : i32, i32
  }
  func.func @transform_4(%arg0: i32, %arg1: i32) -> (i32, i32) {
    %c0_i32 = arith.constant 0 : i32
    %c0_i32_0 = arith.constant 0 : i32
    %c0_i32_1 = arith.constant 0 : i32
    return %c0_i32, %c0_i32_0 : i32, i32
  }
  func.func @transform_5(%arg0: i32, %arg1: i32) -> (i32, i32, i32) {
    %c0_i32 = arith.constant 0 : i32
    %c0_i32_0 = arith.constant 0 : i32
    return %arg0, %c0_i32, %arg1 : i32, i32, i32
  }
}

</mosaic_0001>

<bundles_post_ra>
// kernel: tpu_custom_call.1
= control target key start
LH: loop header
LB: loop body
LE: loop exit
PB: predicated region body
PF: predicated region fallthrough
CT: control target
= control target key end

     0   :  { %10 = vsyncpa [#allocation3], 0  ;;  %s6709_s0 = inlined_call_operand.vmem [shape: bf16[2,128,8,8], index: 0, kind: input, shape index: {}]   ;;  %s6710_s1 = inlined_call_operand.vmem [shape: bf16[8,128], index: 1, kind: input, shape index: {}]   ;;  %s6711_s2 = inlined_call_operand.vmem [shape: bf16[128,128], index: 2, kind: input, shape index: {}]   ;;  %s6712_s3 = inlined_call_operand.vmem [shape: f32[1,128], index: 3, kind: input, shape index: {}]   ;;  %s6713_s4 = inlined_call_operand.vmem [shape: f32[1,128], index: 4, kind: input, shape index: {}]   ;;  %s6714_s5 = inlined_call_operand.hbm [shape: f32[2,128,128], index: 5, kind: output, shape index: {}]  }
   0x1   :  { %12 = vsyncpa [#allocation3 + $0x1], 0  ;;  %s5200_s18 = smov 0   ;;  %s5202_s19 = smov 0  }
   0x2   :  { %s5204_s20 = smov 0   ;;  %s5206_s21 = smov 0  }
   0x3   :  { %s5208_s22 = smov 0   ;;  %s5210_s23 = smov 0  }
   0x4 LB: > { %s4248_s24 = sadd.s32 4294967295, %s5165_s23   ;;  %s4249_s25 = sadd.s32 4294967294, %s5165_s23   ;;  %s5165_s23 = sphi %s5210_s23, %s18_s23   ;;  %s5161_s22 = sphi %s5208_s22, %s6733_s22   ;;  %s5157_s21 = sphi %s5206_s21, %s6732_s21   ;;  %s5153_s20 = sphi %s5204_s20, %s6731_s20   ;;  %s5149_s19 = sphi %s5202_s19, %s6730_s19   ;;  %s5145_s18 = sphi %s5200_s18, %s6729_s18  }
   0x5   : > { %s30_s26 = sadd.s32 1, %s5161_s22  ;;  %s151_s27 = sadd.s32 1, %s5153_s20 }
   0x6   : > { %p32_p0 = scmp.ge.s32.totalorder %s30_s26, 2  ;;  %p161_p1 = scmp.ne.s32.totalorder %s5153_s20, %s5149_s19 }
   0x7   : > { %p162_p2 = scmp.eq.s32.totalorder %s4248_s24, 1  ;;  %p167_p3 = scmp.ne.s32.totalorder %s5149_s19, %s5145_s18 }
   0x8   : > { %s6735_s26 = smov (%p32_p0, %s30_s26), 0  ;;  %p168_p5 = scmp.eq.s32.totalorder %s4249_s25, 1 }
   0x9   : > { %p5240_p4 = por %p162_p2, %p161_p1  ;;  %s146_s29 = ssub.s32 %s5161_s22, %s6735_s26 }
   0xa   : > { %p4252_p6 = scmp.ge.s32.totalorder %s5165_s23, 1  ;;  %p149_p7 = scmp.eq.s32.totalorder %s146_s29, 0 }
   0xb   : > { %p5247_p8 = por %p168_p5, %p167_p3  ;;  %p211_p9 = scmp.lt.s32.totalorder %s5165_s23, 3 }
   0xc   : > { %s5253_s6 = scalar_select %p149_p7, %s5153_s20, %s151_s27  }
   0xd   : > { %p212_p10 = pnand %p4252_p6, %p211_p9 }
   0xf   : > { %215 = sbr.rel (%p212_p10) target bundleno = 909 (0x38d), region = 40 }
  0x14   : > { %v382_v0 = vld [vmem:[%s6710_s1] sm:$0xf]  ;;  %vm903_vm0 = vcmask 1043456   ;;  %p244_p11 = scmp.lt.s32.totalorder %s5157_s21, 1  ;;  %vm710_vm1 = vcmask 64512   ;;  %v5048_v13 = vld [vmem:[%s6711_s2 + $0x38] sm:$0xff]  }
  0x15   : > { %4956 = vmatprep.subr.msk.bf16.mxu0 %vm903_vm0, %v382_v0  ;;  %v905_v1 = vsel %vm903_vm0, %v382_v0, 0  ;;  %4940 = vmatprep.subr.bf16.mxu1 %v5048_v13  ;;  %v5057_v16 = vld [vmem:[%s6711_s2 + $0x30] sm:$0xff]   ;;  %v5064_v21 = vld [vmem:[%s6711_s2 + $0x28] sm:$0xff]   ;;  %v5067_v24 = vld [vmem:[%s6711_s2 + $0x20] sm:$0xff]   ;;  %vm3861_vm2 = vcmask 1041409   ;;  %vm3864_vm3 = vcmask 1042434  }
  0x16   : > { %4667 = vmatpush3.bf16.msra.mxu0 %v905_v1  ;;  %s245_s9 = scalar_select %p244_p11, %s5157_s21, 1  ;;  %4948 = vmatpush3.bf16.msra.mxu1 %v5048_v13  ;;  %v5068_v26 = vld [vmem:[%s6711_s2 + $0x18] sm:$0xff]   ;;  %v5071_v28 = vld [vmem:[%s6711_s2 + $0x10] sm:$0xff]   ;;  %v5072_v30 = vld [vmem:[%s6711_s2 + $0x8] sm:$0xff]   ;;  %vm3867_vm4 = vcmask 1043459   ;;  %vm3870_vm5 = vcmask 1044484  }
  0x17   : > { %4796 = vmatprep.subr.bf16.mxu0 %v5048_v13  ;;  %4941 = vmatprep.subr.bf16.mxu1 %v5057_v16  ;;  %v5075_v32 = vld [vmem:[%s6711_s2] sm:$0xff]   ;;  %vm3873_vm6 = vcmask 1045509   ;;  %vm3876_vm7 = vcmask 1046534   ;;  %vm3879_vm8 = vcmask 1047559   ;;  %s4528_s14 = sshll.u32 %s5157_s21, 11  ;;  %s5167_s21 = smov [#allocation2]  }
  0x18   : > { %s4463_s10 = sshll.u32 %s245_s9, 9  ;;  %s5093_s27 = sshll.u32 %s5167_s21, 4  ;;  %s5094_s27 = int_to_ptr.vmem [resolvable:$false] %s5093_s27 }
  0x19   : > { %s5263_s13 = scalar_lea.vmem %s6709_s0, %s4463_s10  ;;  %s240_s10 = sand.u32 1, %s5149_s19  }
  0x1a   : > { %v5014_v2 = vld [vmem:[%s5263_s13] sm:$0xff]   ;;  %v5015_v3 = vld [vmem:[%s5263_s13 + $0x8] sm:$0xff]   ;;  %v5016_v4 = vld [vmem:[%s5263_s13 + $0x10] sm:$0xff]   ;;  %4949 = vmatpush3.bf16.msra.mxu1 %v5057_v16  ;;  %s4253_s11 = sshll.u32 %s240_s10, 7  ;;  %s6664_s24 = scalar_lea.sflag [#allocation3], %s240_s10 }
  0x1b   : > { %4668 = vmatprep.mubr.msk.bf16.mxu0 %vm710_vm1, %v5014_v2  ;;  %v5017_v5 = vld [vmem:[%s5263_s13 + $0x18] sm:$0xff]   ;;  %v5018_v6 = vld [vmem:[%s5263_s13 + $0x20] sm:$0xff]   ;;  %v5019_v7 = vld [vmem:[%s5263_s13 + $0x28] sm:$0xff]   ;;  %4942 = vmatprep.subr.bf16.mxu1 %v5064_v21  ;;  %s6635_s12 = scalar_lea.vmem [#allocation2], %s4253_s11  ;;  %s5095_s29 = scalar_lea.vmem %s5094_s27, 4096 }
  0x1c   : > { %4669 = vmatmul.mubr.msk.bf16.vlgmr.msra.gmra.mxu0 %vm710_vm1, %v5015_v3  ;;  %v5020_v8 = vld [vmem:[%s5263_s13 + $0x30] sm:$0xff]   ;;  %v5021_v9 = vld [vmem:[%s5263_s13 + $0x38] sm:$0xff]   ;;  %v5022_v10 = vld [vmem:[%s5263_s13 + $0x40] sm:$0xff]   ;;  %s4170_s15 = sshll.u32 %s6635_s12, 4  ;;  %s6659_s15 = int_to_ptr.vmem [resolvable:$true] %s4170_s15 }
  0x1d   : > { %4672 = vmatprep.mubr.msk.bf16.mxu0 %vm710_vm1, %v5016_v4  ;;  %v5023_v11 = vld [vmem:[%s5263_s13 + $0x48] sm:$0xff]   ;;  %v5024_v12 = vld [vmem:[%s5263_s13 + $0x50] sm:$0xff]   ;;  %4797 = vmatpush3.bf16.msra.mxu0 %v5048_v13  ;;  %v5025_v14 = vld [vmem:[%s5263_s13 + $0x58] sm:$0xff]   ;;  %s5089_s25 = scalar_lea.vmem %s6659_s15, 2048  ;;  %p5096_p1 = scmp.lt.s32.totalorder %s6659_s15, %s5094_s27 }
  0x1e   : > { %v5026_v15 = vld [vmem:[%s5263_s13 + $0x60] sm:$0xff]   ;;  %4798 = vmatprep.subr.bf16.mxu0 %v5057_v16  ;;  %v5027_v17 = vld [vmem:[%s5263_s13 + $0x68] sm:$0xff]   ;;  %v5028_v18 = vld [vmem:[%s5263_s13 + $0x70] sm:$0xff]   ;;  %4950 = vmatpush3.bf16.msra.mxu1 %v5064_v21  ;;  %p5090_p12 = scmp.ne.s32.totalorder %s6659_s15, %s5089_s25  ;;  %p5097_p2 = scmp.lt.s32.totalorder %s5095_s29, %s5089_s25 }
  0x1f   : > { %v5029_v19 = vld [vmem:[%s5263_s13 + $0x78] sm:$0xff]   ;;  %v5030_v20 = vld [vmem:[%s5263_s13 + $0x80] sm:$0xff]   ;;  %v5031_v22 = vld [vmem:[%s5263_s13 + $0x88] sm:$0xff]   ;;  %4943 = vmatprep.subr.bf16.mxu1 %v5067_v24 }
  0x20   : > { %v5032_v23 = vld [vmem:[%s5263_s13 + $0x90] sm:$0xff]   ;;  %v5033_v25 = vld [vmem:[%s5263_s13 + $0x98] sm:$0xff]   ;;  %v5034_v27 = vld [vmem:[%s5263_s13 + $0xa0] sm:$0xff]   ;;  %p5091_p13 = pnand %p5090_p12, %p5240_p4  ;;  %p5098_p3 = por %p5097_p2, %p5096_p1 }
  0x21   : > { %4799 = vmatpush3.bf16.msra.mxu0 %v5057_v16  ;;  %v5035_v29 = vld [vmem:[%s5263_s13 + $0xa8] sm:$0xff]   ;;  %v5036_v31 = vld [vmem:[%s5263_s13 + $0xb0] sm:$0xff]   ;;  %v5037_v33 = vld [vmem:[%s5263_s13 + $0xb8] sm:$0xff]  }
  0x22   : > { %4800 = vmatprep.subr.bf16.mxu0 %v5064_v21  ;;  %4951 = vmatpush3.bf16.msra.mxu1 %v5067_v24  ;;  %v5038_v34 = vld [vmem:[%s5263_s13 + $0xc0] sm:$0xff]   ;;  %v5039_v35 = vld [vmem:[%s5263_s13 + $0xc8] sm:$0xff]   ;;  %v5040_v36 = vld [vmem:[%s5263_s13 + $0xd0] sm:$0xff]   ;;  %p5092_p0 = pneg %p5091_p13 }
  0x23   : > { %4944 = vmatprep.subr.bf16.mxu1 %v5068_v26  ;;  %v5041_v37 = vld [vmem:[%s5263_s13 + $0xd8] sm:$0xff]   ;;  %v5042_v38 = vld [vmem:[%s5263_s13 + $0xe0] sm:$0xff]   ;;  %v5043_v39 = vld [vmem:[%s5263_s13 + $0xe8] sm:$0xff]  }
  0x24   : > { %4673 = vmatmul.mubr.msk.bf16.gmra.mxu0 %vm710_vm1, %v5017_v5  ;;  %v5044_v40 = vld [vmem:[%s5263_s13 + $0xf0] sm:$0xff]   ;;  %v5045_v41 = vld [vmem:[%s5263_s13 + $0xf8] sm:$0xff]   ;;  %v5046_v42 = vld [vmem:[%s5263_s13 + $0x100] sm:$0xff]   ;;  %p5099_p5 = pnand %p5098_p3, %p5092_p0 }
  0x25   : > { %4676 = vmatprep.mubr.msk.bf16.mxu0 %vm710_vm1, %v5018_v6  ;;  %4801 = vmatpush3.bf16.msra.mxu0 %v5064_v21  ;;  %v5047_v43 = vld [vmem:[%s5263_s13 + $0x108] sm:$0xff]   ;;  %v5049_v44 = vld [vmem:[%s5263_s13 + $0x110] sm:$0xff]   ;;  %v5050_v45 = vld [vmem:[%s5263_s13 + $0x118] sm:$0xff]  }
  0x26   : > { %4802 = vmatprep.subr.bf16.mxu0 %v5067_v24  ;;  %4952 = vmatpush3.bf16.msra.mxu1 %v5068_v26  ;;  %v5051_v46 = vld [vmem:[%s5263_s13 + $0x120] sm:$0xff]   ;;  %v5052_v47 = vld [vmem:[%s5263_s13 + $0x128] sm:$0xff]   ;;  %v5053_v48 = vld [vmem:[%s5263_s13 + $0x130] sm:$0xff]  }
  0x27   : > { %4945 = vmatprep.subr.bf16.mxu1 %v5071_v28  ;;  %v5054_v49 = vld [vmem:[%s5263_s13 + $0x138] sm:$0xff]   ;;  %v5055_v50 = vld [vmem:[%s5263_s13 + $0x140] sm:$0xff]   ;;  %v5056_v51 = vld [vmem:[%s5263_s13 + $0x148] sm:$0xff]  }
  0x28   : > { %v5058_v52 = vld [vmem:[%s5263_s13 + $0x150] sm:$0xff]   ;;  %v5059_v53 = vld [vmem:[%s5263_s13 + $0x158] sm:$0xff]   ;;  %v5060_v54 = vld [vmem:[%s5263_s13 + $0x160] sm:$0xff]  }
  0x29   : > { %4803 = vmatpush3.bf16.msra.mxu0 %v5067_v24  ;;  %v5061_v55 = vld [vmem:[%s5263_s13 + $0x168] sm:$0xff]   ;;  %v5062_v56 = vld [vmem:[%s5263_s13 + $0x170] sm:$0xff]   ;;  %v5063_v57 = vld [vmem:[%s5263_s13 + $0x178] sm:$0xff]  }
  0x2a   : > { %4804 = vmatprep.subr.bf16.mxu0 %v5068_v26  ;;  %4953 = vmatpush3.bf16.msra.mxu1 %v5071_v28  ;;  %v5065_v58 = vld [vmem:[%s5263_s13 + $0x180] sm:$0xff]   ;;  %v5066_v59 = vld [vmem:[%s5263_s13 + $0x188] sm:$0xff]   ;;  %v5069_v60 = vld [vmem:[%s5263_s13 + $0x190] sm:$0xff]  }
  0x2b   : > { %4946 = vmatprep.subr.bf16.mxu1 %v5072_v30  ;;  %v5070_v0 = vld [vmem:[%s5263_s13 + $0x198] sm:$0xff]   ;;  %v5073_v1 = vld [vmem:[%s5263_s13 + $0x1a0] sm:$0xff]  }
  0x2c   : > { %4677 = vmatmul.mubr.msk.bf16.gmra.mxu0 %vm710_vm1, %v5019_v7  ;;  %v5406_v5 = vld [vmem:[%s6712_s3] ss:$0 sm:$0xff]  ;;  %v5074_v7 = vld [vmem:[%s5263_s13 + $0x1a8] sm:$0xff]  }
  0x2d   : > { %4680 = vmatprep.mubr.msk.bf16.mxu0 %vm710_vm1, %v5020_v8  ;;  %4805 = vmatpush3.bf16.msra.mxu0 %v5068_v26  ;;  %v5078_v26 = vld [vmem:[%s5263_s13 + $0x1c0] sm:$0xff]  }
  0x2e   : > { %4806 = vmatprep.subr.bf16.mxu0 %v5071_v28  ;;  %4954 = vmatpush3.bf16.msra.mxu1 %v5072_v30 }
  0x2f   : > { %4947 = vmatprep.subr.bf16.mxu1 %v5075_v32 }
  0x31   : > { %4807 = vmatpush3.bf16.msra.mxu0 %v5071_v28 }
  0x32   : > { %4808 = vmatprep.subr.bf16.mxu0 %v5072_v30  ;;  %4955 = vmatpush3.bf16.msra.mxu1 %v5075_v32 }
  0x34   : > { %4681 = vmatmul.mubr.msk.bf16.gmra.mxu0 %vm710_vm1, %v5021_v9 }
  0x35   : > { %4684 = vmatprep.mubr.msk.bf16.mxu0 %vm710_vm1, %v5022_v10  ;;  %4809 = vmatpush3.bf16.msra.mxu0 %v5072_v30  ;;  %v5076_v10 = vld [vmem:[%s5263_s13 + $0x1b0] sm:$0xff]  }
  0x36   : > { %4810 = vmatprep.subr.bf16.mxu0 %v5075_v32 }
  0x39   : > { %4811 = vmatpush3.bf16.msra.mxu0 %v5075_v32 }
  0x3c   : > { %4685 = vmatmul.mubr.msk.bf16.gmra.mxu0 %vm710_vm1, %v5023_v11 }
  0x3d   : > { %4688 = vmatprep.mubr.msk.bf16.mxu0 %vm710_vm1, %v5024_v12 }
  0x44   : > { %4689 = vmatmul.mubr.msk.bf16.gmra.mxu0 %vm710_vm1, %v5025_v14 }
  0x45   : > { %4692 = vmatprep.mubr.msk.bf16.mxu0 %vm710_vm1, %v5026_v15 }
  0x4c   : > { %4693 = vmatmul.mubr.msk.bf16.gmra.mxu0 %vm710_vm1, %v5027_v17 }
  0x4d   : > { %4696 = vmatprep.mubr.msk.bf16.mxu0 %vm710_vm1, %v5028_v18 }
  0x54   : > { %4697 = vmatmul.mubr.msk.bf16.gmra.mxu0 %vm710_vm1, %v5029_v19 }
  0x55   : > { %4700 = vmatprep.mubr.msk.bf16.mxu0 %vm710_vm1, %v5030_v20 }
  0x5c   : > { %4701 = vmatmul.mubr.msk.bf16.gmra.mxu0 %vm710_vm1, %v5031_v22 }
  0x5d   : > { %4704 = vmatprep.mubr.msk.bf16.mxu0 %vm710_vm1, %v5032_v23  ;;  %v5077_v23 = vld [vmem:[%s5263_s13 + $0x1b8] sm:$0xff]  }
  0x64   : > { %4705 = vmatmul.mubr.msk.bf16.gmra.mxu0 %vm710_vm1, %v5033_v25 }
  0x65   : > { %4708 = vmatprep.mubr.msk.bf16.mxu0 %vm710_vm1, %v5034_v27 }
  0x6c   : > { %4709 = vmatmul.mubr.msk.bf16.gmra.mxu0 %vm710_vm1, %v5035_v29 }
  0x6d   : > { %4712 = vmatprep.mubr.msk.bf16.mxu0 %vm710_vm1, %v5036_v31 }
  0x74   : > { %4713 = vmatmul.mubr.msk.bf16.gmra.mxu0 %vm710_vm1, %v5037_v33 }
  0x75   : > { %4716 = vmatprep.mubr.msk.bf16.mxu0 %vm710_vm1, %v5038_v34 }
  0x7c   : > { %4717 = vmatmul.mubr.msk.bf16.gmra.mxu0 %vm710_vm1, %v5039_v35 }
  0x7d   : > { %4720 = vmatprep.mubr.msk.bf16.mxu0 %vm710_vm1, %v5040_v36 }
  0x84   : > { %4721 = vmatmul.mubr.msk.bf16.gmra.mxu0 %vm710_vm1, %v5041_v37 }
  0x85   : > { %4724 = vmatprep.mubr.msk.bf16.mxu0 %vm710_vm1, %v5042_v38 }
  0x8c   : > { %4725 = vmatmul.mubr.msk.bf16.gmra.mxu0 %vm710_vm1, %v5043_v39  ;;  %v5079_v39 = vld [vmem:[%s5263_s13 + $0x1c8] sm:$0xff]  }
  0x8d   : > { %4728 = vmatprep.mubr.msk.bf16.mxu0 %vm710_vm1, %v5044_v40 }
  0x94   : > { %4729 = vmatmul.mubr.msk.bf16.gmra.mxu0 %vm710_vm1, %v5045_v41 }
  0x95   : > { %4732 = vmatprep.mubr.msk.bf16.mxu0 %vm710_vm1, %v5046_v42  ;;  %v5080_v42 = vld [vmem:[%s5263_s13 + $0x1d0] sm:$0xff]  }
  0x9c   : > { %4733 = vmatmul.mubr.msk.bf16.gmra.mxu0 %vm710_vm1, %v5047_v43 }
  0x9d   : > { %4736 = vmatprep.mubr.msk.bf16.mxu0 %vm710_vm1, %v5049_v44 }
  0xa4   : > { %4737 = vmatmul.mubr.msk.bf16.gmra.mxu0 %vm710_vm1, %v5050_v45 }
  0xa5   : > { %4740 = vmatprep.mubr.msk.bf16.mxu0 %vm710_vm1, %v5051_v46 }
  0xac   : > { %4741 = vmatmul.mubr.msk.bf16.gmra.mxu0 %vm710_vm1, %v5052_v47 }
  0xad   : > { %4744 = vmatprep.mubr.msk.bf16.mxu0 %vm710_vm1, %v5053_v48 }
  0xb4   : > { %4745 = vmatmul.mubr.msk.bf16.gmra.mxu0 %vm710_vm1, %v5054_v49 }
  0xb5   : > { %4748 = vmatprep.mubr.msk.bf16.mxu0 %vm710_vm1, %v5055_v50 }
  0xbc   : > { %4749 = vmatmul.mubr.msk.bf16.gmra.mxu0 %vm710_vm1, %v5056_v51 }
  0xbd   : > { %4752 = vmatprep.mubr.msk.bf16.mxu0 %vm710_vm1, %v5058_v52 }
  0xc4   : > { %4753 = vmatmul.mubr.msk.bf16.gmra.mxu0 %vm710_vm1, %v5059_v53 }
  0xc5   : > { %4756 = vmatprep.mubr.msk.bf16.mxu0 %vm710_vm1, %v5060_v54 }
  0xcc   : > { %4757 = vmatmul.mubr.msk.bf16.gmra.mxu0 %vm710_vm1, %v5061_v55  ;;  %v5081_v55 = vld [vmem:[%s5263_s13 + $0x1d8] sm:$0xff]  }
  0xcd   : > { %4760 = vmatprep.mubr.msk.bf16.mxu0 %vm710_vm1, %v5062_v56 }
  0xd4   : > { %4761 = vmatmul.mubr.msk.bf16.gmra.mxu0 %vm710_vm1, %v5063_v57 }
  0xd5   : > { %4764 = vmatprep.mubr.msk.bf16.mxu0 %vm710_vm1, %v5065_v58  ;;  %v5082_v58 = vld [vmem:[%s5263_s13 + $0x1e0] sm:$0xff]  }
  0xdc   : > { %v5389_v61 = vpop.f32.mrf.mxu0  ;;  %4765 = vmatmul.mubr.msk.bf16.gmra.mxu0 %vm710_vm1, %v5066_v59 }
  0xdd   : > { %4768 = vmatprep.mubr.msk.bf16.mxu0 %vm710_vm1, %v5069_v60 }
  0xde   : > { %v5393_v62 = vpop.f32.mrf.mxu0 }
  0xe0   : > { %v5395_v63 = vpop.f32.mrf.mxu0 }
  0xe2   : > { %v5399_v2 = vpop.f32.mrf.mxu0 }
  0xe4   : > { %v4674_v3 = vpop.f32.mrf.mxu0  ;;  %4769 = vmatmul.mubr.msk.bf16.gmra.mxu0 %vm710_vm1, %v5070_v0 }
  0xe5   : > { %4772 = vmatprep.mubr.msk.bf16.mxu0 %vm710_vm1, %v5073_v1  ;;  %v966_v11 = vadd.f32 %v4674_v3, %v5406_v5 }
  0xe6   : > { %v957_v4 = vpop.f32.mrf.mxu0 }
  0xe7   : > { %v958_v8 = vadd.f32 %v5406_v5, %v957_v4  ;;  %v1458_v18 = vmax.f32 %v966_v11, 0.0 }
  0xe8   : > { %v4675_v6 = vpop.f32.mrf.mxu0 }
  0xe9   : > { %v969_v9 = vadd.f32 %v4675_v6, %v5406_v5  ;;  %v1456_v16 = vmax.f32 %v958_v8, 0.0 }
  0xea   : > { %v960_v12 = vpop.f32.mrf.mxu0 }
  0xeb   : > { %v961_v13 = vadd.f32 %v5406_v5, %v960_v12  ;;  %v1459_v14 = vmax.f32 %v969_v9, 0.0  ;;  %v5083_v12 = vld [vmem:[%s5263_s13 + $0x1e8] sm:$0xff]  }
  0xec   : > { %v4678_v15 = vpop.f32.mrf.mxu0  ;;  %4773 = vmatmul.mubr.msk.bf16.gmra.mxu0 %vm710_vm1, %v5074_v7 }
  0xed   : > { %v1457_v17 = vmax.f32 %v961_v13, 0.0  ;;  %4776 = vmatprep.mubr.msk.bf16.mxu0 %vm710_vm1, %v5076_v10  ;;  %v4467_v21 = vpack.c.bf16 %v1459_v14, %v1458_v18  ;;  %v982_v27 = vadd.f32 %v4678_v15, %v5406_v5  ;;  %v5084_v15 = vld [vmem:[%s5263_s13 + $0x1f0] sm:$0xff]   ;;  %v945_v18 = vadd.f32 %v5406_v5, %v5399_v2  ;;  %v5085_v2 = vld [vmem:[%s5263_s13 + $0x1f8] sm:$0xff]   ;;  %s6657_s13 = scalar_lea.hbm %s6714_s5, %s4528_s14 }
  0xee   : > { %v973_v19 = vpop.f32.mrf.mxu0 }
  0xef   : > { %v4466_v20 = vpack.c.bf16 %v1457_v17, %v1456_v16  ;;  %v974_v24 = vadd.f32 %v5406_v5, %v973_v19  ;;  %v1462_v34 = vmax.f32 %v982_v27, 0.0  ;;  %v1453_v27 = vmax.f32 %v945_v18, 0.0 }
  0xf0   : > { %v4679_v22 = vpop.f32.mrf.mxu0 }
  0xf1   : > { %v985_v25 = vadd.f32 %v4679_v22, %v5406_v5  ;;  %4816 = vmatprep.mubr.bf16.mxu1 %v4466_v20  ;;  %v1460_v32 = vmax.f32 %v974_v24, 0.0  ;;  %v942_v22 = vadd.f32 %v5406_v5, %v5393_v62  ;;  %v953_v62 = vadd.f32 %v5395_v63, %v5406_v5 }
  0xf2   : > { %v976_v28 = vpop.f32.mrf.mxu0  ;;  %4817 = vmatmul.mubr.bf16.vlgmr.msra.gmra.mxu1 %v4467_v21 }
  0xf3   : > { %v977_v29 = vadd.f32 %v5406_v5, %v976_v28  ;;  %v1463_v30 = vmax.f32 %v985_v25, 0.0 }
  0xf4   : > { %v4682_v31 = vpop.f32.mrf.mxu0  ;;  %4777 = vmatmul.mubr.msk.bf16.gmra.mxu0 %vm710_vm1, %v5077_v23 }
  0xf5   : > { %v1461_v33 = vmax.f32 %v977_v29, 0.0  ;;  %4780 = vmatprep.mubr.msk.bf16.mxu0 %vm710_vm1, %v5078_v26  ;;  %v4469_v37 = vpack.c.bf16 %v1463_v30, %v1462_v34  ;;  %v998_v43 = vadd.f32 %v4682_v31, %v5406_v5  ;;  %v1452_v31 = vmax.f32 %v942_v22, 0.0 }
  0xf6   : > { %v989_v35 = vpop.f32.mrf.mxu0 }
  0xf7   : > { %v4468_v36 = vpack.c.bf16 %v1461_v33, %v1460_v32  ;;  %v990_v40 = vadd.f32 %v5406_v5, %v989_v35  ;;  %v1466_v50 = vmax.f32 %v998_v43, 0.0  ;;  %v1455_v43 = vmax.f32 %v953_v62, 0.0 }
  0xf8   : > { %v4683_v38 = vpop.f32.mrf.mxu0 }
  0xf9   : > { %v1001_v41 = vadd.f32 %v4683_v38, %v5406_v5  ;;  %4820 = vmatprep.mubr.bf16.mxu1 %v4468_v36  ;;  %v1464_v48 = vmax.f32 %v990_v40, 0.0  ;;  %v950_v38 = vadd.f32 %v5389_v61, %v5406_v5 }
  0xfa   : > { %v992_v44 = vpop.f32.mrf.mxu0  ;;  %4821 = vmatmul.mubr.bf16.gmra.mxu1 %v4469_v37  ;;  %v4464_v37 = vpack.c.bf16 %v1453_v27, %v1452_v31 }
  0xfb   : > { %v993_v45 = vadd.f32 %v5406_v5, %v992_v44  ;;  %v1467_v46 = vmax.f32 %v1001_v41, 0.0 }
  0xfc   : > { %v4686_v47 = vpop.f32.mrf.mxu0  ;;  %4781 = vmatmul.mubr.msk.bf16.gmra.mxu0 %vm710_vm1, %v5079_v39 }
  0xfd   : > { %v1465_v49 = vmax.f32 %v993_v45, 0.0  ;;  %4784 = vmatprep.mubr.msk.bf16.mxu0 %vm710_vm1, %v5080_v42  ;;  %v4471_v53 = vpack.c.bf16 %v1467_v46, %v1466_v50  ;;  %v1014_v59 = vadd.f32 %v4686_v47, %v5406_v5  ;;  %v1454_v46 = vmax.f32 %v950_v38, 0.0 }
  0xfe   : > { %v1005_v51 = vpop.f32.mrf.mxu0 }
  0xff   : > { %v4470_v52 = vpack.c.bf16 %v1465_v49, %v1464_v48  ;;  %v1006_v56 = vadd.f32 %v5406_v5, %v1005_v51  ;;  %v1470_v7 = vmax.f32 %v1014_v59, 0.0  ;;  %v4465_v61 = vpack.c.bf16 %v1455_v43, %v1454_v46 }
 0x100   : > { %v4687_v54 = vpop.f32.mrf.mxu0 }
 0x101   : > { %v1017_v57 = vadd.f32 %v4687_v54, %v5406_v5  ;;  %4824 = vmatprep.mubr.bf16.mxu1 %v4470_v52  ;;  %v1468_v4 = vmax.f32 %v1006_v56, 0.0 }
 0x102   : > { %v1008_v60 = vpop.f32.mrf.mxu0  ;;  %4825 = vmatmul.mubr.bf16.gmra.mxu1 %v4471_v53 }
 0x103   : > { %v1009_v0 = vadd.f32 %v5406_v5, %v1008_v60  ;;  %v1471_v1 = vmax.f32 %v1017_v57, 0.0 }
 0x104   : > { %v4690_v3 = vpop.f32.mrf.mxu0  ;;  %4785 = vmatmul.mubr.msk.bf16.gmra.mxu0 %vm710_vm1, %v5081_v55 }
 0x105   : > { %v1469_v6 = vmax.f32 %v1009_v0, 0.0  ;;  %4788 = vmatprep.mubr.msk.bf16.mxu0 %vm710_vm1, %v5082_v58  ;;  %v4473_v10 = vpack.c.bf16 %v1471_v1, %v1470_v7  ;;  %v1030_v16 = vadd.f32 %v4690_v3, %v5406_v5 }
 0x106   : > { %v1021_v8 = vpop.f32.mrf.mxu0 }
 0x107   : > { %v4472_v9 = vpack.c.bf16 %v1469_v6, %v1468_v4  ;;  %v1022_v13 = vadd.f32 %v5406_v5, %v1021_v8  ;;  %v1474_v25 = vmax.f32 %v1030_v16, 0.0 }
 0x108   : > { %v4691_v11 = vpop.f32.mrf.mxu0 }
 0x109   : > { %v1033_v14 = vadd.f32 %v4691_v11, %v5406_v5  ;;  %4828 = vmatprep.mubr.bf16.mxu1 %v4472_v9  ;;  %v1472_v23 = vmax.f32 %v1022_v13, 0.0 }
 0x10a   : > { %v1024_v17 = vpop.f32.mrf.mxu0  ;;  %4829 = vmatmul.mubr.bf16.gmra.mxu1 %v4473_v10 }
 0x10b   : > { %v1025_v19 = vadd.f32 %v5406_v5, %v1024_v17  ;;  %v1475_v20 = vmax.f32 %v1033_v14, 0.0 }
 0x10c   : > { %v4694_v21 = vpop.f32.mrf.mxu0  ;;  %4789 = vmatmul.mubr.msk.bf16.gmra.mxu0 %vm710_vm1, %v5083_v12 }
 0x10d   : > { %v1473_v24 = vmax.f32 %v1025_v19, 0.0  ;;  %4792 = vmatprep.mubr.msk.bf16.mxu0 %vm710_vm1, %v5084_v15  ;;  %v4475_v29 = vpack.c.bf16 %v1475_v20, %v1474_v25  ;;  %v1046_v34 = vadd.f32 %v4694_v21, %v5406_v5 }
 0x10e   : > { %v1037_v26 = vpop.f32.mrf.mxu0 }
 0x10f   : > { %v4474_v28 = vpack.c.bf16 %v1473_v24, %v1472_v23  ;;  %v1038_v32 = vadd.f32 %v5406_v5, %v1037_v26  ;;  %v1478_v44 = vmax.f32 %v1046_v34, 0.0 }
 0x110   : > { %v4695_v30 = vpop.f32.mrf.mxu0 }
 0x111   : > { %v1049_v33 = vadd.f32 %v4695_v30, %v5406_v5  ;;  %4832 = vmatprep.mubr.bf16.mxu1 %v4474_v28  ;;  %v1476_v41 = vmax.f32 %v1038_v32, 0.0 }
 0x112   : > { %v1040_v35 = vpop.f32.mrf.mxu0  ;;  %4833 = vmatmul.mubr.bf16.gmra.mxu1 %v4475_v29 }
 0x113   : > { %v1041_v36 = vadd.f32 %v5406_v5, %v1040_v35  ;;  %v1479_v39 = vmax.f32 %v1049_v33, 0.0 }
 0x114   : > { %v4698_v40 = vpop.f32.mrf.mxu0  ;;  %4793 = vmatmul.mubr.msk.bf16.gmra.mxu0 %vm710_vm1, %v5085_v2 }
 0x115   : > { %v1477_v42 = vmax.f32 %v1041_v36, 0.0  ;;  %4812 = vmatprep.mubr.bf16.mxu0 %v4464_v37  ;;  %v4477_v47 = vpack.c.bf16 %v1479_v39, %v1478_v44  ;;  %v1062_v51 = vadd.f32 %v4698_v40, %v5406_v5 }
 0x116   : > { %v1053_v63 = vpop.f32.mrf.mxu0 }
 0x117   : > { %v4476_v45 = vpack.c.bf16 %v1477_v42, %v1476_v41  ;;  %v1054_v49 = vadd.f32 %v5406_v5, %v1053_v63  ;;  %v1482_v58 = vmax.f32 %v1062_v51, 0.0 }
 0x118   : > { %v4699_v48 = vpop.f32.mrf.mxu0 }
 0x119   : > { %v1065_v50 = vadd.f32 %v4699_v48, %v5406_v5  ;;  %4836 = vmatprep.mubr.bf16.mxu1 %v4476_v45  ;;  %v1480_v56 = vmax.f32 %v1054_v49, 0.0 }
 0x11a   : > { %v1056_v52 = vpop.f32.mrf.mxu0  ;;  %4837 = vmatmul.mubr.bf16.gmra.mxu1 %v4477_v47 }
 0x11b   : > { %v1057_v53 = vadd.f32 %v5406_v5, %v1056_v52  ;;  %v1483_v54 = vmax.f32 %v1065_v50, 0.0 }
 0x11c   : > { %v4702_v55 = vpop.f32.mrf.mxu0  ;;  %4813 = vmatmul.mubr.bf16.vlgmr.msra.gmra.mxu0 %v4465_v61 }
 0x11d   : > { %v1481_v57 = vmax.f32 %v1057_v53, 0.0  ;;  %v4479_v0 = vpack.c.bf16 %v1483_v54, %v1482_v58  ;;  %v1078_v6 = vadd.f32 %v4702_v55, %v5406_v5 }
 0x11e   : > { %v1069_v59 = vpop.f32.mrf.mxu0 }
 0x11f   : > { %v4478_v60 = vpack.c.bf16 %v1481_v57, %v1480_v56  ;;  %v1070_v3 = vadd.f32 %v5406_v5, %v1069_v59  ;;  %v1486_v13 = vmax.f32 %v1078_v6, 0.0 }
 0x120   : > { %v4703_v1 = vpop.f32.mrf.mxu0 }
 0x121   : > { %v1081_v4 = vadd.f32 %v4703_v1, %v5406_v5  ;;  %4840 = vmatprep.mubr.bf16.mxu1 %v4478_v60  ;;  %v1484_v11 = vmax.f32 %v1070_v3, 0.0 }
 0x122   : > { %v1072_v7 = vpop.f32.mrf.mxu0  ;;  %4841 = vmatmul.mubr.bf16.gmra.mxu1 %v4479_v0 }
 0x123   : > { %v1073_v8 = vadd.f32 %v5406_v5, %v1072_v7  ;;  %v1487_v9 = vmax.f32 %v1081_v4, 0.0 }
 0x124   : > { %v4706_v10 = vpop.f32.mrf.mxu0 }
 0x125   : > { %v1485_v12 = vmax.f32 %v1073_v8, 0.0  ;;  %v4481_v16 = vpack.c.bf16 %v1487_v9, %v1486_v13  ;;  %v1094_v20 = vadd.f32 %v4706_v10, %v5406_v5 }
 0x126   : > { %v1085_v14 = vpop.f32.mrf.mxu0 }
 0x127   : > { %v4480_v15 = vpack.c.bf16 %v1485_v12, %v1484_v11  ;;  %v1086_v18 = vadd.f32 %v5406_v5, %v1085_v14  ;;  %v1490_v27 = vmax.f32 %v1094_v20, 0.0 }
 0x128   : > { %v4707_v17 = vpop.f32.mrf.mxu0 }
 0x129   : > { %v1097_v19 = vadd.f32 %v4707_v17, %v5406_v5  ;;  %4844 = vmatprep.mubr.bf16.mxu1 %v4480_v15  ;;  %v1488_v25 = vmax.f32 %v1086_v18, 0.0 }
 0x12a   : > { %v1088_v21 = vpop.f32.mrf.mxu0  ;;  %4845 = vmatmul.mubr.bf16.gmra.mxu1 %v4481_v16 }
 0x12b   : > { %v1089_v22 = vadd.f32 %v5406_v5, %v1088_v21  ;;  %v1491_v23 = vmax.f32 %v1097_v19, 0.0 }
 0x12c   : > { %v4710_v24 = vpop.f32.mrf.mxu0 }
 0x12d   : > { %v1489_v26 = vmax.f32 %v1089_v22, 0.0  ;;  %v4483_v30 = vpack.c.bf16 %v1491_v23, %v1490_v27  ;;  %v1110_v33 = vadd.f32 %v4710_v24, %v5406_v5 }
 0x12e   : > { %v1101_v28 = vpop.f32.mrf.mxu0 }
 0x12f   : > { %v4482_v29 = vpack.c.bf16 %v1489_v26, %v1488_v25  ;;  %v1102_v31 = vadd.f32 %v5406_v5, %v1101_v28  ;;  %v1494_v39 = vmax.f32 %v1110_v33, 0.0 }
 0x130   : > { %v4711_v2 = vpop.f32.mrf.mxu0 }
 0x131   : > { %v1113_v32 = vadd.f32 %v4711_v2, %v5406_v5  ;;  %4848 = vmatprep.mubr.bf16.mxu1 %v4482_v29  ;;  %v1492_v37 = vmax.f32 %v1102_v31, 0.0 }
 0x132   : > { %v1104_v62 = vpop.f32.mrf.mxu0  ;;  %4849 = vmatmul.mubr.bf16.gmra.mxu1 %v4483_v30 }
 0x133   : > { %v1105_v34 = vadd.f32 %v5406_v5, %v1104_v62  ;;  %v1495_v35 = vmax.f32 %v1113_v32, 0.0 }
 0x134   : > { %v4714_v36 = vpop.f32.mrf.mxu0 }
 0x135   : > { %v1493_v38 = vmax.f32 %v1105_v34, 0.0  ;;  %v4485_v42 = vpack.c.bf16 %v1495_v35, %v1494_v39  ;;  %v1126_v45 = vadd.f32 %v4714_v36, %v5406_v5 }
 0x136   : > { %v1117_v40 = vpop.f32.mrf.mxu0 }
 0x137   : > { %v4484_v41 = vpack.c.bf16 %v1493_v38, %v1492_v37  ;;  %v1118_v44 = vadd.f32 %v5406_v5, %v1117_v40  ;;  %v1498_v51 = vmax.f32 %v1126_v45, 0.0 }
 0x138   : > { %v4715_v43 = vpop.f32.mrf.mxu0 }
 0x139   : > { %v1129_v63 = vadd.f32 %v4715_v43, %v5406_v5  ;;  %4852 = vmatprep.mubr.bf16.mxu1 %v4484_v41  ;;  %v1496_v50 = vmax.f32 %v1118_v44, 0.0 }
 0x13a   : > { %v1120_v46 = vpop.f32.mrf.mxu0  ;;  %4853 = vmatmul.mubr.bf16.gmra.mxu1 %v4485_v42 }
 0x13b   : > { %v1121_v47 = vadd.f32 %v5406_v5, %v1120_v46  ;;  %v1499_v48 = vmax.f32 %v1129_v63, 0.0 }
 0x13c   : > { %v4718_v49 = vpop.f32.mrf.mxu0 }
 0x13d   : > { %v1497_v61 = vmax.f32 %v1121_v47, 0.0  ;;  %v4487_v54 = vpack.c.bf16 %v1499_v48, %v1498_v51  ;;  %v1142_v58 = vadd.f32 %v4718_v49, %v5406_v5 }
 0x13e   : > { %v1133_v52 = vpop.f32.mrf.mxu0 }
 0x13f   : > { %v4486_v53 = vpack.c.bf16 %v1497_v61, %v1496_v50  ;;  %v1134_v56 = vadd.f32 %v5406_v5, %v1133_v52  ;;  %v1502_v6 = vmax.f32 %v1142_v58, 0.0 }
 0x140   : > { %v4719_v55 = vpop.f32.mrf.mxu0 }
 0x141   : > { %v1145_v57 = vadd.f32 %v4719_v55, %v5406_v5  ;;  %4856 = vmatprep.mubr.bf16.mxu1 %v4486_v53  ;;  %v1500_v3 = vmax.f32 %v1134_v56, 0.0 }
 0x142   : > { %v1136_v59 = vpop.f32.mrf.mxu0  ;;  %4857 = vmatmul.mubr.bf16.gmra.mxu1 %v4487_v54 }
 0x143   : > { %v1137_v60 = vadd.f32 %v5406_v5, %v1136_v59  ;;  %v1503_v0 = vmax.f32 %v1145_v57, 0.0 }
 0x144   : > { %v4722_v1 = vpop.f32.mrf.mxu0 }
 0x145   : > { %v1501_v4 = vmax.f32 %v1137_v60, 0.0  ;;  %v4489_v9 = vpack.c.bf16 %v1503_v0, %v1502_v6  ;;  %v1158_v13 = vadd.f32 %v4722_v1, %v5406_v5 }
 0x146   : > { %v1149_v7 = vpop.f32.mrf.mxu0 }
 0x147   : > { %v4488_v8 = vpack.c.bf16 %v1501_v4, %v1500_v3  ;;  %v1150_v11 = vadd.f32 %v5406_v5, %v1149_v7  ;;  %v1506_v20 = vmax.f32 %v1158_v13, 0.0 }
 0x148   : > { %v4723_v10 = vpop.f32.mrf.mxu0 }
 0x149   : > { %v1161_v12 = vadd.f32 %v4723_v10, %v5406_v5  ;;  %4860 = vmatprep.mubr.bf16.mxu1 %v4488_v8  ;;  %v1504_v18 = vmax.f32 %v1150_v11, 0.0 }
 0x14a   : > { %v1152_v14 = vpop.f32.mrf.mxu0  ;;  %4861 = vmatmul.mubr.bf16.gmra.mxu1 %v4489_v9 }
 0x14b   : > { %v1153_v15 = vadd.f32 %v5406_v5, %v1152_v14  ;;  %v1507_v16 = vmax.f32 %v1161_v12, 0.0 }
 0x14c   : > { %v4726_v17 = vpop.f32.mrf.mxu0 }
 0x14d   : > { %v1505_v19 = vmax.f32 %v1153_v15, 0.0  ;;  %v4491_v23 = vpack.c.bf16 %v1507_v16, %v1506_v20  ;;  %v1174_v27 = vadd.f32 %v4726_v17, %v5406_v5 }
 0x14e   : > { %v1165_v21 = vpop.f32.mrf.mxu0 }
 0x14f   : > { %v4490_v22 = vpack.c.bf16 %v1505_v19, %v1504_v18  ;;  %v1166_v25 = vadd.f32 %v5406_v5, %v1165_v21  ;;  %v1510_v33 = vmax.f32 %v1174_v27, 0.0 }
 0x150   : > { %v4727_v24 = vpop.f32.mrf.mxu0 }
 0x151   : > { %v1177_v26 = vadd.f32 %v4727_v24, %v5406_v5  ;;  %4864 = vmatprep.mubr.bf16.mxu1 %v4490_v22  ;;  %v1508_v31 = vmax.f32 %v1166_v25, 0.0 }
 0x152   : > { %v1168_v28 = vpop.f32.mrf.mxu0  ;;  %4865 = vmatmul.mubr.bf16.gmra.mxu1 %v4491_v23 }
 0x153   : > { %v1169_v29 = vadd.f32 %v5406_v5, %v1168_v28  ;;  %v1511_v30 = vmax.f32 %v1177_v26, 0.0 }
 0x154   : > { %v4730_v2 = vpop.f32.mrf.mxu0 }
 0x155   : > { %v1509_v32 = vmax.f32 %v1169_v29, 0.0  ;;  %v4493_v35 = vpack.c.bf16 %v1511_v30, %v1510_v33  ;;  %v1190_v39 = vadd.f32 %v4730_v2, %v5406_v5 }
 0x156   : > { %v1181_v62 = vpop.f32.mrf.mxu0 }
 0x157   : > { %v4492_v34 = vpack.c.bf16 %v1509_v32, %v1508_v31  ;;  %v1182_v37 = vadd.f32 %v5406_v5, %v1181_v62  ;;  %v1514_v45 = vmax.f32 %v1190_v39, 0.0 }
 0x158   : > { %v4731_v36 = vpop.f32.mrf.mxu0 }
 0x159   : > { %v1193_v38 = vadd.f32 %v4731_v36, %v5406_v5  ;;  %4868 = vmatprep.mubr.bf16.mxu1 %v4492_v34  ;;  %v1512_v44 = vmax.f32 %v1182_v37, 0.0 }
 0x15a   : > { %v1184_v40 = vpop.f32.mrf.mxu0  ;;  %4869 = vmatmul.mubr.bf16.gmra.mxu1 %v4493_v35 }
 0x15b   : > { %v1185_v41 = vadd.f32 %v5406_v5, %v1184_v40  ;;  %v1515_v42 = vmax.f32 %v1193_v38, 0.0 }
 0x15c   : > { %v4734_v43 = vpop.f32.mrf.mxu0 }
 0x15d   : > { %v1513_v63 = vmax.f32 %v1185_v41, 0.0  ;;  %v4495_v48 = vpack.c.bf16 %v1515_v42, %v1514_v45  ;;  %v1206_v51 = vadd.f32 %v4734_v43, %v5406_v5 }
 0x15e   : > { %v1197_v46 = vpop.f32.mrf.mxu0 }
 0x15f   : > { %v4494_v47 = vpack.c.bf16 %v1513_v63, %v1512_v44  ;;  %v1198_v50 = vadd.f32 %v5406_v5, %v1197_v46  ;;  %v1518_v58 = vmax.f32 %v1206_v51, 0.0 }
 0x160   : > { %v4735_v49 = vpop.f32.mrf.mxu0 }
 0x161   : > { %v1209_v61 = vadd.f32 %v4735_v49, %v5406_v5  ;;  %4872 = vmatprep.mubr.bf16.mxu1 %v4494_v47  ;;  %v1516_v56 = vmax.f32 %v1198_v50, 0.0 }
 0x162   : > { %v1200_v52 = vpop.f32.mrf.mxu0  ;;  %4873 = vmatmul.mubr.bf16.gmra.mxu1 %v4495_v48 }
 0x163   : > { %v1201_v53 = vadd.f32 %v5406_v5, %v1200_v52  ;;  %v1519_v54 = vmax.f32 %v1209_v61, 0.0 }
 0x164   : > { %v4738_v55 = vpop.f32.mrf.mxu0 }
 0x165   : > { %v1517_v57 = vmax.f32 %v1201_v53, 0.0  ;;  %v4497_v0 = vpack.c.bf16 %v1519_v54, %v1518_v58  ;;  %v1222_v6 = vadd.f32 %v4738_v55, %v5406_v5 }
 0x166   : > { %v1213_v59 = vpop.f32.mrf.mxu0 }
 0x167   : > { %v4496_v60 = vpack.c.bf16 %v1517_v57, %v1516_v56  ;;  %v1214_v3 = vadd.f32 %v5406_v5, %v1213_v59  ;;  %v1522_v13 = vmax.f32 %v1222_v6, 0.0 }
 0x168   : > { %v4739_v1 = vpop.f32.mrf.mxu0 }
 0x169   : > { %v1225_v4 = vadd.f32 %v4739_v1, %v5406_v5  ;;  %4876 = vmatprep.mubr.bf16.mxu1 %v4496_v60  ;;  %v1520_v11 = vmax.f32 %v1214_v3, 0.0 }
 0x16a   : > { %v1216_v7 = vpop.f32.mrf.mxu0  ;;  %4877 = vmatmul.mubr.bf16.gmra.mxu1 %v4497_v0 }
 0x16b   : > { %v1217_v8 = vadd.f32 %v5406_v5, %v1216_v7  ;;  %v1523_v9 = vmax.f32 %v1225_v4, 0.0 }
 0x16c   : > { %v4742_v10 = vpop.f32.mrf.mxu0 }
 0x16d   : > { %v1521_v12 = vmax.f32 %v1217_v8, 0.0  ;;  %v4499_v16 = vpack.c.bf16 %v1523_v9, %v1522_v13  ;;  %v1238_v20 = vadd.f32 %v4742_v10, %v5406_v5 }
 0x16e   : > { %v1229_v14 = vpop.f32.mrf.mxu0 }
 0x16f   : > { %v4498_v15 = vpack.c.bf16 %v1521_v12, %v1520_v11  ;;  %v1230_v18 = vadd.f32 %v5406_v5, %v1229_v14  ;;  %v1526_v27 = vmax.f32 %v1238_v20, 0.0 }
 0x170   : > { %v4743_v17 = vpop.f32.mrf.mxu0 }
 0x171   : > { %v1241_v19 = vadd.f32 %v4743_v17, %v5406_v5  ;;  %4880 = vmatprep.mubr.bf16.mxu1 %v4498_v15  ;;  %v1524_v25 = vmax.f32 %v1230_v18, 0.0 }
 0x172   : > { %v1232_v21 = vpop.f32.mrf.mxu0  ;;  %4881 = vmatmul.mubr.bf16.gmra.mxu1 %v4499_v16 }
 0x173   : > { %v1233_v22 = vadd.f32 %v5406_v5, %v1232_v21  ;;  %v1527_v23 = vmax.f32 %v1241_v19, 0.0 }
 0x174   : > { %v4746_v24 = vpop.f32.mrf.mxu0 }
 0x175   : > { %v1525_v26 = vmax.f32 %v1233_v22, 0.0  ;;  %v4501_v30 = vpack.c.bf16 %v1527_v23, %v1526_v27  ;;  %v1254_v33 = vadd.f32 %v4746_v24, %v5406_v5 }
 0x176   : > { %v1245_v28 = vpop.f32.mrf.mxu0 }
 0x177   : > { %v4500_v29 = vpack.c.bf16 %v1525_v26, %v1524_v25  ;;  %v1246_v31 = vadd.f32 %v5406_v5, %v1245_v28  ;;  %v1530_v39 = vmax.f32 %v1254_v33, 0.0 }
 0x178   : > { %v4747_v2 = vpop.f32.mrf.mxu0 }
 0x179   : > { %v1257_v32 = vadd.f32 %v4747_v2, %v5406_v5  ;;  %4884 = vmatprep.mubr.bf16.mxu1 %v4500_v29  ;;  %v1528_v37 = vmax.f32 %v1246_v31, 0.0 }
 0x17a   : > { %v1248_v62 = vpop.f32.mrf.mxu0  ;;  %4885 = vmatmul.mubr.bf16.gmra.mxu1 %v4501_v30 }
 0x17b   : > { %v1249_v34 = vadd.f32 %v5406_v5, %v1248_v62  ;;  %v1531_v35 = vmax.f32 %v1257_v32, 0.0 }
 0x17c   : > { %v4750_v36 = vpop.f32.mrf.mxu0 }
 0x17d   : > { %v1529_v38 = vmax.f32 %v1249_v34, 0.0  ;;  %v4503_v42 = vpack.c.bf16 %v1531_v35, %v1530_v39  ;;  %v1270_v45 = vadd.f32 %v4750_v36, %v5406_v5 }
 0x17e   : > { %v1261_v40 = vpop.f32.mrf.mxu0 }
 0x17f   : > { %v4502_v41 = vpack.c.bf16 %v1529_v38, %v1528_v37  ;;  %v1262_v44 = vadd.f32 %v5406_v5, %v1261_v40  ;;  %v1534_v51 = vmax.f32 %v1270_v45, 0.0 }
 0x180   : > { %v4751_v43 = vpop.f32.mrf.mxu0 }
 0x181   : > { %v1273_v63 = vadd.f32 %v4751_v43, %v5406_v5  ;;  %4888 = vmatprep.mubr.bf16.mxu1 %v4502_v41  ;;  %v1532_v50 = vmax.f32 %v1262_v44, 0.0 }
 0x182   : > { %v1264_v46 = vpop.f32.mrf.mxu0  ;;  %4889 = vmatmul.mubr.bf16.gmra.mxu1 %v4503_v42 }
 0x183   : > { %v1265_v47 = vadd.f32 %v5406_v5, %v1264_v46  ;;  %v1535_v48 = vmax.f32 %v1273_v63, 0.0 }
 0x184   : > { %v4754_v49 = vpop.f32.mrf.mxu0 }
 0x185   : > { %v1533_v61 = vmax.f32 %v1265_v47, 0.0  ;;  %v4505_v54 = vpack.c.bf16 %v1535_v48, %v1534_v51  ;;  %v1286_v58 = vadd.f32 %v4754_v49, %v5406_v5 }
 0x186   : > { %v1277_v52 = vpop.f32.mrf.mxu0 }
 0x187   : > { %v4504_v53 = vpack.c.bf16 %v1533_v61, %v1532_v50  ;;  %v1278_v56 = vadd.f32 %v5406_v5, %v1277_v52  ;;  %v1538_v6 = vmax.f32 %v1286_v58, 0.0 }
 0x188   : > { %v4755_v55 = vpop.f32.mrf.mxu0 }
 0x189   : > { %v1289_v57 = vadd.f32 %v4755_v55, %v5406_v5  ;;  %4892 = vmatprep.mubr.bf16.mxu1 %v4504_v53  ;;  %v1536_v3 = vmax.f32 %v1278_v56, 0.0 }
 0x18a   : > { %v1280_v59 = vpop.f32.mrf.mxu0  ;;  %4893 = vmatmul.mubr.bf16.gmra.mxu1 %v4505_v54 }
 0x18b   : > { %v1281_v60 = vadd.f32 %v5406_v5, %v1280_v59  ;;  %v1539_v0 = vmax.f32 %v1289_v57, 0.0 }
 0x18c   : > { %v4758_v1 = vpop.f32.mrf.mxu0 }
 0x18d   : > { %v1537_v4 = vmax.f32 %v1281_v60, 0.0  ;;  %v4507_v9 = vpack.c.bf16 %v1539_v0, %v1538_v6  ;;  %v1302_v13 = vadd.f32 %v4758_v1, %v5406_v5 }
 0x18e   : > { %v1293_v7 = vpop.f32.mrf.mxu0 }
 0x18f   : > { %v4506_v8 = vpack.c.bf16 %v1537_v4, %v1536_v3  ;;  %v1294_v11 = vadd.f32 %v5406_v5, %v1293_v7  ;;  %v1542_v20 = vmax.f32 %v1302_v13, 0.0 }
 0x190   : > { %v4759_v10 = vpop.f32.mrf.mxu0 }
 0x191   : > { %v1305_v12 = vadd.f32 %v4759_v10, %v5406_v5  ;;  %4896 = vmatprep.mubr.bf16.mxu1 %v4506_v8  ;;  %v1540_v18 = vmax.f32 %v1294_v11, 0.0 }
 0x192   : > { %v1296_v14 = vpop.f32.mrf.mxu0  ;;  %4897 = vmatmul.mubr.bf16.gmra.mxu1 %v4507_v9 }
 0x193   : > { %v1297_v15 = vadd.f32 %v5406_v5, %v1296_v14  ;;  %v1543_v16 = vmax.f32 %v1305_v12, 0.0 }
 0x194   : > { %v4762_v17 = vpop.f32.mrf.mxu0 }
 0x195   : > { %v1541_v19 = vmax.f32 %v1297_v15, 0.0  ;;  %v4509_v23 = vpack.c.bf16 %v1543_v16, %v1542_v20  ;;  %v1318_v27 = vadd.f32 %v4762_v17, %v5406_v5 }
 0x196   : > { %v1309_v21 = vpop.f32.mrf.mxu0 }
 0x197   : > { %v4508_v22 = vpack.c.bf16 %v1541_v19, %v1540_v18  ;;  %v1310_v25 = vadd.f32 %v5406_v5, %v1309_v21  ;;  %v1546_v33 = vmax.f32 %v1318_v27, 0.0 }
 0x198   : > { %v4763_v24 = vpop.f32.mrf.mxu0 }
 0x199   : > { %v1321_v26 = vadd.f32 %v4763_v24, %v5406_v5  ;;  %4900 = vmatprep.mubr.bf16.mxu1 %v4508_v22  ;;  %v1544_v31 = vmax.f32 %v1310_v25, 0.0 }
 0x19a   : > { %v1312_v28 = vpop.f32.mrf.mxu0  ;;  %4901 = vmatmul.mubr.bf16.gmra.mxu1 %v4509_v23 }
 0x19b   : > { %v1313_v29 = vadd.f32 %v5406_v5, %v1312_v28  ;;  %v1547_v30 = vmax.f32 %v1321_v26, 0.0 }
 0x19c   : > { %v4766_v2 = vpop.f32.mrf.mxu0 }
 0x19d   : > { %v1545_v32 = vmax.f32 %v1313_v29, 0.0  ;;  %v4511_v35 = vpack.c.bf16 %v1547_v30, %v1546_v33  ;;  %v1334_v39 = vadd.f32 %v4766_v2, %v5406_v5 }
 0x19e   : > { %v1325_v62 = vpop.f32.mrf.mxu0 }
 0x19f   : > { %v4510_v34 = vpack.c.bf16 %v1545_v32, %v1544_v31  ;;  %v1326_v37 = vadd.f32 %v5406_v5, %v1325_v62  ;;  %v1550_v45 = vmax.f32 %v1334_v39, 0.0 }
 0x1a0   : > { %v4767_v36 = vpop.f32.mrf.mxu0 }
 0x1a1   : > { %v1337_v38 = vadd.f32 %v4767_v36, %v5406_v5  ;;  %4904 = vmatprep.mubr.bf16.mxu1 %v4510_v34  ;;  %v1548_v44 = vmax.f32 %v1326_v37, 0.0 }
 0x1a2   : > { %v1328_v40 = vpop.f32.mrf.mxu0  ;;  %4905 = vmatmul.mubr.bf16.gmra.mxu1 %v4511_v35 }
 0x1a3   : > { %v1329_v41 = vadd.f32 %v5406_v5, %v1328_v40  ;;  %v1551_v42 = vmax.f32 %v1337_v38, 0.0 }
 0x1a4   : > { %v4770_v43 = vpop.f32.mrf.mxu0 }
 0x1a5   : > { %v1549_v63 = vmax.f32 %v1329_v41, 0.0  ;;  %v4513_v48 = vpack.c.bf16 %v1551_v42, %v1550_v45  ;;  %v1350_v51 = vadd.f32 %v4770_v43, %v5406_v5 }
 0x1a6   : > { %v1341_v46 = vpop.f32.mrf.mxu0 }
 0x1a7   : > { %v4512_v47 = vpack.c.bf16 %v1549_v63, %v1548_v44  ;;  %v1342_v50 = vadd.f32 %v5406_v5, %v1341_v46  ;;  %v1554_v58 = vmax.f32 %v1350_v51, 0.0 }
 0x1a8   : > { %v4771_v49 = vpop.f32.mrf.mxu0 }
 0x1a9   : > { %v1353_v61 = vadd.f32 %v4771_v49, %v5406_v5  ;;  %4908 = vmatprep.mubr.bf16.mxu1 %v4512_v47  ;;  %v1552_v56 = vmax.f32 %v1342_v50, 0.0 }
 0x1aa   : > { %v1344_v52 = vpop.f32.mrf.mxu0  ;;  %4909 = vmatmul.mubr.bf16.gmra.mxu1 %v4513_v48 }
 0x1ab   : > { %v1345_v53 = vadd.f32 %v5406_v5, %v1344_v52  ;;  %v1555_v54 = vmax.f32 %v1353_v61, 0.0 }
 0x1ac   : > { %v4774_v55 = vpop.f32.mrf.mxu0 }
 0x1ad   : > { %v1553_v57 = vmax.f32 %v1345_v53, 0.0  ;;  %v4515_v0 = vpack.c.bf16 %v1555_v54, %v1554_v58  ;;  %v1366_v6 = vadd.f32 %v4774_v55, %v5406_v5 }
 0x1ae   : > { %v1357_v59 = vpop.f32.mrf.mxu0 }
 0x1af   : > { %v4514_v60 = vpack.c.bf16 %v1553_v57, %v1552_v56  ;;  %v1358_v3 = vadd.f32 %v5406_v5, %v1357_v59  ;;  %v1558_v17 = vmax.f32 %v1366_v6, 0.0 }
 0x1b0   : > { %v4775_v1 = vpop.f32.mrf.mxu0 }
 0x1b1   : > { %v1369_v4 = vadd.f32 %v4775_v1, %v5406_v5  ;;  %4912 = vmatprep.mubr.bf16.mxu1 %v4514_v60  ;;  %v1556_v14 = vmax.f32 %v1358_v3, 0.0 }
 0x1b2   : > { %v1360_v7 = vpop.f32.mrf.mxu0  ;;  %v4818_v8 = vpop.f32.mrf.mxu1  ;;  %4913 = vmatmul.mubr.bf16.gmra.mxu1 %v4515_v0 }
 0x1b3   : > { %v1361_v9 = vadd.f32 %v5406_v5, %v1360_v7  ;;  %v2737_v10 = vrot.slane %v4818_v8, 4  ;;  %v1559_v11 = vmax.f32 %v1369_v4, 0.0 }
 0x1b4   : > { %v4778_v12 = vpop.f32.mrf.mxu0  ;;  %v2206_v13 = vpop.f32.mrf.mxu1 }
 0x1b5   : > { %v1557_v15 = vmax.f32 %v1361_v9, 0.0  ;;  %v2738_v16 = vmax.f32 %v4818_v8, %v2737_v10  ;;  %v2725_v18 = vrot.slane %v2206_v13, 4  ;;  %v4517_v22 = vpack.c.bf16 %v1559_v11, %v1558_v17 }
 0x1b6   : > { %v1373_v19 = vpop.f32.mrf.mxu0  ;;  %v4819_v20 = vpop.f32.mrf.mxu1  ;;  %v1382_v2 = vadd.f32 %v4778_v12, %v5406_v5 }
 0x1b7   : > { %v4516_v21 = vpack.c.bf16 %v1557_v15, %v1556_v14  ;;  %v2726_v23 = vmax.f32 %v2206_v13, %v2725_v18  ;;  %v2743_v24 = vrot.slane %v4819_v20, 4  ;;  %v2739_v27 = vrot.slane %v2738_v16, 2  ;;  %v5552_v15 = vld [vmem:[%s6712_s3] ss:$0 sm:$0xff] }
 0x1b8   : > { %v4779_v25 = vpop.f32.mrf.mxu0  ;;  %v2209_v26 = vpop.f32.mrf.mxu1  ;;  %v1374_v28 = vadd.f32 %v5406_v5, %v1373_v19  ;;  %v1562_v45 = vmax.f32 %v1382_v2, 0.0 }
 0x1b9   : > { %v1385_v29 = vadd.f32 %v4779_v25, %v5406_v5  ;;  %v2731_v30 = vrot.slane %v2209_v26, 4  ;;  %4916 = vmatprep.mubr.bf16.mxu1 %v4516_v21  ;;  %v2727_v31 = vrot.slane %v2726_v23, 2  ;;  %v2744_v32 = vmax.f32 %v4819_v20, %v2743_v24 }
 0x1ba   : > { %v1376_v33 = vpop.f32.mrf.mxu0  ;;  %v4822_v62 = vpop.f32.mrf.mxu1  ;;  %4917 = vmatmul.mubr.bf16.gmra.mxu1 %v4517_v22  ;;  %v2740_v42 = vmax.f32 %v2738_v16, %v2739_v27  ;;  %v1560_v43 = vmax.f32 %v1374_v28, 0.0 }
 0x1bb   : > { %v2732_v34 = vmax.f32 %v2209_v26, %v2731_v30  ;;  %v1377_v35 = vadd.f32 %v5406_v5, %v1376_v33  ;;  %v2728_v36 = vmax.f32 %v2726_v23, %v2727_v31  ;;  %v2745_v37 = vrot.slane %v2744_v32, 2 }
 0x1bc   : > { %v1563_v38 = vmax.f32 %v1385_v29, 0.0  ;;  %v2761_v39 = vrot.slane %v4822_v62, 4  ;;  %v4782_v40 = vpop.f32.mrf.mxu0  ;;  %v2222_v41 = vpop.f32.mrf.mxu1  ;;  %v2741_v58 = vrot.slane %v2740_v42, 1 }
 0x1bd   : > { %v2733_v44 = vrot.slane %v2732_v34, 2  ;;  %v1561_v63 = vmax.f32 %v1377_v35, 0.0  ;;  %v2729_v46 = vrot.slane %v2728_v36, 1  ;;  %v2746_v50 = vmax.f32 %v2744_v32, %v2745_v37 }
 0x1be   : > { %v2762_v47 = vmax.f32 %v4822_v62, %v2761_v39  ;;  %v1389_v48 = vpop.f32.mrf.mxu0  ;;  %v4823_v49 = vpop.f32.mrf.mxu1  ;;  %v2749_v51 = vrot.slane %v2222_v41, 4  ;;  %v4519_v52 = vpack.c.bf16 %v1563_v38, %v1562_v45  ;;  %v1398_v55 = vadd.f32 %v4782_v40, %v5406_v5 }
 0x1bf   : > { %v4518_v61 = vpack.c.bf16 %v1561_v63, %v1560_v43  ;;  %v2734_v53 = vmax.f32 %v2732_v34, %v2733_v44  ;;  %v2767_v60 = vrot.slane %v4823_v49, 4  ;;  %v2730_v0 = vmax.f32 %v2728_v36, %v2729_v46 }
 0x1c0   : > { %v2763_v54 = vrot.slane %v2762_v47, 2  ;;  %v4783_v56 = vpop.f32.mrf.mxu0  ;;  %v2225_v57 = vpop.f32.mrf.mxu1  ;;  %v2750_v59 = vmax.f32 %v2222_v41, %v2749_v51  ;;  %v1390_v3 = vadd.f32 %v5406_v5, %v1389_v48  ;;  %v2747_v8 = vrot.slane %v2746_v50, 1 }
 0x1c1   : > { %4920 = vmatprep.mubr.bf16.mxu1 %v4518_v61  ;;  %v1401_v4 = vadd.f32 %v4783_v56, %v5406_v5  ;;  %v2768_v10 = vmax.f32 %v4823_v49, %v2767_v60  ;;  %v2755_v11 = vrot.slane %v2225_v57, 4  ;;  %v2735_v12 = vrot.slane %v2734_v53, 1  ;;  %v5558_v5 = vld [vmem:[%s6713_s4] ss:$0 sm:$0xff] }
 0x1c2   : > { %v2764_v1 = vmax.f32 %v2762_v47, %v2763_v54  ;;  %v1392_v6 = vpop.f32.mrf.mxu0  ;;  %v4826_v7 = vpop.f32.mrf.mxu1  ;;  %4921 = vmatmul.mubr.bf16.gmra.mxu1 %v4519_v52  ;;  %v2751_v9 = vrot.slane %v2750_v59, 2  ;;  %v1566_v14 = vmax.f32 %v1398_v55, 0.0  ;;  %v5561_v23 = vadd.f32 %v5558_v5, %v2730_v0 }
 0x1c3   : > { %v1393_v16 = vadd.f32 %v5552_v15, %v1392_v6  ;;  %v2769_v20 = vrot.slane %v2768_v10, 2  ;;  %v1567_v21 = vmax.f32 %v1401_v4, 0.0  ;;  %v2756_v22 = vmax.f32 %v2225_v57, %v2755_v11 }
 0x1c4   : > { %v2765_v13 = vrot.slane %v2764_v1, 1  ;;  %v4786_v17 = vpop.f32.mrf.mxu0  ;;  %v2238_v18 = vpop.f32.mrf.mxu1  ;;  %v2752_v19 = vmax.f32 %v2750_v59, %v2751_v9  ;;  %v1564_v25 = vmax.f32 %v1390_v3, 0.0  ;;  %v2785_v31 = vrot.slane %v4826_v7, 4 }
 0x1c5   : > { %v1565_v26 = vmax.f32 %v1393_v16, 0.0  ;;  %v2770_v30 = vmax.f32 %v2768_v10, %v2769_v20  ;;  %v2757_v2 = vrot.slane %v2756_v22, 2  ;;  %v5563_v32 = vmax.f32 %v2740_v42, %v2741_v58 }
 0x1c6   : > { %v2766_v24 = vmax.f32 %v2764_v1, %v2765_v13  ;;  %v1405_v27 = vpop.f32.mrf.mxu0  ;;  %v4827_v28 = vpop.f32.mrf.mxu1  ;;  %v2753_v29 = vrot.slane %v2752_v19, 1  ;;  %v2736_v33 = vmax.f32 %v2734_v53, %v2735_v12  ;;  %v2773_v34 = vrot.slane %v2238_v18, 4 }
 0x1c7   : > { %v4520_v62 = vpack.c.bf16 %v1565_v26, %v1564_v25  ;;  %v2771_v37 = vrot.slane %v2770_v30, 1  ;;  %v4521_v38 = vpack.c.bf16 %v1567_v21, %v1566_v14  ;;  %v2758_v39 = vmax.f32 %v2756_v22, %v2757_v2 }
 0x1c8   : > { %v4787_v35 = vpop.f32.mrf.mxu0  ;;  %v2241_v36 = vpop.f32.mrf.mxu1  ;;  %v2786_v40 = vmax.f32 %v4826_v7, %v2785_v31  ;;  %v3608_v41 = vmax.f32 %v5561_v23, 0.0  ;;  %v5566_v43 = vmax.f32 %v2746_v50, %v2747_v8  ;;  %v3486_v44 = vadd.f32 %v5558_v5, %v2766_v24 }
 0x1c9   : > { %v2774_v63 = vmax.f32 %v2238_v18, %v2773_v34  ;;  %4924 = vmatprep.mubr.bf16.mxu1 %v4520_v62  ;;  %v2754_v46 = vmax.f32 %v2752_v19, %v2753_v29  ;;  %v2772_v47 = vmax.f32 %v2770_v30, %v2771_v37  ;;  %v2759_v48 = vrot.slane %v2758_v39, 1 }
 0x1ca   : > { %v1408_v45 = vpop.f32.mrf.mxu0  ;;  %v4830_v42 = vpop.f32.mrf.mxu1  ;;  %v2787_v49 = vrot.slane %v2786_v40, 2  ;;  %4925 = vmatmul.mubr.bf16.gmra.mxu1 %v4521_v38  ;;  %v5570_v61 = vadd.f32 %v5558_v5, %v2736_v33  ;;  %v1414_v51 = vadd.f32 %v5552_v15, %v4786_v17  ;;  %v2791_v53 = vrot.slane %v4827_v28, 4 }
 0x1cb   : > { %v2775_v52 = vrot.slane %v2774_v63, 2  ;;  %v3487_v55 = vadd.f32 %v5558_v5, %v2772_v47  ;;  %v2760_v56 = vmax.f32 %v2758_v39, %v2759_v48  ;;  %v1406_v58 = vadd.f32 %v5552_v15, %v1405_v27 }
 0x1cc   : > { %v4790_v50 = vpop.f32.mrf.mxu0  ;;  %v2254_v54 = vpop.f32.mrf.mxu1  ;;  %v2788_v57 = vmax.f32 %v2786_v40, %v2787_v49  ;;  %v2792_v60 = vmax.f32 %v4827_v28, %v2791_v53  ;;  %v1417_v0 = vadd.f32 %v5552_v15, %v4787_v35  ;;  %v2779_v1 = vrot.slane %v2241_v36, 4 }
 0x1cd   : > { %v2776_v59 = vmax.f32 %v2774_v63, %v2775_v52  ;;  %v3614_v6 = vmax.f32 %v3486_v44, 0.0  ;;  %v5577_v7 = vadd.f32 %v5558_v5, %v2754_v46  ;;  %v3485_v8 = vadd.f32 %v5558_v5, %v2760_v56 }
 0x1ce   : > { %v1421_v3 = vpop.f32.mrf.mxu0  ;;  %v4831_v4 = vpop.f32.mrf.mxu1  ;;  %v1409_v9 = vadd.f32 %v5552_v15, %v1408_v45  ;;  %v2793_v11 = vrot.slane %v2792_v60, 2  ;;  %v1571_v12 = vmax.f32 %v1417_v0, 0.0  ;;  %v2780_v13 = vmax.f32 %v2241_v36, %v2779_v1 }
 0x1cf   : > { %v2777_v10 = vrot.slane %v2776_v59, 1  ;;  %v3615_v17 = vmax.f32 %v3487_v55, 0.0  ;;  %v1570_v18 = vmax.f32 %v1414_v51, 0.0  ;;  %v1568_v19 = vmax.f32 %v1406_v58, 0.0 }
 0x1d0   : > { %v4791_v14 = vpop.f32.mrf.mxu0  ;;  %v2257_v16 = vpop.f32.mrf.mxu1  ;;  %v1569_v20 = vmax.f32 %v1409_v9, 0.0  ;;  %v3613_v21 = vmax.f32 %v3485_v8, 0.0  ;;  %v2789_v22 = vrot.slane %v2788_v57, 1  ;;  %v2781_v24 = vrot.slane %v2780_v13, 2 }
 0x1d1   : > { %v2778_v23 = vmax.f32 %v2776_v59, %v2777_v10  ;;  %v5581_v27 = vrot.slane %v3608_v41, 4  ;;  %v5583_v28 = vmax.f32 %v2792_v60, %v2793_v11  ;;  %v2809_v30 = vrot.slane %v4830_v42, 4 }
 0x1d2   : > { %v1424_v25 = vpop.f32.mrf.mxu0  ;;  %v4834_v26 = vpop.f32.mrf.mxu1  ;;  %v4522_v29 = vpack.c.bf16 %v1569_v20, %v1568_v19  ;;  %v5585_v2 = vrot.slane %v3614_v6, 6  ;;  %v4523_v33 = vpack.c.bf16 %v1571_v12, %v1570_v18  ;;  %v2782_v62 = vmax.f32 %v2780_v13, %v2781_v24 }
 0x1d3   : > { %v5590_v36 = vrot.slane %v3615_v17, 5  ;;  %v2810_v37 = vmax.f32 %v4830_v42, %v2809_v30  ;;  %v2797_v38 = vrot.slane %v2254_v54, 4  ;;  %v2815_v39 = vrot.slane %v4831_v4, 4 }
 0x1d4   : > { %v5588_v34 = vpop.f32.mrf.mxu0  ;;  %v2270_v35 = vpop.f32.mrf.mxu1  ;;  %4928 = vmatprep.mubr.bf16.mxu1 %v4522_v29  ;;  %v5592_v40 = vrot.slane %v3613_v21, 7  ;;  %v2790_v41 = vmax.f32 %v2788_v57, %v2789_v22  ;;  %v3488_v44 = vadd.f32 %v5558_v5, %v2778_v23  ;;  %v1422_v63 = vadd.f32 %v5552_v15, %v1421_v3 }
 0x1d5   : > { %4929 = vmatmul.mubr.bf16.gmra.mxu1 %v4523_v33  ;;  %v2795_v47 = vrot.slane %v5583_v28, 1  ;;  %v2811_v48 = vrot.slane %v2810_v37, 2  ;;  %v2798_v49 = vmax.f32 %v2254_v54, %v2797_v38  ;;  %v2816_v51 = vmax.f32 %v4831_v4, %v2815_v39 }
 0x1d6   : > { %v1437_v45 = vpop.f32.mrf.mxu0  ;;  %v4835_v46 = vpop.f32.mrf.mxu1  ;;  %v2783_v52 = vrot.slane %v2782_v62, 1  ;;  %v1430_v42 = vadd.f32 %v5552_v15, %v4790_v50  ;;  %v1433_v53 = vadd.f32 %v5552_v15, %v4791_v14  ;;  %v2803_v55 = vrot.slane %v2257_v16, 4 }
 0x1d7   : > { %v2812_v57 = vmax.f32 %v2810_v37, %v2811_v48  ;;  %v2799_v58 = vrot.slane %v2798_v49, 2  ;;  %v2817_v59 = vrot.slane %v2816_v51, 2  ;;  %v1425_v60 = vadd.f32 %v5552_v15, %v1424_v25 }
 0x1d8   : > { %v5599_v56 = vpop.f32.mrf.mxu1  ;;  %v4795_v0 = vpop.f32.mrf.mxu0  ;;  %v1572_v1 = vmax.f32 %v1422_v63, 0.0  ;;  %v1575_v3 = vmax.f32 %v1433_v53, 0.0  ;;  %v2804_v6 = vmax.f32 %v2257_v16, %v2803_v55  ;;  %v2833_v8 = vrot.slane %v4834_v26, 4 }
 0x1d9   : > { %v2813_v4 = vrot.slane %v2812_v57, 1  ;;  %v2800_v9 = vmax.f32 %v2798_v49, %v2799_v58  ;;  %v2818_v50 = vmax.f32 %v2816_v51, %v2817_v59  ;;  %v1573_v10 = vmax.f32 %v1425_v60, 0.0 }
 0x1da   : > { %v5602_v54 = vpop.f32.mrf.mxu1  ;;  %v3616_v11 = vmax.f32 %v3488_v44, 0.0  ;;  %v1574_v12 = vmax.f32 %v1430_v42, 0.0  ;;  %v2805_v13 = vrot.slane %v2804_v6, 2  ;;  %v2834_v14 = vmax.f32 %v4834_v26, %v2833_v8  ;;  %v1440_v22 = vpop.f32.mrf.mxu0 }
 0x1db   : > { %v2814_v18 = vmax.f32 %v2812_v57, %v2813_v4  ;;  %v2801_v19 = vrot.slane %v2800_v9, 1  ;;  %v2819_v20 = vrot.slane %v2818_v50, 1  ;;  %v4524_v21 = vpack.c.bf16 %v1573_v10, %v1572_v1 }
 0x1dc   : > { %v5604_v17 = vpop.f32.mrf.mxu1  ;;  %v4525_v23 = vpack.c.bf16 %v1575_v3, %v1574_v12  ;;  %v2806_v16 = vmax.f32 %v2804_v6, %v2805_v13  ;;  %v2835_v24 = vrot.slane %v2834_v14, 2  ;;  %v2821_v25 = vrot.slane %v2270_v35, 4 }
 0x1dd   : > { %v5609_v30 = vadd.f32 %v5558_v5, %v2790_v41  ;;  %v2784_v33 = vmax.f32 %v2782_v62, %v2783_v52  ;;  %v2802_v37 = vmax.f32 %v2800_v9, %v2801_v19  ;;  %v2820_v38 = vmax.f32 %v2818_v50, %v2819_v20  ;;  %4932 = vmatprep.mubr.bf16.mxu1 %v4524_v21  ;;  %v4814_v41 = vpop.f32.mrf.mxu0 }
 0x1de   : > { %v5606_v29 = vpop.f32.mrf.mxu1  ;;  %v2807_v26 = vrot.slane %v2806_v16, 1  ;;  %v2836_v39 = vmax.f32 %v2834_v14, %v2835_v24  ;;  %v2822_v44 = vmax.f32 %v2270_v35, %v2821_v25  ;;  %v2839_v63 = vrot.slane %v4835_v46, 4  ;;  %4933 = vmatmul.mubr.bf16.gmra.mxu1 %v4525_v23 }
 0x1df   : > { %v5613_v49 = vrot.slane %v3616_v11, 4  ;;  %v5616_v51 = vmax.f32 %v5583_v28, %v2795_v47  ;;  %v5619_v42 = vadd.f32 %v5558_v5, %v2814_v18  ;;  %v1446_v62 = vadd.f32 %v5552_v15, %v5588_v34  ;;  %v2190_v9 = vpop.f32.mrf.mxu0 }
 0x1e0   : > { %v5611_v48 = vpop.f32.mrf.mxu1  ;;  %v2808_v52 = vmax.f32 %v2806_v16, %v2807_v26  ;;  %v2823_v53 = vrot.slane %v2822_v44, 2  ;;  %v1438_v35 = vadd.f32 %v5552_v15, %v1437_v45  ;;  %v2840_v55 = vmax.f32 %v4835_v46, %v2839_v63 }
 0x1e1   : > { %v5627_v58 = vadd.f32 %v5558_v5, %v2784_v33  ;;  %v5630_v28 = vadd.f32 %v5558_v5, %v2802_v37  ;;  %v5633_v47 = vadd.f32 %v5558_v5, %v2820_v38  ;;  %v1449_v59 = vadd.f32 %v5552_v15, %v4795_v0  ;;  %v4815_v37 = vpop.f32.mrf.mxu0 }
 0x1e2   : > { %v5624_v57 = vpop.f32.mrf.mxu1  ;;  %v3493_v34 = vadd.f32 %v5558_v5, %v2808_v52  ;;  %v2837_v60 = vrot.slane %v2836_v39, 1  ;;  %v2824_v1 = vmax.f32 %v2822_v44, %v2823_v53  ;;  %v2841_v3 = vrot.slane %v2840_v55, 2 }
 0x1e3   : > { %v3622_v46 = vmax.f32 %v5619_v42, 0.0  ;;  %v1578_v6 = vmax.f32 %v1446_v62, 0.0  ;;  %v2827_v8 = vrot.slane %v5599_v56, 4  ;;  %v1441_v4 = vadd.f32 %v5552_v15, %v1440_v22 }
 0x1e4   : > { %v5637_v45 = vpop.f32.mrf.mxu1  ;;  %v3621_v50 = vmax.f32 %v3493_v34, 0.0  ;;  %v2825_v10 = vrot.slane %v2824_v1, 1  ;;  %v1576_v11 = vmax.f32 %v1438_v35, 0.0  ;;  %v1579_v12 = vmax.f32 %v1449_v59, 0.0 }
 0x1e5   : > { %v3620_v13 = vmax.f32 %v5630_v28, 0.0  ;;  %v2828_v14 = vmax.f32 %v5599_v56, %v2827_v8  ;;  %v1577_v18 = vmax.f32 %v1441_v4, 0.0  ;;  %v2857_v19 = vrot.slane %v5602_v54, 4 }
 0x1e6   : > { %v5642_v0 = vpop.f32.mrf.mxu1  ;;  %v3623_v20 = vmax.f32 %v5633_v47, 0.0  ;;  %v5648_v21 = vmax.f32 %v2836_v39, %v2837_v60  ;;  %v5650_v23 = vmax.f32 %v2840_v55, %v2841_v3  ;;  %v2713_v15 = vrot.slane %v4814_v41, 4 }
 0x1e7   : > { %v2829_v16 = vrot.slane %v2828_v14, 2  ;;  %v4526_v24 = vpack.c.bf16 %v1577_v18, %v1576_v11  ;;  %v2858_v25 = vmax.f32 %v5602_v54, %v2857_v19  ;;  %v2845_v33 = vrot.slane %v5604_v17, 4 }
 0x1e8   : > { %v5652_v22 = vpop.f32.mrf.mxu1  ;;  %v3895_v56 = vrot.slane %v3621_v50, 7  ;;  %v2826_v38 = vmax.f32 %v2824_v1, %v2825_v10  ;;  %v4527_v26 = vpack.c.bf16 %v1579_v12, %v1578_v6  ;;  %v2714_v44 = vmax.f32 %v4814_v41, %v2713_v15 }
 0x1e9   : > { %v2830_v39 = vmax.f32 %v2828_v14, %v2829_v16  ;;  %v2859_v62 = vrot.slane %v2858_v25, 2  ;;  %v2846_v52 = vmax.f32 %v5604_v17, %v2845_v33  ;;  %v2701_v53 = vrot.slane %v2190_v9, 4  ;;  %4936 = vmatprep.mubr.bf16.mxu1 %v4526_v24 }
 0x1ea   : > { %v5656_v63 = vpop.f32.mrf.mxu1  ;;  %v2843_v35 = vrot.slane %v5650_v23, 1  ;;  %v2715_v55 = vrot.slane %v2714_v44, 2  ;;  %v2863_v54 = vrot.slane %v5606_v29, 4  ;;  %v2719_v59 = vrot.slane %v4815_v37, 4  ;;  %4937 = vmatmul.mubr.bf16.gmra.mxu1 %v4527_v26 }
 0x1eb   : > { %v2831_v60 = vrot.slane %v2830_v39, 1  ;;  %v2860_v41 = vmax.f32 %v2858_v25, %v2859_v62  ;;  %v2847_v1 = vrot.slane %v2846_v52, 2  ;;  %v2702_v3 = vmax.f32 %v2190_v9, %v2701_v53 }
 0x1ec   : > { %v5661_v34 = vpop.f32.mrf.mxu1  ;;  %v3496_v6 = vadd.f32 %v5558_v5, %v2826_v38  ;;  %v2716_v8 = vmax.f32 %v2714_v44, %v2715_v55  ;;  %v2864_v17 = vmax.f32 %v5606_v29, %v2863_v54  ;;  %v2720_v4 = vmax.f32 %v4815_v37, %v2719_v59 }
 0x1ed   : > { %v2832_v10 = vmax.f32 %v2830_v39, %v2831_v60  ;;  %v2861_v11 = vrot.slane %v2860_v41, 1  ;;  %v2848_v12 = vmax.f32 %v2846_v52, %v2847_v1  ;;  %v2703_v14 = vrot.slane %v2702_v3, 2  ;;  %v2193_v1 = vpop.f32.mrf.mxu0 }
 0x1ee   : > { %v5665_v50 = vpop.f32.mrf.mxu1  ;;  %v2717_v18 = vrot.slane %v2716_v8, 1  ;;  %v2865_v19 = vrot.slane %v2864_v17, 2  ;;  %v2721_v15 = vrot.slane %v2720_v4, 2  ;;  %v2851_v16 = vrot.slane %v5611_v48, 4 }
 0x1ef   : > { %v3497_v9 = vadd.f32 %v5558_v5, %v2832_v10  ;;  %v2862_v25 = vmax.f32 %v2860_v41, %v2861_v11  ;;  %v2849_v33 = vrot.slane %v2848_v12, 1  ;;  %v2704_v38 = vmax.f32 %v2702_v3, %v2703_v14 }
 0x1f0   : > { %v5668_v24 = vpop.f32.mrf.mxu1  ;;  %v2718_v29 = vmax.f32 %v2716_v8, %v2717_v18  ;;  %v2866_v37 = vmax.f32 %v2864_v17, %v2865_v19  ;;  %v2722_v26 = vmax.f32 %v2720_v4, %v2721_v15  ;;  %v2852_v44 = vmax.f32 %v5611_v48, %v2851_v16 }
 0x1f1   : > { %v3624_v62 = vmax.f32 %v3496_v6, 0.0  ;;  %v3625_v52 = vmax.f32 %v3497_v9, 0.0  ;;  %v3502_v53 = vadd.f32 %v5558_v5, %v2862_v25  ;;  %v2850_v55 = vmax.f32 %v2848_v12, %v2849_v33 }
 0x1f2   : > { %v5672_v39 = vpop.f32.mrf.mxu1  ;;  %v5676_v54 = vadd.f32 %v5558_v5, %v2718_v29  ;;  %v2705_v59 = vrot.slane %v2704_v38, 1  ;;  %v2867_v60 = vrot.slane %v2866_v37, 1  ;;  %v2853_v41 = vrot.slane %v2852_v44, 2 }
 0x1f3   : > { %v5682_v8 = vrot.slane %v3622_v46, 6  ;;  %v5686_v48 = vrot.slane %v3623_v20, 5  ;;  %v5690_v6 = vadd.f32 %v5558_v5, %v5648_v21  ;;  %v2723_v17 = vrot.slane %v2722_v26, 1 }
 0x1f4   : > { %v5678_v3 = vpop.f32.mrf.mxu1  ;;  %v5695_v4 = vsel %vm3861_vm2, %v3895_v56, %v3620_v13  ;;  %v3630_v10 = vmax.f32 %v3502_v53, 0.0  ;;  %v5698_v11 = vadd.f32 %v5558_v5, %v2850_v55  ;;  %v2854_v42 = vmax.f32 %v2852_v44, %v2853_v41 }
 0x1f5   : > { %v5702_v47 = vrot.slane %v3624_v62, 4  ;;  %v5705_v20 = vmax.f32 %v5650_v23, %v2843_v35  ;;  %v5707_v21 = vrot.slane %v3625_v52, 3  ;;  %v2707_v12 = vrot.slane %v2193_v1, 4 }
 0x1f6   : > { %v5700_v46 = vpop.f32.mrf.mxu1  ;;  %v3606_v28 = vmax.f32 %v5676_v54, 0.0  ;;  %v2706_v14 = vmax.f32 %v2704_v38, %v2705_v59  ;;  %v2868_v13 = vmax.f32 %v2866_v37, %v2867_v60  ;;  %v2855_v56 = vrot.slane %v2854_v42, 1 }
 0x1f7   : > { %v2724_v19 = vmax.f32 %v2722_v26, %v2723_v17  ;;  %v2708_v15 = vmax.f32 %v2193_v1, %v2707_v12  ;;  %v2881_v16 = vrot.slane %v5624_v57, 4  ;;  %v2869_v9 = vrot.slane %v5637_v45, 4 }
 0x1f8   : > { %v5710_v18 = vpop.f32.mrf.mxu1  ;;  %v5714_v25 = vrot.slane %v3630_v10, 6  ;;  %v2856_v35 = vmax.f32 %v2854_v42, %v2855_v56  ;;  %v2887_v33 = vrot.slane %v5642_v0, 4  ;;  %v2875_v26 = vrot.slane %v5652_v22, 4 }
 0x1f9   : > { %v2709_v38 = vrot.slane %v2708_v15, 2  ;;  %v2882_v37 = vmax.f32 %v5624_v57, %v2881_v16  ;;  %v2870_v44 = vmax.f32 %v5637_v45, %v2869_v9  ;;  %v5724_v62 = vadd.f32 %v5558_v5, %v2706_v14 }
 0x1fa   : > { %6719 = vst [vmem:[#allocation5_spill] sm:$0xff] %v5714_v25  ;;  %v5718_v29 = vpop.f32.mrf.mxu1  ;;  %v3503_v52 = vadd.f32 %v5558_v5, %v2868_v13  ;;  %v3501_v53 = vadd.f32 %v5558_v5, %v2856_v35  ;;  %v2888_v55 = vmax.f32 %v5642_v0, %v2887_v33  ;;  %v2876_v57 = vmax.f32 %v5652_v22, %v2875_v26 }
 0x1fb   : > { %v2710_v59 = vmax.f32 %v2708_v15, %v2709_v38  ;;  %v2883_v60 = vrot.slane %v2882_v37, 2  ;;  %v2871_v41 = vrot.slane %v2870_v44, 2  ;;  %v3479_v45 = vadd.f32 %v5558_v5, %v2724_v19 }
 0x1fc   : > { %v5729_v54 = vpop.f32.mrf.mxu1  ;;  %v2889_v1 = vrot.slane %v2888_v55, 2  ;;  %v2905_v17 = vrot.slane %v5656_v63, 4  ;;  %v2893_v10 = vrot.slane %v5661_v34, 4  ;;  %v2877_v0 = vrot.slane %v2876_v57, 2 }
 0x1fd   : > { %v2711_v12 = vrot.slane %v2710_v59, 1  ;;  %v2884_v14 = vmax.f32 %v2882_v37, %v2883_v60  ;;  %v2872_v13 = vmax.f32 %v2870_v44, %v2871_v41  ;;  %v3629_v56 = vmax.f32 %v3501_v53, 0.0 }
 0x1fe   : > { %v5735_v42 = vpop.f32.mrf.mxu1  ;;  %v2890_v16 = vmax.f32 %v2888_v55, %v2889_v1  ;;  %v2906_v15 = vmax.f32 %v5656_v63, %v2905_v17  ;;  %v2894_v9 = vmax.f32 %v5661_v34, %v2893_v10  ;;  %v2878_v38 = vmax.f32 %v2876_v57, %v2877_v0 }
 0x1ff   : > { %v2712_v19 = vmax.f32 %v2710_v59, %v2711_v12  ;;  %v2885_v35 = vrot.slane %v2884_v14, 1  ;;  %v2873_v33 = vrot.slane %v2872_v13, 1  ;;  %v5741_v26 = vrot.slane %v3606_v28, 6 }
 0x200   : > { %v5739_v22 = vpop.f32.mrf.mxu1  ;;  %v3631_v31 = vmax.f32 %v3503_v52, 0.0  ;;  %v2907_v23 = vrot.slane %v2906_v15, 2  ;;  %v2895_v25 = vrot.slane %v2894_v9, 2  ;;  %v3607_v44 = vmax.f32 %v3479_v45, 0.0 }
 0x201   : > { %v3477_v53 = vadd.f32 %v5558_v5, %v2712_v19  ;;  %v2874_v55 = vmax.f32 %v2872_v13, %v2873_v33  ;;  %v2879_v63 = vrot.slane %v2878_v38, 1  ;;  %v3604_v34 = vmax.f32 %v5724_v62, 0.0 }
 0x202   : > { %v5743_v37 = vpop.f32.mrf.mxu1  ;;  %v2908_v60 = vmax.f32 %v2906_v15, %v2907_v23  ;;  %v2896_v41 = vmax.f32 %v2894_v9, %v2895_v25  ;;  %v2911_v59 = vrot.slane %v5665_v50, 4  ;;  %v3909_v28 = vrot.slane %v3629_v56, 7 }
 0x203   : > { %v3605_v57 = vmax.f32 %v3477_v53, 0.0  ;;  %v2886_v52 = vmax.f32 %v2884_v14, %v2885_v35  ;;  %v2891_v17 = vrot.slane %v2890_v16, 1  ;;  %v3504_v10 = vadd.f32 %v5558_v5, %v2874_v55 }
 0x204   : > { %v5748_v1 = vpop.f32.mrf.mxu1  ;;  %v2880_v12 = vmax.f32 %v2878_v38, %v2879_v63  ;;  %v2912_v45 = vmax.f32 %v5665_v50, %v2911_v59  ;;  %v2899_v13 = vrot.slane %v5668_v24, 4  ;;  %v5755_v62 = vrot.slane %v3631_v31, 5 }
 0x205   : > { %v5757_v25 = vrot.slane %v3607_v44, 5  ;;  %v2909_v23 = vrot.slane %v2908_v60, 1  ;;  %v2929_v15 = vrot.slane %v5672_v39, 4  ;;  %v3860_v56 = vrot.slane %v3605_v57, 7 }
 0x206   : > { %v5753_v0 = vpop.f32.mrf.mxu1  ;;  %6720 = vst [vmem:[#allocation6_spill] sm:$0xff] %v5755_v62  ;;  %v2897_v9 = vrot.slane %v2896_v41, 1  ;;  %v2913_v14 = vrot.slane %v2912_v45, 2  ;;  %v2900_v19 = vmax.f32 %v5668_v24, %v2899_v13  ;;  %v6721_v50 = vmax.f32 %v5698_v11, 0.0 }
 0x207   : > { %v5769_v31 = vadd.f32 %v5558_v5, %v2886_v52  ;;  %v5771_v38 = vmax.f32 %v2890_v16, %v2891_v17  ;;  %v2930_v44 = vmax.f32 %v5672_v39, %v2929_v15  ;;  %v3632_v53 = vmax.f32 %v3504_v10, 0.0 }
 0x208   : > { %v5761_v35 = vpop.f32.mrf.mxu1  ;;  %v5766_v33 = vsel %vm3861_vm2, %v3909_v28, %v6721_v50  ;;  %v3505_v55 = vadd.f32 %v5558_v5, %v2880_v12  ;;  %v2914_v63 = vmax.f32 %v2912_v45, %v2913_v14  ;;  %v2901_v59 = vrot.slane %v2900_v19, 2 }
 0x209   : > { %v2910_v57 = vmax.f32 %v2908_v60, %v2909_v23  ;;  %v2931_v13 = vrot.slane %v2930_v44, 2  ;;  %v2917_v11 = vrot.slane %v5678_v3, 4  ;;  %v2935_v28 = vrot.slane %v5700_v46, 4 }
 0x20a   : > { %v5775_v24 = vpop.f32.mrf.mxu1  ;;  %v5780_v52 = vsel %vm3861_vm2, %v3860_v56, %v3604_v34  ;;  %v2898_v16 = vmax.f32 %v2896_v41, %v2897_v9  ;;  %v2915_v17 = vrot.slane %v2914_v63, 1  ;;  %v2902_v50 = vmax.f32 %v2900_v19, %v2901_v59 }
 0x20b   : > { %6722 = vst [vmem:[#allocation7_spill] sm:$0xff] %v5775_v24  ;;  %v2932_v10 = vmax.f32 %v2930_v44, %v2931_v13  ;;  %v2918_v12 = vmax.f32 %v5678_v3, %v2917_v11  ;;  %v2936_v45 = vmax.f32 %v5700_v46, %v2935_v28  ;;  %v2923_v60 = vrot.slane %v5710_v18, 4 }
 0x20c   : > { %v5782_v39 = vpop.f32.mrf.mxu1  ;;  %v3633_v23 = vmax.f32 %v3505_v55, 0.0  ;;  %v2916_v15 = vmax.f32 %v2914_v63, %v2915_v17  ;;  %v2903_v14 = vrot.slane %v2902_v50, 1  ;;  %v2953_v62 = vrot.slane %v5718_v29, 4 }
 0x20d   : > { %v3510_v34 = vadd.f32 %v5558_v5, %v2910_v57  ;;  %v2919_v41 = vrot.slane %v2918_v12, 2  ;;  %v2937_v56 = vrot.slane %v2936_v45, 2  ;;  %v2924_v9 = vmax.f32 %v5710_v18, %v2923_v60 }
 0x20e   : > { %v5788_v24 = vpop.f32.mrf.mxu1  ;;  %v2904_v19 = vmax.f32 %v2902_v50, %v2903_v14  ;;  %v2933_v44 = vrot.slane %v2932_v10, 1  ;;  %v2954_v3 = vmax.f32 %v5718_v29, %v2953_v62  ;;  %v2941_v46 = vrot.slane %v5729_v54, 4 }
 0x20f   : > { %v5796_v63 = vrot.slane %v3632_v53, 4  ;;  %v3511_v59 = vadd.f32 %v5558_v5, %v2916_v15  ;;  %v2920_v13 = vmax.f32 %v2918_v12, %v2919_v41  ;;  %v2925_v11 = vrot.slane %v2924_v9, 2 }
 0x210   : > { %v5794_v55 = vpop.f32.mrf.mxu1  ;;  %v5800_v57 = vadd.f32 %v5558_v5, %v2898_v16  ;;  %v2938_v18 = vmax.f32 %v2936_v45, %v2937_v56  ;;  %v2955_v28 = vrot.slane %v2954_v3, 2  ;;  %v2942_v17 = vmax.f32 %v5729_v54, %v2941_v46 }
 0x211   : > { %v5805_v62 = vrot.slane %v3633_v23, 3  ;;  %v3509_v53 = vadd.f32 %v5558_v5, %v2904_v19  ;;  %v2921_v50 = vrot.slane %v2920_v13, 1  ;;  %v2926_v60 = vmax.f32 %v2924_v9, %v2925_v11 }
 0x212   : > { %v5803_v29 = vpop.f32.mrf.mxu1  ;;  %v3638_v12 = vmax.f32 %v3510_v34, 0.0  ;;  %v2934_v15 = vmax.f32 %v2932_v10, %v2933_v44  ;;  %v2956_v14 = vmax.f32 %v2954_v3, %v2955_v28  ;;  %v2943_v41 = vrot.slane %v2942_v17, 2 }
 0x213   : > { %6723 = vst [vmem:[#allocation8_spill] sm:$0xff] %v5803_v29  ;;  %v3639_v45 = vmax.f32 %v3511_v59, 0.0  ;;  %v2922_v56 = vmax.f32 %v2920_v13, %v2921_v50  ;;  %v2927_v54 = vrot.slane %v2926_v60, 1  ;;  %v3482_v46 = vadd.f32 %v5558_v5, %v5563_v32 }
 0x214   : > { %v5808_v16 = vpop.f32.mrf.mxu1  ;;  %v2939_v23 = vrot.slane %v2938_v18, 1  ;;  %v2957_v29 = vrot.slane %v2956_v14, 1  ;;  %v2944_v19 = vmax.f32 %v2942_v17, %v2943_v41  ;;  %v3483_v9 = vadd.f32 %v5558_v5, %v5566_v43 }
 0x215   : > { %v3637_v10 = vmax.f32 %v3509_v53, 0.0  ;;  %v2928_v44 = vmax.f32 %v2926_v60, %v2927_v54  ;;  %v3609_v3 = vmax.f32 %v5570_v61, 0.0  ;;  %v3610_v11 = vmax.f32 %v3482_v46, 0.0 }
 0x216   : > { %v5814_v34 = vpop.f32.mrf.mxu1  ;;  %v5817_v59 = vrot.slane %v3638_v12, 6  ;;  %v3636_v13 = vmax.f32 %v5800_v57, 0.0  ;;  %v5821_v32 = vadd.f32 %v5558_v5, %v2922_v56  ;;  %v3611_v28 = vmax.f32 %v3483_v9, 0.0 }
 0x217   : > { %v5825_v17 = vrot.slane %v3639_v45, 5  ;;  %v5828_v43 = vadd.f32 %v5558_v5, %v2934_v15  ;;  %v2958_v53 = vmax.f32 %v2956_v14, %v2957_v29  ;;  %v3865_v61 = vsel %vm3864_vm3, %v5741_v26, %v5780_v52 }
 0x218   : > { %v5823_v50 = vpop.f32.mrf.mxu1  ;;  %v5834_v60 = vadd.f32 %v5558_v5, %v2928_v44  ;;  %v2945_v12 = vrot.slane %v2944_v19, 1  ;;  %v3868_v41 = vsel %vm3867_vm4, %v5757_v25, %v3865_v61  ;;  %v3872_v56 = vrot.slane %v3609_v3, 3 }
 0x219   : > { %v5840_v45 = vrot.slane %v3637_v10, 7  ;;  %v5842_v46 = vmax.f32 %v2938_v18, %v2939_v23  ;;  %v3871_v29 = vsel %vm3870_vm5, %v5581_v27, %v3868_v41  ;;  %v3875_v15 = vrot.slane %v3610_v11, 2 }
 0x21a   : > { %v5838_v54 = vpop.f32.mrf.mxu1  ;;  %v3640_v26 = vmax.f32 %v5821_v32, 0.0  ;;  %v3874_v52 = vsel %vm3873_vm6, %v3872_v56, %v3871_v29  ;;  %v3878_v14 = vrot.slane %v3611_v28, 1  ;;  %v2959_v9 = vrot.slane %v5735_v42, 4 }
 0x21b   : > { %v5852_v25 = vadd.f32 %v5558_v5, %v2958_v53  ;;  %v3877_v10 = vsel %vm3876_vm7, %v3875_v15, %v3874_v52  ;;  %v2947_v18 = vrot.slane %v5739_v22, 4  ;;  %v3491_v27 = vadd.f32 %v5558_v5, %v5616_v51 }
 0x21c   : > { %v5849_v44 = vpop.f32.mrf.mxu1  ;;  %v3641_v23 = vmax.f32 %v5834_v60, 0.0  ;;  %v2946_v3 = vmax.f32 %v2944_v19, %v2945_v12  ;;  %v3880_v11 = vsel %vm3879_vm8, %v3878_v14, %v3877_v10  ;;  %v2960_v28 = vmax.f32 %v5735_v42, %v2959_v9  ;;  %v6725_v60 = vld [vmem:[#allocation5_spill] sm:$0xff] }
 0x21d   : > { %4107 = vxpose.xlu0.b32.start [1/16] %v3880_v11, 128  ;;  %v2948_v53 = vmax.f32 %v5739_v22, %v2947_v18  ;;  %v3617_v41 = vmax.f32 %v5627_v58, 0.0  ;;  %v3618_v56 = vmax.f32 %v5609_v30, 0.0  ;;  %v3619_v29 = vmax.f32 %v3491_v27, 0.0 }
 0x21e   : > { %v5861_v61 = vpop.f32.mrf.mxu1  ;;  %v2961_v15 = vrot.slane %v2960_v28, 2  ;;  %v6724_v51 = vmax.f32 %v5577_v7, 0.0  ;;  %v2977_v12 = vrot.slane %v5743_v37, 4  ;;  %v2965_v42 = vrot.slane %v5748_v1, 4 }
 0x21f   : > { %v2949_v14 = vrot.slane %v2948_v53, 2  ;;  %v3889_v58 = vrot.slane %v3617_v41, 3  ;;  %v3891_v9 = vrot.slane %v3618_v56, 2  ;;  %v3893_v7 = vrot.slane %v3619_v29, 1 }
 0x220   : > { %v3882_v19 = vsel %vm3861_vm2, %v5592_v40, %v6724_v51  ;;  %v5872_v52 = vpop.f32.mrf.mxu1  ;;  %v2962_v30 = vmax.f32 %v2960_v28, %v2961_v15  ;;  %v2978_v18 = vmax.f32 %v5743_v37, %v2977_v12  ;;  %v2966_v51 = vmax.f32 %v5748_v1, %v2965_v42 }
 0x221   : > { %v3884_v22 = vsel %vm3864_vm3, %v5585_v2, %v3882_v19  ;;  %v2950_v27 = vmax.f32 %v2948_v53, %v2949_v14  ;;  %v3499_v2 = vadd.f32 %v5558_v5, %v5705_v20  ;;  %v3898_v20 = vsel %vm3864_vm3, %v5682_v8, %v5695_v4 }
 0x222   : > { %v3886_v10 = vsel %vm3867_vm4, %v5590_v36, %v3884_v22  ;;  %v5879_v40 = vpop.f32.mrf.mxu1  ;;  %v2963_v41 = vrot.slane %v2962_v30, 1  ;;  %v2979_v56 = vrot.slane %v2978_v18, 2  ;;  %v3626_v36 = vmax.f32 %v5690_v6, 0.0 }
 0x223   : > { %v3888_v11 = vsel %vm3870_vm5, %v5613_v49, %v3886_v10  ;;  %v2951_v37 = vrot.slane %v2950_v27, 1  ;;  %v2967_v53 = vrot.slane %v2966_v51, 2  ;;  %v3627_v19 = vmax.f32 %v3499_v2, 0.0 }
 0x224   : > { %v3890_v28 = vsel %vm3873_vm6, %v3889_v58, %v3888_v11  ;;  %v5888_v29 = vpop.f32.mrf.mxu1  ;;  %v2964_v12 = vmax.f32 %v2962_v30, %v2963_v41  ;;  %v2980_v1 = vmax.f32 %v2978_v18, %v2979_v56  ;;  %v3646_v14 = vmax.f32 %v5852_v25, 0.0 }
 0x225   : > { %v3892_v15 = vsel %vm3876_vm7, %v3891_v9, %v3890_v28  ;;  %v2952_v6 = vmax.f32 %v2950_v27, %v2951_v37  ;;  %v2968_v22 = vmax.f32 %v2966_v51, %v2967_v53  ;;  %v3900_v58 = vsel %vm3867_vm4, %v5686_v48, %v3898_v20  ;;  %v6727_v20 = vld [vmem:[#allocation6_spill] sm:$0xff] }
 0x226   : > { %v3894_v49 = vsel %vm3879_vm8, %v3893_v7, %v3892_v15  ;;  %v5895_v42 = vpop.f32.mrf.mxu1  ;;  %v3519_v9 = vadd.f32 %v5558_v5, %v2964_v12  ;;  %v2981_v30 = vrot.slane %v2980_v1, 1  ;;  %v3902_v10 = vsel %vm3870_vm5, %v5702_v47, %v3900_v58  ;;  %v6726_v12 = vld [vmem:[#allocation7_spill] sm:$0xff] }
 0x227   : > { %4108 = vxpose.xlu0.b32.cont [2/16] %v3894_v49, 128  ;;  %v3905_v7 = vrot.slane %v3626_v36, 2  ;;  %v5906_v8 = vadd.f32 %v5558_v5, %v2946_v3  ;;  %v3517_v4 = vadd.f32 %v5558_v5, %v2952_v6  ;;  %v3904_v25 = vsel %vm3873_vm6, %v5707_v21, %v3902_v10 }
 0x228   : > { %v5903_v18 = vpop.f32.mrf.mxu1  ;;  %v3907_v27 = vrot.slane %v3627_v19, 1  ;;  %v3924_v48 = vsel %vm3861_vm2, %v5840_v45, %v3636_v13  ;;  %v5917_v47 = vrot.slane %v3640_v26, 4  ;;  %v2971_v3 = vrot.slane %v5761_v35, 4 }
 0x229   : > { %v3906_v11 = vsel %vm3876_vm7, %v3905_v7, %v3904_v25  ;;  %v3647_v2 = vmax.f32 %v3519_v9, 0.0  ;;  %v2969_v41 = vrot.slane %v2968_v22, 1  ;;  %v2983_v28 = vrot.slane %v5753_v0, 4 }
 0x22a   : > { %v5921_v51 = vpop.f32.mrf.mxu1  ;;  %v3908_v21 = vsel %vm3879_vm8, %v3907_v27, %v3906_v11  ;;  %v3931_v57 = vrot.slane %v3641_v23, 3  ;;  %v2982_v13 = vmax.f32 %v2980_v1, %v2981_v30  ;;  %v2972_v32 = vmax.f32 %v5761_v35, %v2971_v3 }
 0x22b   : > { %4109 = vxpose.xlu0.b32.cont [3/16] %v3908_v21, 128  ;;  %v3507_v45 = vadd.f32 %v5558_v5, %v5771_v38  ;;  %v5932_v56 = vrot.slane %v3646_v14, 6  ;;  %v3644_v36 = vmax.f32 %v5906_v8, 0.0  ;;  %v3645_v37 = vmax.f32 %v3517_v4, 0.0 }
 0x22c   : > { %v5930_v26 = vpop.f32.mrf.mxu1  ;;  %v3634_v15 = vmax.f32 %v5769_v31, 0.0  ;;  %v2973_v53 = vrot.slane %v2972_v32, 2  ;;  %v3912_v23 = vsel %vm3864_vm3, %v6725_v60, %v5766_v33  ;;  %v3001_v35 = vrot.slane %v6726_v12, 4  ;;  %v5950_v31 = vld [vmem:[%s6713_s4] ss:$0 sm:$0xff] }
 0x22d   : > { %v3635_v19 = vmax.f32 %v3507_v45, 0.0  ;;  %v5942_v5 = vrot.slane %v3647_v2, 5  ;;  %v2970_v38 = vmax.f32 %v2968_v22, %v2969_v41  ;;  %v2984_v1 = vmax.f32 %v5753_v0, %v2983_v28 }
 0x22e   : > { %v5940_v49 = vpop.f32.mrf.mxu1  ;;  %v3914_v14 = vsel %vm3867_vm4, %v6727_v20, %v3912_v23  ;;  %v5953_v6 = vadd.f32 %v5950_v31, %v2982_v13  ;;  %v2974_v33 = vmax.f32 %v2972_v32, %v2973_v53  ;;  %v3919_v9 = vrot.slane %v3634_v15, 2 }
 0x22f   : > { %v3916_v58 = vsel %vm3870_vm5, %v5796_v63, %v3914_v14  ;;  %v3937_v22 = vrot.slane %v3645_v37, 7  ;;  %v3921_v10 = vrot.slane %v3635_v19, 1  ;;  %v3002_v7 = vmax.f32 %v6726_v12, %v3001_v35 }
 0x230   : > { %v5957_v30 = vpop.f32.mrf.mxu1  ;;  %v3918_v0 = vsel %vm3873_vm6, %v5805_v62, %v3916_v58  ;;  %v2975_v8 = vrot.slane %v2974_v33, 1  ;;  %v2989_v25 = vrot.slane %v5782_v39, 4  ;;  %v3007_v27 = vrot.slane %v5788_v24, 4 }
 0x231   : > { %v3920_v4 = vsel %vm3876_vm7, %v3919_v9, %v3918_v0  ;;  %v2985_v63 = vrot.slane %v2984_v1, 2  ;;  %v3003_v2 = vrot.slane %v3002_v7, 2  ;;  %v3515_v41 = vadd.f32 %v5950_v31, %v5842_v46 }
 0x232   : > { %v5965_v11 = vpop.f32.mrf.mxu1  ;;  %v3922_v3 = vsel %vm3879_vm8, %v3921_v10, %v3920_v4  ;;  %v3520_v62 = vadd.f32 %v5950_v31, %v2970_v38  ;;  %v2990_v21 = vmax.f32 %v5782_v39, %v2989_v25  ;;  %v3008_v28 = vmax.f32 %v5788_v24, %v3007_v27 }
 0x233   : > { %4110 = vxpose.xlu0.b32.cont [4/16] %v3922_v3, 128  ;;  %v3642_v13 = vmax.f32 %v5828_v43, 0.0  ;;  %v3004_v45 = vmax.f32 %v3002_v7, %v3003_v2  ;;  %v3643_v37 = vmax.f32 %v3515_v41, 0.0  ;;  %v3926_v15 = vsel %vm3864_vm3, %v5817_v59, %v3924_v48 }
 0x234   : > { %v5974_v32 = vpop.f32.mrf.mxu1  ;;  %v2995_v53 = vrot.slane %v5794_v55, 4  ;;  %v2976_v19 = vmax.f32 %v2974_v33, %v2975_v8  ;;  %v2991_v46 = vrot.slane %v2990_v21, 2  ;;  %v3009_v60 = vrot.slane %v3008_v28, 2 }
 0x235   : > { %v3928_v23 = vsel %vm3867_vm4, %v5825_v17, %v3926_v15  ;;  %v2986_v24 = vmax.f32 %v2984_v1, %v2985_v63  ;;  %v3005_v12 = vrot.slane %v3004_v45, 1  ;;  %v3933_v35 = vrot.slane %v3642_v13, 2  ;;  %v6728_v1 = vld [vmem:[#allocation8_spill] sm:$0xff] }
 0x236   : > { %v5981_v39 = vpop.f32.mrf.mxu1  ;;  %v3930_v43 = vsel %vm3870_vm5, %v5917_v47, %v3928_v23  ;;  %v2992_v38 = vmax.f32 %v2990_v21, %v2991_v46  ;;  %v3010_v20 = vmax.f32 %v3008_v28, %v3009_v60  ;;  %v3935_v48 = vrot.slane %v3643_v37, 1 }
 0x237   : > { %v3932_v59 = vsel %vm3873_vm6, %v3931_v57, %v3930_v43  ;;  %v5989_v33 = vsel %vm3861_vm2, %v3937_v22, %v3644_v36  ;;  %v2996_v58 = vmax.f32 %v5794_v55, %v2995_v53  ;;  %v3025_v9 = vrot.slane %v6728_v1, 4 }
 0x238   : > { %v5986_v14 = vpop.f32.mrf.mxu1  ;;  %v3934_v17 = vsel %vm3876_vm7, %v3933_v35, %v3932_v59  ;;  %v3648_v0 = vmax.f32 %v3520_v62, 0.0  ;;  %v3521_v47 = vadd.f32 %v5950_v31, %v2976_v19  ;;  %v3011_v10 = vrot.slane %v3010_v20, 1 }
 0x239   : > { %v3936_v7 = vsel %vm3879_vm8, %v3935_v48, %v3934_v17  ;;  %v2987_v57 = vrot.slane %v2986_v24, 1  ;;  %v2997_v4 = vrot.slane %v2996_v58, 2  ;;  %v3026_v36 = vmax.f32 %v6728_v1, %v3025_v9 }
 0x23a   : > { %v5996_v8 = vpop.f32.mrf.mxu1  ;;  %4111 = vxpose.xlu0.b32.cont [5/16] %v3936_v7, 128  ;;  %v3013_v22 = vrot.slane %v5808_v16, 4  ;;  %v3006_v25 = vmax.f32 %v3004_v45, %v3005_v12  ;;  %v2993_v27 = vrot.slane %v2992_v38, 1  ;;  %v3031_v55 = vrot.slane %v5814_v34, 4 }
 0x23b   : > { %v3019_v63 = vrot.slane %v5823_v50, 4  ;;  %v3012_v2 = vmax.f32 %v3010_v20, %v3011_v10  ;;  %v2998_v41 = vmax.f32 %v2996_v58, %v2997_v4  ;;  %v3027_v62 = vrot.slane %v3026_v36, 2 }
 0x23c   : > { %v6002_v3 = vpop.f32.mrf.mxu1  ;;  %v3014_v21 = vmax.f32 %v5808_v16, %v3013_v22  ;;  %v6005_v28 = vrot.slane %v3648_v0, 4  ;;  %v3649_v13 = vmax.f32 %v3521_v47, 0.0  ;;  %v3032_v37 = vmax.f32 %v5814_v34, %v3031_v55 }
 0x23d   : > { %v3020_v15 = vmax.f32 %v5823_v50, %v3019_v63  ;;  %v2988_v53 = vmax.f32 %v2986_v24, %v2987_v57  ;;  %v2999_v19 = vrot.slane %v2998_v41, 1  ;;  %v3028_v46 = vmax.f32 %v3026_v36, %v3027_v62 }
 0x23e   : > { %v6009_v45 = vpop.f32.mrf.mxu1  ;;  %v3015_v60 = vrot.slane %v3014_v21, 2  ;;  %v3526_v23 = vadd.f32 %v5950_v31, %v3006_v25  ;;  %v2994_v12 = vmax.f32 %v2992_v38, %v2993_v27  ;;  %v3033_v43 = vrot.slane %v3032_v37, 2 }
 0x23f   : > { %v3021_v35 = vrot.slane %v3020_v15, 2  ;;  %v3527_v16 = vadd.f32 %v5950_v31, %v3012_v2  ;;  %v3000_v59 = vmax.f32 %v2998_v41, %v2999_v19  ;;  %v3049_v34 = vrot.slane %v5838_v54, 4 }
 0x240   : > { %v6012_v20 = vpop.f32.mrf.mxu1  ;;  %v3016_v48 = vmax.f32 %v3014_v21, %v3015_v60  ;;  %v3945_v50 = vrot.slane %v3649_v13, 3  ;;  %v3029_v17 = vrot.slane %v3028_v46, 1  ;;  %v3037_v24 = vrot.slane %v5849_v44, 4 }
 0x241   : > { %v3022_v58 = vmax.f32 %v3020_v15, %v3021_v35  ;;  %v3525_v9 = vadd.f32 %v5950_v31, %v3000_v59  ;;  %v3034_v0 = vmax.f32 %v3032_v37, %v3033_v43  ;;  %v3050_v47 = vmax.f32 %v5838_v54, %v3049_v34 }
 0x242   : > { %v6017_v1 = vpop.f32.mrf.mxu1  ;;  %v3017_v38 = vrot.slane %v3016_v48, 1  ;;  %v3654_v10 = vmax.f32 %v3526_v23, 0.0  ;;  %v3038_v57 = vmax.f32 %v5849_v44, %v3037_v24  ;;  %v3055_v4 = vrot.slane %v5861_v61, 4 }
 0x243   : > { %v3023_v7 = vrot.slane %v3022_v58, 1  ;;  %v3524_v22 = vadd.f32 %v5950_v31, %v2994_v12  ;;  %v3655_v25 = vmax.f32 %v3527_v16, 0.0  ;;  %v3051_v55 = vrot.slane %v3050_v47, 2 }
 0x244   : > { %v6023_v36 = vpop.f32.mrf.mxu1  ;;  %v3018_v27 = vmax.f32 %v3016_v48, %v3017_v38  ;;  %v3653_v63 = vmax.f32 %v3525_v9, 0.0  ;;  %v3030_v2 = vmax.f32 %v3028_v46, %v3029_v17  ;;  %v3039_v41 = vrot.slane %v3038_v57, 2 }
 0x245   : > { %v3056_v62 = vmax.f32 %v5861_v61, %v3055_v4  ;;  %v3035_v54 = vrot.slane %v3034_v0, 1  ;;  %v3024_v13 = vmax.f32 %v3022_v58, %v3023_v7  ;;  %v3052_v37 = vmax.f32 %v3050_v47, %v3051_v55 }
 0x246   : > { %v6027_v21 = vpop.f32.mrf.mxu1  ;;  %v3523_v44 = vadd.f32 %v5950_v31, %v2988_v53  ;;  %v6030_v15 = vrot.slane %v3654_v10, 6  ;;  %v3528_v19 = vadd.f32 %v5950_v31, %v3018_v27  ;;  %v3650_v23 = vmax.f32 %v5953_v6, 0.0 }
 0x247   : > { %v3057_v60 = vrot.slane %v3056_v62, 2  ;;  %v3652_v46 = vmax.f32 %v3524_v22, 0.0  ;;  %v6036_v43 = vrot.slane %v3655_v25, 5  ;;  %v3040_v61 = vmax.f32 %v3038_v57, %v3039_v41 }
 0x248   : > { %v6034_v12 = vpop.f32.mrf.mxu1  ;;  %v3651_v35 = vmax.f32 %v3523_v44, 0.0  ;;  %v3951_v16 = vrot.slane %v3653_v63, 7  ;;  %v3053_v59 = vrot.slane %v3052_v37, 1  ;;  %v3940_v53 = vsel %vm3864_vm3, %v5932_v56, %v5989_v33 }
 0x249   : > { %v3058_v48 = vmax.f32 %v3056_v62, %v3057_v60  ;;  %v6044_v17 = vadd.f32 %v5950_v31, %v3030_v2  ;;  %v6046_v6 = vmax.f32 %v3034_v0, %v3035_v54  ;;  %v6049_v58 = vadd.f32 %v5950_v31, %v3024_v13 }
 0x24a   : > { %v6041_v34 = vpop.f32.mrf.mxu1  ;;  %v3942_v24 = vsel %vm3867_vm4, %v5942_v5, %v3940_v53  ;;  %v3656_v9 = vmax.f32 %v3528_v19, 0.0  ;;  %v3947_v10 = vrot.slane %v3650_v23, 2  ;;  %v3041_v33 = vrot.slane %v3040_v61, 1 }
 0x24b   : > { %v3059_v38 = vrot.slane %v3058_v48, 1  ;;  %v3944_v47 = vsel %vm3870_vm5, %v6005_v28, %v3942_v24  ;;  %v3949_v57 = vrot.slane %v3651_v35, 1  ;;  %v3043_v0 = vrot.slane %v5872_v52, 4 }
 0x24c   : > { %v6055_v56 = vpop.f32.mrf.mxu1  ;;  %v3946_v7 = vsel %vm3873_vm6, %v3945_v50, %v3944_v47  ;;  %v6060_v4 = vsel %vm3861_vm2, %v3951_v16, %v3652_v46  ;;  %v3054_v22 = vmax.f32 %v3052_v37, %v3053_v59  ;;  %v3073_v25 = vrot.slane %v5879_v40, 4 }
 0x24d   : > { %v3948_v5 = vsel %vm3876_vm7, %v3947_v10, %v3946_v7  ;;  %v3657_v28 = vmax.f32 %v6049_v58, 0.0  ;;  %v3044_v63 = vmax.f32 %v5872_v52, %v3043_v0  ;;  %v3061_v50 = vrot.slane %v5888_v29, 4 }
 0x24e   : > { %v6064_v27 = vpop.f32.mrf.mxu1  ;;  %v3950_v55 = vsel %vm3879_vm8, %v3949_v57, %v3948_v5  ;;  %v6070_v2 = vrot.slane %v3656_v9, 4  ;;  %v3060_v41 = vmax.f32 %v3058_v48, %v3059_v38  ;;  %v3074_v62 = vmax.f32 %v5879_v40, %v3073_v25 }
 0x24f   : > { %4112 = vxpose.xlu0.b32.cont [6/16] %v3950_v55, 128  ;;  %v3079_v54 = vrot.slane %v5895_v42, 4  ;;  %v3042_v37 = vmax.f32 %v3040_v61, %v3041_v33  ;;  %v3045_v44 = vrot.slane %v3044_v63, 2  ;;  %v3062_v19 = vmax.f32 %v5888_v29, %v3061_v50 }
 0x250   : > { %v6074_v13 = vpop.f32.mrf.mxu1  ;;  %v3067_v60 = vrot.slane %v5903_v18, 4  ;;  %v3534_v52 = vadd.f32 %v5950_v31, %v3054_v22  ;;  %v3075_v23 = vrot.slane %v3074_v62, 2  ;;  %v3097_v35 = vrot.slane %v5921_v51, 4 }
 0x251   : > { %v3080_v46 = vmax.f32 %v5895_v42, %v3079_v54  ;;  %v3046_v40 = vmax.f32 %v3044_v63, %v3045_v44  ;;  %v3063_v59 = vrot.slane %v3062_v19, 2  ;;  %v3085_v61 = vrot.slane %v5930_v26, 4 }
 0x252   : > { %v6081_v16 = vpop.f32.mrf.mxu1  ;;  %v3068_v48 = vmax.f32 %v5903_v18, %v3067_v60  ;;  %v3535_v53 = vadd.f32 %v5950_v31, %v3060_v41  ;;  %v3076_v29 = vmax.f32 %v3074_v62, %v3075_v23  ;;  %v3098_v9 = vmax.f32 %v5921_v51, %v3097_v35 }
 0x253   : > { %v3081_v24 = vrot.slane %v3080_v46, 2  ;;  %v3047_v47 = vrot.slane %v3046_v40, 1  ;;  %v3064_v42 = vmax.f32 %v3062_v19, %v3063_v59  ;;  %v3086_v33 = vmax.f32 %v5930_v26, %v3085_v61 }
 0x254   : > { %v6087_v38 = vpop.f32.mrf.mxu1  ;;  %v3069_v10 = vrot.slane %v3068_v48, 2  ;;  %v3077_v7 = vrot.slane %v3076_v29, 1  ;;  %v3099_v0 = vrot.slane %v3098_v9, 2  ;;  %v3103_v18 = vrot.slane %v5940_v49, 4 }
 0x255   : > { %v3082_v57 = vmax.f32 %v3080_v46, %v3081_v24  ;;  %v3048_v5 = vmax.f32 %v3046_v40, %v3047_v47  ;;  %v3065_v25 = vrot.slane %v3064_v42, 1  ;;  %v3087_v63 = vrot.slane %v3086_v33, 2 }
 0x256   : > { %v6091_v22 = vpop.f32.mrf.mxu1  ;;  %v3070_v55 = vmax.f32 %v3068_v48, %v3069_v10  ;;  %v3662_v50 = vmax.f32 %v3534_v52, 0.0  ;;  %v3532_v51 = vadd.f32 %v5950_v31, %v3042_v37  ;;  %v3100_v41 = vmax.f32 %v3098_v9, %v3099_v0 }
 0x257   : > { %v3104_v62 = vmax.f32 %v5940_v49, %v3103_v18  ;;  %v3533_v26 = vadd.f32 %v5950_v31, %v3048_v5  ;;  %v3066_v44 = vmax.f32 %v3064_v42, %v3065_v25  ;;  %v3088_v60 = vmax.f32 %v3086_v33, %v3087_v63 }
 0x258   : > { %v6095_v54 = vpop.f32.mrf.mxu1  ;;  %v3071_v19 = vrot.slane %v3070_v55, 1  ;;  %v3663_v23 = vmax.f32 %v3535_v53, 0.0  ;;  %v3078_v46 = vmax.f32 %v3076_v29, %v3077_v7  ;;  %v3101_v35 = vrot.slane %v3100_v41, 1 }
 0x259   : > { %v3105_v40 = vrot.slane %v3104_v62, 2  ;;  %v3661_v48 = vmax.f32 %v3533_v26, 0.0  ;;  %v6101_v52 = vadd.f32 %v5950_v31, %v3066_v44  ;;  %v3083_v37 = vrot.slane %v3082_v57, 1 }
 0x25a   : > { %v6098_v59 = vpop.f32.mrf.mxu1  ;;  %v3072_v61 = vmax.f32 %v3070_v55, %v3071_v19  ;;  %v3102_v49 = vmax.f32 %v3100_v41, %v3101_v35  ;;  %v3089_v24 = vrot.slane %v3088_v60, 1  ;;  %v3531_v47 = vadd.f32 %v5950_v31, %v6046_v6 }
 0x25b   : > { %v3106_v9 = vmax.f32 %v3104_v62, %v3105_v40  ;;  %v3959_v53 = vrot.slane %v3657_v28, 3  ;;  %v3965_v29 = vrot.slane %v3661_v48, 7  ;;  %v3658_v33 = vmax.f32 %v6044_v17, 0.0 }
 0x25c   : > { %v6105_v42 = vpop.f32.mrf.mxu1  ;;  %v6110_v10 = vadd.f32 %v5950_v31, %v3072_v61  ;;  %v3660_v7 = vmax.f32 %v3532_v51, 0.0  ;;  %v3659_v18 = vmax.f32 %v3531_v47, 0.0  ;;  %v3954_v5 = vsel %vm3864_vm3, %v6030_v15, %v6060_v4 }
 0x25d   : > { %v3107_v0 = vrot.slane %v3106_v9, 1  ;;  %v6118_v6 = vrot.slane %v3662_v50, 6  ;;  %v6120_v55 = vrot.slane %v3663_v23, 5  ;;  %v6123_v58 = vadd.f32 %v5950_v31, %v3078_v46 }
 0x25e   : > { %v6116_v25 = vpop.f32.mrf.mxu1  ;;  %v6125_v28 = vmax.f32 %v3082_v57, %v3083_v37  ;;  %v3664_v17 = vmax.f32 %v6101_v52, 0.0  ;;  %v6129_v63 = vadd.f32 %v5950_v31, %v3102_v49  ;;  %v3090_v51 = vmax.f32 %v3088_v60, %v3089_v24 }
 0x25f   : > { %v3956_v15 = vsel %vm3867_vm4, %v6036_v43, %v3954_v5  ;;  %v6136_v50 = vsel %vm3861_vm2, %v3965_v29, %v3660_v7  ;;  %v3665_v41 = vmax.f32 %v6110_v10, 0.0  ;;  %v3961_v62 = vrot.slane %v3658_v33, 2 }
 0x260   : > { %v6133_v4 = vpop.f32.mrf.mxu1  ;;  %v3958_v57 = vsel %vm3870_vm5, %v6070_v2, %v3956_v15  ;;  %v3108_v26 = vmax.f32 %v3106_v9, %v3107_v0  ;;  %v3963_v19 = vrot.slane %v3659_v18, 1  ;;  %v3091_v60 = vrot.slane %v5957_v30, 4 }
 0x261   : > { %v3960_v44 = vsel %vm3873_vm6, %v3959_v53, %v3958_v57  ;;  %v3121_v46 = vrot.slane %v5965_v11, 4  ;;  %v3109_v35 = vrot.slane %v5974_v32, 4  ;;  %v3127_v40 = vrot.slane %v5981_v39, 4 }
 0x262   : > { %v6143_v23 = vpop.f32.mrf.mxu1  ;;  %v3962_v43 = vsel %vm3876_vm7, %v3961_v62, %v3960_v44  ;;  %v6150_v48 = vadd.f32 %v5950_v31, %v3090_v51  ;;  %v3092_v37 = vmax.f32 %v5957_v30, %v3091_v60  ;;  %v3115_v61 = vrot.slane %v5986_v14, 4 }
 0x263   : > { %v3964_v2 = vsel %vm3879_vm8, %v3963_v19, %v3962_v43  ;;  %v3122_v24 = vmax.f32 %v5965_v11, %v3121_v46  ;;  %v3110_v9 = vmax.f32 %v5974_v32, %v3109_v35  ;;  %v3128_v47 = vmax.f32 %v5981_v39, %v3127_v40 }
 0x264   : > { %v6155_v49 = vpop.f32.mrf.mxu1  ;;  %4113 = vxpose.xlu0.b32.cont [7/16] %v3964_v2, 128  ;;  %v3145_v53 = vrot.slane %v5996_v8, 4  ;;  %v3543_v29 = vadd.f32 %v5950_v31, %v3108_v26  ;;  %v3093_v33 = vrot.slane %v3092_v37, 2  ;;  %v3116_v7 = vmax.f32 %v5986_v14, %v3115_v61 }
 0x265   : > { %v3133_v30 = vrot.slane %v6002_v3, 4  ;;  %v3123_v18 = vrot.slane %v3122_v24, 2  ;;  %v3111_v5 = vrot.slane %v3110_v9, 2  ;;  %v3129_v51 = vrot.slane %v3128_v47, 2 }
 0x266   : > { %v6164_v0 = vpop.f32.mrf.mxu1  ;;  %v3146_v11 = vmax.f32 %v5996_v8, %v3145_v53  ;;  %v3094_v15 = vmax.f32 %v3092_v37, %v3093_v33  ;;  %v3117_v32 = vrot.slane %v3116_v7, 2  ;;  %v3151_v57 = vrot.slane %v6009_v45, 4 }
 0x267   : > { %v3134_v39 = vmax.f32 %v6002_v3, %v3133_v30  ;;  %v3124_v62 = vmax.f32 %v3122_v24, %v3123_v18  ;;  %v3112_v26 = vmax.f32 %v3110_v9, %v3111_v5  ;;  %v3130_v44 = vmax.f32 %v3128_v47, %v3129_v51 }
 0x268   : > { %v3147_v19 = vrot.slane %v3146_v11, 2  ;;  %v3095_v14 = vrot.slane %v3094_v15, 1  ;;  %v3118_v60 = vmax.f32 %v3116_v7, %v3117_v32  ;;  %v3152_v46 = vmax.f32 %v6009_v45, %v3151_v57  ;;  %v6170_v35 = vpop.f32.mrf.mxu1 }
 0x269   : > { %v3135_v43 = vrot.slane %v3134_v39, 2  ;;  %v3670_v40 = vmax.f32 %v6129_v63, 0.0  ;;  %v3125_v8 = vrot.slane %v3124_v62, 1  ;;  %v3113_v2 = vrot.slane %v3112_v26, 1 }
 0x26a   : > { %v3148_v37 = vmax.f32 %v3146_v11, %v3147_v19  ;;  %v3096_v61 = vmax.f32 %v3094_v15, %v3095_v14  ;;  %v3119_v3 = vrot.slane %v3118_v60, 1  ;;  %v3153_v33 = vrot.slane %v3152_v46, 2  ;;  %v6174_v51 = vpop.f32.mrf.mxu1 }
 0x26b   : > { %v3136_v53 = vmax.f32 %v3134_v39, %v3135_v43  ;;  %v3671_v24 = vmax.f32 %v3543_v29, 0.0  ;;  %v3114_v9 = vmax.f32 %v3112_v26, %v3113_v2  ;;  %v3131_v47 = vrot.slane %v3130_v44, 1 }
 0x26c   : > { %v3149_v30 = vrot.slane %v3148_v37, 1  ;;  %v3541_v7 = vadd.f32 %v5950_v31, %v3096_v61  ;;  %v3120_v18 = vmax.f32 %v3118_v60, %v3119_v3  ;;  %v3154_v45 = vmax.f32 %v3152_v46, %v3153_v33  ;;  %v6192_v2 = vpop.f32.mrf.mxu1 }
 0x26d   : > { %v3137_v5 = vrot.slane %v3136_v53, 1  ;;  %v3126_v32 = vmax.f32 %v3124_v62, %v3125_v8  ;;  %v3544_v63 = vadd.f32 %v5950_v31, %v3114_v9  ;;  %v3539_v11 = vadd.f32 %v5950_v31, %v6125_v28 }
 0x26e   : > { %v3150_v57 = vmax.f32 %v3148_v37, %v3149_v30  ;;  %v3669_v15 = vmax.f32 %v3541_v7, 0.0  ;;  %v6180_v29 = vadd.f32 %v5950_v31, %v3120_v18  ;;  %v3155_v26 = vrot.slane %v3154_v45, 1  ;;  %v6217_v9 = vpop.f32.mrf.mxu1 }
 0x26f   : > { %v3138_v39 = vmax.f32 %v3136_v53, %v3137_v5  ;;  %v3971_v19 = vrot.slane %v3664_v17, 4  ;;  %v3973_v14 = vrot.slane %v3665_v41, 3  ;;  %v3672_v60 = vmax.f32 %v3544_v63, 0.0 }
 0x270   : > { %v3666_v62 = vmax.f32 %v6123_v58, 0.0  ;;  %v6187_v43 = vrot.slane %v3670_v40, 6  ;;  %v3668_v46 = vmax.f32 %v6150_v48, 0.0  ;;  %v6190_v28 = vrot.slane %v3671_v24, 5 }
 0x271   : > { %v3667_v8 = vmax.f32 %v3539_v11, 0.0  ;;  %v6195_v37 = vadd.f32 %v5950_v31, %v3126_v32  ;;  %v6197_v52 = vmax.f32 %v3130_v44, %v3131_v47  ;;  %v6200_v10 = vadd.f32 %v5950_v31, %v3150_v57 }
 0x272   : > { %v3968_v58 = vsel %vm3864_vm3, %v6118_v6, %v6136_v50  ;;  %v3979_v17 = vrot.slane %v3669_v15, 7  ;;  %v3673_v41 = vmax.f32 %v6180_v29, 0.0  ;;  %v6207_v48 = vadd.f32 %v5950_v31, %v3138_v39 }
 0x273   : > { %v3156_v40 = vmax.f32 %v3154_v45, %v3155_v26  ;;  %v6209_v61 = vrot.slane %v3672_v60, 4  ;;  %v3970_v44 = vsel %vm3867_vm4, %v6120_v55, %v3968_v58  ;;  %v3975_v3 = vrot.slane %v3666_v62, 2 }
 0x274   : > { %v3139_v53 = vrot.slane %v6012_v20, 4  ;;  %v3972_v33 = vsel %vm3870_vm5, %v3971_v19, %v3970_v44  ;;  %v3977_v24 = vrot.slane %v3667_v8, 1  ;;  %v3169_v6 = vrot.slane %v6017_v1, 4 }
 0x275   : > { %v3157_v50 = vrot.slane %v6023_v36, 4  ;;  %v3974_v47 = vsel %vm3873_vm6, %v3973_v14, %v3972_v33  ;;  %v3175_v7 = vrot.slane %v6027_v21, 4  ;;  %v3163_v55 = vrot.slane %v6034_v12, 4  ;;  %v6232_v14 = vpop.f32.mrf.mxu1 }
 0x276   : > { %v3140_v30 = vmax.f32 %v6012_v20, %v3139_v53  ;;  %v3678_v18 = vmax.f32 %v6200_v10, 0.0  ;;  %v3976_v5 = vsel %vm3876_vm7, %v3975_v3, %v3974_v47  ;;  %v3170_v45 = vmax.f32 %v6017_v1, %v3169_v6 }
 0x277   : > { %v3158_v32 = vmax.f32 %v6023_v36, %v3157_v50  ;;  %v3978_v63 = vsel %vm3879_vm8, %v3977_v24, %v3976_v5  ;;  %v3176_v11 = vmax.f32 %v6027_v21, %v3175_v7  ;;  %v3164_v15 = vmax.f32 %v6034_v12, %v3163_v55  ;;  %v6239_v47 = vpop.f32.mrf.mxu1 }
 0x278   : > { %v3141_v57 = vrot.slane %v3140_v30, 2  ;;  %4114 = vxpose.xlu0.b32.cont [8/16] %v3978_v63, 128  ;;  %v3171_v20 = vrot.slane %v3170_v45, 2  ;;  %v3193_v26 = vrot.slane %v6041_v34, 4  ;;  %v3181_v19 = vrot.slane %v6055_v56, 4 }
 0x279   : > { %v3159_v39 = vrot.slane %v3158_v32, 2  ;;  %v3177_v1 = vrot.slane %v3176_v11, 2  ;;  %v3165_v62 = vrot.slane %v3164_v15, 2  ;;  %v3199_v36 = vrot.slane %v6064_v27, 4 }
 0x27a   : > { %v3142_v60 = vmax.f32 %v3140_v30, %v3141_v57  ;;  %v3172_v8 = vmax.f32 %v3170_v45, %v3171_v20  ;;  %v3194_v21 = vmax.f32 %v6041_v34, %v3193_v26  ;;  %v3182_v12 = vmax.f32 %v6055_v56, %v3181_v19  ;;  %v6244_v26 = vpop.f32.mrf.mxu1 }
 0x27b   : > { %v3160_v10 = vmax.f32 %v3158_v32, %v3159_v39  ;;  %v3551_v58 = vadd.f32 %v5950_v31, %v3156_v40  ;;  %v3166_v3 = vmax.f32 %v3164_v15, %v3165_v62  ;;  %v3200_v53 = vmax.f32 %v6064_v27, %v3199_v36 }
 0x27c   : > { %v3143_v44 = vrot.slane %v3142_v60, 1  ;;  %v3178_v24 = vmax.f32 %v3176_v11, %v3177_v1  ;;  %v3195_v6 = vrot.slane %v3194_v21, 2  ;;  %v3183_v50 = vrot.slane %v3182_v12, 2 }
 0x27d   : > { %v3161_v33 = vrot.slane %v3160_v10, 1  ;;  %v3173_v7 = vrot.slane %v3172_v8, 1  ;;  %v3167_v55 = vrot.slane %v3166_v3, 1  ;;  %v3201_v5 = vrot.slane %v3200_v53, 2 }
 0x27e   : > { %v3144_v30 = vmax.f32 %v3142_v60, %v3143_v44  ;;  %v3980_v34 = vsel %vm3861_vm2, %v3979_v17, %v3668_v46  ;;  %v3196_v56 = vmax.f32 %v3194_v21, %v3195_v6  ;;  %v3184_v32 = vmax.f32 %v3182_v12, %v3183_v50 }
 0x27f   : > { %v3162_v45 = vmax.f32 %v3160_v10, %v3161_v33  ;;  %v3679_v40 = vmax.f32 %v3551_v58, 0.0  ;;  %v3168_v57 = vmax.f32 %v3166_v3, %v3167_v55  ;;  %v3202_v27 = vmax.f32 %v3200_v53, %v3201_v5 }
 0x280   : > { %v3549_v63 = vadd.f32 %v5950_v31, %v3144_v30  ;;  %v3179_v15 = vrot.slane %v3178_v24, 1  ;;  %v3197_v20 = vrot.slane %v3196_v56, 1  ;;  %v3185_v39 = vrot.slane %v3184_v32, 1 }
 0x281   : > { %v3552_v11 = vadd.f32 %v5950_v31, %v3162_v45  ;;  %v3174_v60 = vmax.f32 %v3172_v8, %v3173_v7  ;;  %v3203_v1 = vrot.slane %v3202_v27, 1  ;;  %v3547_v46 = vadd.f32 %v5950_v31, %v6197_v52 }
 0x282   : > { %v3677_v19 = vmax.f32 %v3549_v63, 0.0  ;;  %v3987_v17 = vrot.slane %v3673_v41, 3  ;;  %v6251_v36 = vadd.f32 %v5950_v31, %v3168_v57  ;;  %v3674_v10 = vmax.f32 %v6195_v37, 0.0  ;;  %v6263_v41 = vpop.f32.mrf.mxu1 }
 0x283   : > { %v3680_v62 = vmax.f32 %v3552_v11, 0.0  ;;  %v6254_v21 = vrot.slane %v3678_v18, 6  ;;  %v3676_v12 = vmax.f32 %v6207_v48, 0.0  ;;  %v3198_v58 = vmax.f32 %v3196_v56, %v3197_v20 }
 0x284   : > { %v3675_v44 = vmax.f32 %v3547_v46, 0.0  ;;  %v6257_v8 = vrot.slane %v3679_v40, 5  ;;  %v6259_v3 = vmax.f32 %v3178_v24, %v3179_v15  ;;  %v3186_v52 = vmax.f32 %v3184_v32, %v3185_v39  ;;  %v6286_v56 = vpop.f32.mrf.mxu1 }
 0x285   : > { %v3982_v29 = vsel %vm3864_vm3, %v6187_v43, %v3980_v34  ;;  %v3993_v53 = vrot.slane %v3677_v19, 7  ;;  %v6266_v33 = vadd.f32 %v5950_v31, %v3174_v60  ;;  %v3204_v37 = vmax.f32 %v3202_v27, %v3203_v1 }
 0x286   : > { %v3984_v48 = vsel %vm3867_vm4, %v6190_v28, %v3982_v29  ;;  %v6270_v18 = vrot.slane %v3680_v62, 4  ;;  %v3681_v6 = vmax.f32 %v6251_v36, 0.0  ;;  %v3989_v50 = vrot.slane %v3674_v10, 2 }
 0x287   : > { %v3986_v24 = vsel %vm3870_vm5, %v6209_v61, %v3984_v48  ;;  %v6276_v43 = vadd.f32 %v5950_v31, %v3198_v58  ;;  %v3991_v7 = vrot.slane %v3675_v44, 1  ;;  %v3187_v55 = vrot.slane %v6074_v13, 4 }
 0x288   : > { %v3988_v30 = vsel %vm3873_vm6, %v3987_v17, %v3986_v24  ;;  %v6281_v5 = vadd.f32 %v5950_v31, %v3186_v52  ;;  %v3217_v34 = vrot.slane %v6081_v16, 4  ;;  %v3205_v45 = vrot.slane %v6087_v38, 4 }
 0x289   : > { %v3990_v28 = vsel %vm3876_vm7, %v3989_v50, %v3988_v30  ;;  %v6289_v61 = vadd.f32 %v5950_v31, %v3204_v37  ;;  %v3188_v40 = vmax.f32 %v6074_v13, %v3187_v55  ;;  %v3223_v63 = vrot.slane %v6091_v22, 4 }
 0x28a   : > { %v3992_v32 = vsel %vm3879_vm8, %v3991_v7, %v3990_v28  ;;  %v3218_v57 = vmax.f32 %v6081_v16, %v3217_v34  ;;  %v3206_v27 = vmax.f32 %v6087_v38, %v3205_v45  ;;  %v3211_v11 = vrot.slane %v6095_v54, 4  ;;  %v6303_v16 = vpop.f32.mrf.mxu1 }
 0x28b   : > { %4115 = vxpose.xlu0.b32.cont [9/16] %v3992_v32, 128  ;;  %v3241_v15 = vrot.slane %v6098_v59, 4  ;;  %v3189_v20 = vrot.slane %v3188_v40, 2  ;;  %v3224_v39 = vmax.f32 %v6091_v22, %v3223_v63  ;;  %v3229_v19 = vrot.slane %v6105_v42, 4 }
 0x28c   : > { %v3247_v60 = vrot.slane %v6116_v25, 4  ;;  %v3219_v1 = vrot.slane %v3218_v57, 2  ;;  %v3207_v13 = vrot.slane %v3206_v27, 2  ;;  %v3212_v46 = vmax.f32 %v6095_v54, %v3211_v11  ;;  %v6307_v55 = vpop.f32.mrf.mxu1 }
 0x28d   : > { %v3242_v17 = vmax.f32 %v6098_v59, %v3241_v15  ;;  %v3190_v38 = vmax.f32 %v3188_v40, %v3189_v20  ;;  %v3225_v62 = vrot.slane %v3224_v39, 2  ;;  %v3230_v10 = vmax.f32 %v6105_v42, %v3229_v19 }
 0x28e   : > { %v3248_v58 = vmax.f32 %v6116_v25, %v3247_v60  ;;  %v3220_v44 = vmax.f32 %v3218_v57, %v3219_v1  ;;  %v3208_v22 = vmax.f32 %v3206_v27, %v3207_v13  ;;  %v3213_v52 = vrot.slane %v3212_v46, 2  ;;  %v6313_v1 = vpop.f32.mrf.mxu1 }
 0x28f   : > { %v3243_v29 = vrot.slane %v3242_v17, 2  ;;  %v3191_v37 = vrot.slane %v3190_v38, 1  ;;  %v3226_v48 = vmax.f32 %v3224_v39, %v3225_v62  ;;  %v3231_v24 = vrot.slane %v3230_v10, 2 }
 0x290   : > { %v3249_v50 = vrot.slane %v3248_v58, 2  ;;  %v3221_v30 = vrot.slane %v3220_v44, 1  ;;  %v3209_v54 = vrot.slane %v3208_v22, 1  ;;  %v3214_v7 = vmax.f32 %v3212_v46, %v3213_v52  ;;  %v6341_v52 = vpop.f32.mrf.mxu1 }
 0x291   : > { %v3244_v59 = vmax.f32 %v3242_v17, %v3243_v29  ;;  %v3994_v28 = vsel %vm3861_vm2, %v3993_v53, %v3676_v12  ;;  %v3192_v34 = vmax.f32 %v3190_v38, %v3191_v37  ;;  %v3232_v42 = vmax.f32 %v3230_v10, %v3231_v24 }
 0x292   : > { %v3250_v45 = vmax.f32 %v3248_v58, %v3249_v50  ;;  %v3686_v25 = vmax.f32 %v6276_v43, 0.0  ;;  %v3210_v32 = vmax.f32 %v3208_v22, %v3209_v54  ;;  %v3215_v40 = vrot.slane %v3214_v7, 1 }
 0x293   : > { %v3245_v63 = vrot.slane %v3244_v59, 1  ;;  %v3687_v57 = vmax.f32 %v6289_v61, 0.0  ;;  %v3557_v27 = vadd.f32 %v5950_v31, %v3192_v34  ;;  %v3233_v11 = vrot.slane %v3232_v42, 1 }
 0x294   : > { %v3251_v15 = vrot.slane %v3250_v45, 1  ;;  %v3222_v20 = vmax.f32 %v3220_v44, %v3221_v30  ;;  %v3227_v39 = vrot.slane %v3226_v48, 1  ;;  %v3216_v19 = vmax.f32 %v3214_v7, %v3215_v40 }
 0x295   : > { %v3246_v60 = vmax.f32 %v3244_v59, %v3245_v63  ;;  %v3685_v12 = vmax.f32 %v3557_v27, 0.0  ;;  %v6316_v53 = vadd.f32 %v5950_v31, %v3210_v32  ;;  %v3234_v43 = vmax.f32 %v3232_v42, %v3233_v11  ;;  %v6362_v42 = vpop.f32.mrf.mxu1 }
 0x296   : > { %v3555_v13 = vadd.f32 %v5950_v31, %v6259_v3  ;;  %v4001_v61 = vrot.slane %v3681_v6, 3  ;;  %v6323_v46 = vadd.f32 %v5950_v31, %v3216_v19  ;;  %v3252_v17 = vmax.f32 %v3250_v45, %v3251_v15 }
 0x297   : > { %v3682_v38 = vmax.f32 %v6266_v33, 0.0  ;;  %v6326_v62 = vrot.slane %v3686_v25, 6  ;;  %v3684_v10 = vmax.f32 %v6281_v5, 0.0  ;;  %v6330_v58 = vadd.f32 %v5950_v31, %v3246_v60 }
 0x298   : > { %v3683_v44 = vmax.f32 %v3555_v13, 0.0  ;;  %v6332_v22 = vrot.slane %v3687_v57, 5  ;;  %v6335_v3 = vadd.f32 %v5950_v31, %v3222_v20  ;;  %v6337_v36 = vmax.f32 %v3226_v48, %v3227_v39 }
 0x299   : > { %v3996_v6 = vsel %vm3864_vm3, %v6254_v21, %v3994_v28  ;;  %v4007_v33 = vrot.slane %v3685_v12, 7  ;;  %v3688_v29 = vmax.f32 %v6316_v53, 0.0  ;;  %v6345_v5 = vadd.f32 %v5950_v31, %v3234_v43  ;;  %v6376_v43 = vpop.f32.mrf.mxu1 }
 0x29a   : > { %v3998_v37 = vsel %vm3867_vm4, %v6257_v8, %v3996_v6  ;;  %v3689_v24 = vmax.f32 %v6323_v46, 0.0  ;;  %v6351_v50 = vadd.f32 %v5950_v31, %v3252_v17  ;;  %v4003_v21 = vrot.slane %v3682_v38, 2 }
 0x29b   : > { %v4000_v48 = vsel %vm3870_vm5, %v6270_v18, %v3998_v37  ;;  %v3694_v30 = vmax.f32 %v6330_v58, 0.0  ;;  %v4005_v7 = vrot.slane %v3683_v44, 1  ;;  %v3235_v59 = vrot.slane %v6133_v4, 4 }
 0x29c   : > { %v4002_v54 = vsel %vm3873_vm6, %v4001_v61, %v4000_v48  ;;  %v3265_v8 = vrot.slane %v6143_v23, 4  ;;  %v3253_v34 = vrot.slane %v6155_v49, 4  ;;  %v3271_v31 = vrot.slane %v6164_v0, 4 }
 0x29d   : > { %v4004_v28 = vsel %vm3876_vm7, %v4003_v21, %v4002_v54  ;;  %v3236_v45 = vmax.f32 %v6133_v4, %v3235_v59  ;;  %v3259_v25 = vrot.slane %v6170_v35, 4  ;;  %v3289_v32 = vrot.slane %v6174_v51, 4 }
 0x29e   : > { %v4006_v18 = vsel %vm3879_vm8, %v4005_v7, %v4004_v28  ;;  %v3266_v40 = vmax.f32 %v6143_v23, %v3265_v8  ;;  %v3254_v63 = vmax.f32 %v6155_v49, %v3253_v34  ;;  %v3272_v57 = vmax.f32 %v6164_v0, %v3271_v31  ;;  %v6380_v7 = vpop.f32.mrf.mxu1 }
 0x29f   : > { %4116 = vxpose.xlu0.b32.cont [10/16] %v4006_v18, 128  ;;  %v3277_v27 = vrot.slane %v6192_v2, 4  ;;  %v3237_v11 = vrot.slane %v3236_v45, 2  ;;  %v3260_v15 = vmax.f32 %v6170_v35, %v3259_v25  ;;  %v3290_v20 = vmax.f32 %v6174_v51, %v3289_v32  ;;  %v6386_v25 = vld [vmem:[%s6713_s4] ss:$0 sm:$0xff] }
 0x2a0   : > { %v3295_v4 = vrot.slane %v6217_v9, 4  ;;  %v3267_v39 = vrot.slane %v3266_v40, 2  ;;  %v3255_v19 = vrot.slane %v3254_v63, 2  ;;  %v3273_v60 = vrot.slane %v3272_v57, 2 }
 0x2a1   : > { %v3278_v12 = vmax.f32 %v6192_v2, %v3277_v27  ;;  %v3238_v23 = vmax.f32 %v3236_v45, %v3237_v11  ;;  %v3261_v49 = vrot.slane %v3260_v15, 2  ;;  %v3291_v13 = vrot.slane %v3290_v20, 2  ;;  %v6392_v11 = vpop.f32.mrf.mxu1 }
 0x2a2   : > { %v3296_v0 = vmax.f32 %v6217_v9, %v3295_v4  ;;  %v3268_v61 = vmax.f32 %v3266_v40, %v3267_v39  ;;  %v3256_v17 = vmax.f32 %v3254_v63, %v3255_v19  ;;  %v3274_v38 = vmax.f32 %v3272_v57, %v3273_v60 }
 0x2a3   : > { %v3279_v35 = vrot.slane %v3278_v12, 2  ;;  %v3239_v44 = vrot.slane %v3238_v23, 1  ;;  %v3262_v51 = vmax.f32 %v3260_v15, %v3261_v49  ;;  %v3292_v6 = vmax.f32 %v3290_v20, %v3291_v13 }
 0x2a4   : > { %v3297_v37 = vrot.slane %v3296_v0, 2  ;;  %v4008_v48 = vsel %vm3861_vm2, %v4007_v33, %v3684_v10  ;;  %v3269_v21 = vrot.slane %v3268_v61, 1  ;;  %v3257_v54 = vrot.slane %v3256_v17, 1 }
 0x2a5   : > { %v3280_v2 = vmax.f32 %v3278_v12, %v3279_v35  ;;  %v3240_v59 = vmax.f32 %v3238_v23, %v3239_v44  ;;  %v3263_v28 = vrot.slane %v3262_v51, 1  ;;  %v3293_v8 = vrot.slane %v3292_v6, 1 }
 0x2a6   : > { %v3298_v34 = vmax.f32 %v3296_v0, %v3297_v37  ;;  %v3695_v9 = vmax.f32 %v6351_v50, 0.0  ;;  %v3258_v31 = vmax.f32 %v3256_v17, %v3257_v54  ;;  %v3275_v18 = vrot.slane %v3274_v38, 1 }
 0x2a7   : > { %v3281_v45 = vrot.slane %v3280_v2, 1  ;;  %v3565_v10 = vadd.f32 %v6386_v25, %v3240_v59  ;;  %v3264_v33 = vmax.f32 %v3262_v51, %v3263_v28  ;;  %v3294_v32 = vmax.f32 %v3292_v6, %v3293_v8 }
 0x2a8   : > { %v3299_v40 = vrot.slane %v3298_v34, 1  ;;  %v3270_v63 = vmax.f32 %v3268_v61, %v3269_v21  ;;  %v3568_v57 = vadd.f32 %v6386_v25, %v3258_v31  ;;  %v3563_v50 = vadd.f32 %v6386_v25, %v6337_v36 }
 0x2a9   : > { %v3282_v27 = vmax.f32 %v3280_v2, %v3281_v45  ;;  %v3693_v15 = vmax.f32 %v3565_v10, 0.0  ;;  %v6395_v20 = vadd.f32 %v6386_v25, %v3264_v33  ;;  %v6398_v4 = vadd.f32 %v6386_v25, %v3294_v32 }
 0x2aa   : > { %v3300_v39 = vmax.f32 %v3298_v34, %v3299_v40  ;;  %v4013_v19 = vrot.slane %v3688_v29, 4  ;;  %v4015_v60 = vrot.slane %v3689_v24, 3  ;;  %v3692_v12 = vmax.f32 %v6345_v5, 0.0 }
 0x2ab   : > { %v3690_v36 = vmax.f32 %v6335_v3, 0.0  ;;  %v6408_v23 = vrot.slane %v3694_v30, 6  ;;  %v6410_v49 = vrot.slane %v3695_v9, 5  ;;  %v6412_v13 = vmax.f32 %v3274_v38, %v3275_v18  ;;  %v6422_v3 = vpop.f32.mrf.mxu1 }
 0x2ac   : > { %v3691_v0 = vmax.f32 %v3563_v50, 0.0  ;;  %v6415_v61 = vadd.f32 %v6386_v25, %v3270_v63  ;;  %v3696_v53 = vmax.f32 %v3568_v57, 0.0  ;;  %v6418_v46 = vadd.f32 %v6386_v25, %v3282_v27 }
 0x2ad   : > { %v4010_v29 = vsel %vm3864_vm3, %v6326_v62, %v4008_v48  ;;  %v4021_v58 = vrot.slane %v3693_v15, 7  ;;  %v3697_v5 = vmax.f32 %v6395_v20, 0.0  ;;  %v3702_v24 = vmax.f32 %v6398_v4, 0.0  ;;  %v6440_v2 = vpop.f32.mrf.mxu1 }
 0x2ae   : > { %v6427_v30 = vadd.f32 %v6386_v25, %v3300_v39  ;;  %v4012_v17 = vsel %vm3867_vm4, %v6332_v22, %v4010_v29  ;;  %v4017_v38 = vrot.slane %v3690_v36, 2  ;;  %v3283_v35 = vrot.slane %v6232_v14, 4 }
 0x2af   : > { %v3313_v44 = vrot.slane %v6239_v47, 4  ;;  %v4014_v62 = vsel %vm3870_vm5, %v4013_v19, %v4012_v17  ;;  %v4019_v51 = vrot.slane %v3691_v0, 1  ;;  %v3301_v6 = vrot.slane %v6244_v26, 4  ;;  %v6451_v63 = vpop.f32.mrf.mxu1 }
 0x2b0   : > { %v3319_v37 = vrot.slane %v6263_v41, 4  ;;  %v4016_v48 = vsel %vm3873_vm6, %v4015_v60, %v4014_v62  ;;  %v3284_v21 = vmax.f32 %v6232_v14, %v3283_v35  ;;  %v3307_v22 = vrot.slane %v6286_v56, 4 }
 0x2b1   : > { %v3314_v54 = vmax.f32 %v6239_v47, %v3313_v44  ;;  %v4018_v59 = vsel %vm3876_vm7, %v4017_v38, %v4016_v48  ;;  %v3302_v28 = vmax.f32 %v6244_v26, %v3301_v6  ;;  %v3337_v34 = vrot.slane %v6303_v16, 4  ;;  %v6456_v62 = vpop.f32.mrf.mxu1 }
 0x2b2   : > { %v3320_v8 = vmax.f32 %v6263_v41, %v3319_v37  ;;  %v4020_v9 = vsel %vm3879_vm8, %v4019_v51, %v4018_v59  ;;  %v3285_v31 = vrot.slane %v3284_v21, 2  ;;  %v3308_v14 = vmax.f32 %v6286_v56, %v3307_v22 }
 0x2b3   : > { %v3315_v18 = vrot.slane %v3314_v54, 2  ;;  %4117 = vxpose.xlu0.b32.cont [11/16] %v4020_v9, 128  ;;  %v3303_v47 = vrot.slane %v3302_v28, 2  ;;  %v3338_v10 = vmax.f32 %v6303_v16, %v3337_v34  ;;  %v3325_v33 = vrot.slane %v6307_v55, 4  ;;  %v6467_v34 = vpop.f32.mrf.mxu1 }
 0x2b4   : > { %v3321_v45 = vrot.slane %v3320_v8, 2  ;;  %v3286_v32 = vmax.f32 %v3284_v21, %v3285_v31  ;;  %v3309_v26 = vrot.slane %v3308_v14, 2  ;;  %v3343_v41 = vrot.slane %v6313_v1, 4 }
 0x2b5   : > { %v3316_v40 = vmax.f32 %v3314_v54, %v3315_v18  ;;  %v4027_v57 = vrot.slane %v3696_v53, 4  ;;  %v3304_v27 = vmax.f32 %v3302_v28, %v3303_v47  ;;  %v3339_v50 = vrot.slane %v3338_v10, 2 }
 0x2b6   : > { %v3326_v15 = vmax.f32 %v6307_v55, %v3325_v33  ;;  %v3287_v56 = vrot.slane %v3286_v32, 1  ;;  %v3322_v39 = vmax.f32 %v3320_v8, %v3321_v45  ;;  %v3310_v19 = vmax.f32 %v3308_v14, %v3309_v26  ;;  %v6492_v26 = vpop.f32.mrf.mxu1 }
 0x2b7   : > { %v3344_v60 = vmax.f32 %v6313_v1, %v3343_v41  ;;  %v3317_v16 = vrot.slane %v3316_v40, 1  ;;  %v3305_v36 = vrot.slane %v3304_v27, 1  ;;  %v3340_v0 = vmax.f32 %v3338_v10, %v3339_v50 }
 0x2b8   : > { %v3327_v29 = vrot.slane %v3326_v15, 2  ;;  %v4022_v17 = vsel %vm3861_vm2, %v4021_v58, %v3692_v12  ;;  %v3288_v38 = vmax.f32 %v3286_v32, %v3287_v56  ;;  %v3311_v35 = vrot.slane %v3310_v19, 1 }
 0x2b9   : > { %v3345_v44 = vrot.slane %v3344_v60, 2  ;;  %v3703_v53 = vmax.f32 %v6427_v30, 0.0  ;;  %v3306_v51 = vmax.f32 %v3304_v27, %v3305_v36  ;;  %v3341_v55 = vrot.slane %v3340_v0, 1 }
 0x2ba   : > { %v3328_v6 = vmax.f32 %v3326_v15, %v3327_v29  ;;  %v3573_v37 = vadd.f32 %v6386_v25, %v3288_v38  ;;  %v3323_v48 = vrot.slane %v3322_v39, 1  ;;  %v3312_v1 = vmax.f32 %v3310_v19, %v3311_v35  ;;  %v6510_v38 = vpop.f32.mrf.mxu1 }
 0x2bb   : > { %v3346_v21 = vmax.f32 %v3344_v60, %v3345_v44  ;;  %v3318_v54 = vmax.f32 %v3316_v40, %v3317_v16  ;;  %v3576_v22 = vadd.f32 %v6386_v25, %v3306_v51  ;;  %v3342_v59 = vmax.f32 %v3340_v0, %v3341_v55 }
 0x2bc   : > { %v3571_v12 = vadd.f32 %v6386_v25, %v6412_v13  ;;  %v3700_v58 = vmax.f32 %v6418_v46, 0.0  ;;  %v3701_v28 = vmax.f32 %v3573_v37, 0.0  ;;  %v6465_v30 = vadd.f32 %v6386_v25, %v3312_v1 }
 0x2bd   : > { %v3329_v8 = vrot.slane %v3328_v6, 1  ;;  %v4029_v9 = vrot.slane %v3697_v5, 3  ;;  %v3704_v31 = vmax.f32 %v3576_v22, 0.0  ;;  %v3347_v18 = vrot.slane %v3346_v21, 1 }
 0x2be   : > { %v3698_v14 = vmax.f32 %v6415_v61, 0.0  ;;  %v6474_v47 = vrot.slane %v3702_v24, 6  ;;  %v6477_v13 = vadd.f32 %v6386_v25, %v3342_v59  ;;  %v3699_v45 = vmax.f32 %v3571_v12, 0.0 }
 0x2bf   : > { %v4024_v10 = vsel %vm3864_vm3, %v6408_v23, %v4022_v17  ;;  %v6481_v33 = vrot.slane %v3703_v53, 5  ;;  %v6484_v20 = vadd.f32 %v6386_v25, %v3318_v54  ;;  %v6486_v5 = vmax.f32 %v3322_v39, %v3323_v48 }
 0x2c0   : > { %v4026_v61 = vsel %vm3867_vm4, %v6410_v49, %v4024_v10  ;;  %v4035_v4 = vrot.slane %v3701_v28, 7  ;;  %v3705_v24 = vmax.f32 %v6465_v30, 0.0  ;;  %v3330_v32 = vmax.f32 %v3328_v6, %v3329_v8 }
 0x2c1   : > { %v4028_v40 = vsel %vm3870_vm5, %v4027_v57, %v4026_v61  ;;  %v6494_v41 = vrot.slane %v3704_v31, 4  ;;  %v3348_v23 = vmax.f32 %v3346_v21, %v3347_v18  ;;  %v4031_v50 = vrot.slane %v3698_v14, 2 }
 0x2c2   : > { %v4030_v27 = vsel %vm3873_vm6, %v4029_v9, %v4028_v40  ;;  %v3710_v15 = vmax.f32 %v6477_v13, 0.0  ;;  %v4033_v56 = vrot.slane %v3699_v45, 1  ;;  %v3331_v39 = vrot.slane %v6341_v52, 4 }
 0x2c3   : > { %v3361_v49 = vrot.slane %v6362_v42, 4  ;;  %v4032_v19 = vsel %vm3876_vm7, %v4031_v50, %v4030_v27  ;;  %v3349_v60 = vrot.slane %v6376_v43, 4  ;;  %v3367_v57 = vrot.slane %v6380_v7, 4 }
 0x2c4   : > { %v3355_v16 = vrot.slane %v6392_v11, 4  ;;  %v6505_v36 = vadd.f32 %v6386_v25, %v3330_v32  ;;  %v4034_v0 = vsel %vm3879_vm8, %v4033_v56, %v4032_v19  ;;  %v3332_v29 = vmax.f32 %v6341_v52, %v3331_v39 }
 0x2c5   : > { %v3362_v17 = vmax.f32 %v6362_v42, %v3361_v49  ;;  %4118 = vxpose.xlu0.b32.cont [12/16] %v4034_v0, 128  ;;  %v3350_v35 = vmax.f32 %v6376_v43, %v3349_v60  ;;  %v3368_v44 = vmax.f32 %v6380_v7, %v3367_v57  ;;  %v3385_v51 = vrot.slane %v6422_v3, 4 }
 0x2c6   : > { %v3356_v53 = vmax.f32 %v6392_v11, %v3355_v16  ;;  %v3333_v55 = vrot.slane %v3332_v29, 2  ;;  %v3373_v37 = vrot.slane %v6440_v2, 4  ;;  %v3391_v48 = vrot.slane %v6451_v63, 4  ;;  %v6521_v11 = vpop.f32.mrf.mxu1 }
 0x2c7   : > { %v3363_v6 = vrot.slane %v3362_v17, 2  ;;  %v3351_v52 = vrot.slane %v3350_v35, 2  ;;  %v3369_v1 = vrot.slane %v3368_v44, 2  ;;  %v3386_v21 = vmax.f32 %v6422_v3, %v3385_v51 }
 0x2c8   : > { %v3357_v42 = vrot.slane %v3356_v53, 2  ;;  %v3334_v54 = vmax.f32 %v3332_v29, %v3333_v55  ;;  %v3374_v43 = vmax.f32 %v6440_v2, %v3373_v37  ;;  %v3392_v7 = vmax.f32 %v6451_v63, %v3391_v48  ;;  %v4934_v27 = vpop.f32.mrf.mxu1 }
 0x2c9   : > { %v3364_v22 = vmax.f32 %v3362_v17, %v3363_v6  ;;  %v3583_v59 = vadd.f32 %v6386_v25, %v3348_v23  ;;  %v3352_v12 = vmax.f32 %v3350_v35, %v3351_v52  ;;  %v3387_v8 = vrot.slane %v3386_v21, 2 }
 0x2ca   : > { %v3358_v28 = vmax.f32 %v3356_v53, %v3357_v42  ;;  %v3335_v9 = vrot.slane %v3334_v54, 1  ;;  %v3370_v31 = vmax.f32 %v3368_v44, %v3369_v1  ;;  %v3375_v18 = vrot.slane %v3374_v43, 2  ;;  %v2670_v44 = vpop.f32.mrf.mxu1 }
 0x2cb   : > { %v3393_v14 = vrot.slane %v3392_v7, 2  ;;  %v3365_v45 = vrot.slane %v3364_v22, 1  ;;  %v3353_v10 = vrot.slane %v3352_v12, 1  ;;  %v3388_v61 = vmax.f32 %v3386_v21, %v3387_v8 }
 0x2cc   : > { %v3359_v3 = vrot.slane %v3358_v28, 1  ;;  %v4036_v2 = vsel %vm3861_vm2, %v4035_v4, %v3700_v58  ;;  %v3336_v63 = vmax.f32 %v3334_v54, %v3335_v9  ;;  %v3376_v32 = vmax.f32 %v3374_v43, %v3375_v18  ;;  %v4935_v21 = vpop.f32.mrf.mxu1 }
 0x2cd   : > { %v3394_v40 = vmax.f32 %v3392_v7, %v3393_v14  ;;  %v3711_v23 = vmax.f32 %v3583_v59, 0.0  ;;  %v3354_v50 = vmax.f32 %v3352_v12, %v3353_v10  ;;  %v3389_v39 = vrot.slane %v3388_v61, 1 }
 0x2ce   : > { %v3360_v56 = vmax.f32 %v3358_v28, %v3359_v3  ;;  %v3581_v49 = vadd.f32 %v6386_v25, %v3336_v63  ;;  %v3371_v19 = vrot.slane %v3370_v31, 1  ;;  %v3377_v60 = vrot.slane %v3376_v32, 1  ;;  %v6578_v3 = vpop.f32.mrf.mxu1 }
 0x2cf   : > { %v3395_v57 = vrot.slane %v3394_v40, 1  ;;  %v3366_v16 = vmax.f32 %v3364_v22, %v3365_v45  ;;  %v3584_v0 = vadd.f32 %v6386_v25, %v3354_v50  ;;  %v3579_v58 = vadd.f32 %v6386_v25, %v6486_v5 }
 0x2d0   : > { %v6530_v46 = vadd.f32 %v6386_v25, %v3360_v56  ;;  %v4043_v4 = vrot.slane %v3705_v24, 3  ;;  %v3709_v29 = vmax.f32 %v3581_v49, 0.0  ;;  %v3390_v17 = vmax.f32 %v3388_v61, %v3389_v39 }
 0x2d1   : > { %v3378_v35 = vmax.f32 %v3376_v32, %v3377_v60  ;;  %v6538_v53 = vrot.slane %v3710_v15, 6  ;;  %v3712_v51 = vmax.f32 %v3584_v0, 0.0  ;;  %v3396_v55 = vmax.f32 %v3394_v40, %v3395_v57 }
 0x2d2   : > { %v3706_v6 = vmax.f32 %v6484_v20, 0.0  ;;  %v3708_v37 = vmax.f32 %v6505_v36, 0.0  ;;  %v6542_v48 = vrot.slane %v3711_v23, 5  ;;  %v3707_v5 = vmax.f32 %v3579_v58, 0.0 }
 0x2d3   : > { %v4038_v30 = vsel %vm3864_vm3, %v6474_v47, %v4036_v2  ;;  %v6547_v24 = vadd.f32 %v6386_v25, %v3366_v16  ;;  %v6549_v52 = vmax.f32 %v3370_v31, %v3371_v19  ;;  %v3713_v13 = vmax.f32 %v6530_v46, 0.0  ;;  %v4938_v16 = vpop.f32.mrf.mxu1 }
 0x2d4   : > { %v4040_v15 = vsel %vm3867_vm4, %v6481_v33, %v4038_v30  ;;  %v4049_v1 = vrot.slane %v3709_v29, 7  ;;  %v6555_v20 = vadd.f32 %v6386_v25, %v3390_v17  ;;  %v6558_v42 = vadd.f32 %v6386_v25, %v3378_v35 }
 0x2d5   : > { %v4042_v47 = vsel %vm3870_vm5, %v6494_v41, %v4040_v15  ;;  %v6562_v54 = vrot.slane %v3712_v51, 4  ;;  %v6565_v22 = vadd.f32 %v6386_v25, %v3396_v55  ;;  %v4045_v7 = vrot.slane %v3706_v6, 2  ;;  %v2686_v15 = vpop.f32.mrf.mxu1 }
 0x2d6   : > { %v4044_v43 = vsel %vm3873_vm6, %v4043_v4, %v4042_v47  ;;  %v4047_v33 = vrot.slane %v3707_v5, 1  ;;  %v3379_v59 = vrot.slane %v6456_v62, 4  ;;  %v3409_v12 = vrot.slane %v6467_v34, 4 }
 0x2d7   : > { %v3397_v28 = vrot.slane %v6492_v26, 4  ;;  %v4046_v8 = vsel %vm3876_vm7, %v4045_v7, %v4044_v43  ;;  %v3415_v41 = vrot.slane %v6510_v38, 4  ;;  %v3403_v9 = vrot.slane %v6521_v11, 4 }
 0x2d8   : > { %v3433_v31 = vrot.slane %v4934_v27, 4  ;;  %v4048_v18 = vsel %vm3879_vm8, %v4047_v33, %v4046_v8  ;;  %v3380_v14 = vmax.f32 %v6456_v62, %v3379_v59  ;;  %v3410_v45 = vmax.f32 %v6467_v34, %v3409_v12 }
 0x2d9   : > { %v3398_v10 = vmax.f32 %v6492_v26, %v3397_v28  ;;  %4119 = vxpose.xlu0.b32.cont [13/16] %v4048_v18, 128  ;;  %v3416_v61 = vmax.f32 %v6510_v38, %v3415_v41  ;;  %v3404_v2 = vmax.f32 %v6521_v11, %v3403_v9  ;;  %v3421_v32 = vrot.slane %v2670_v44, 4  ;;  %v4939_v9 = vpop.f32.mrf.mxu1 }
 0x2da   : > { %v3434_v63 = vmax.f32 %v4934_v27, %v3433_v31  ;;  %v3381_v40 = vrot.slane %v3380_v14, 2  ;;  %v3411_v23 = vrot.slane %v3410_v45, 2  ;;  %v3439_v56 = vrot.slane %v4935_v21, 4 }
 0x2db   : > { %v3399_v50 = vrot.slane %v3398_v10, 2  ;;  %v3417_v39 = vrot.slane %v3416_v61, 2  ;;  %v3405_v49 = vrot.slane %v3404_v2, 2  ;;  %v3422_v19 = vmax.f32 %v2670_v44, %v3421_v32 }
 0x2dc   : > { %v3435_v62 = vrot.slane %v3434_v63, 2  ;;  %v3382_v34 = vmax.f32 %v3380_v14, %v3381_v40  ;;  %v3412_v60 = vmax.f32 %v3410_v45, %v3411_v23  ;;  %v3440_v57 = vmax.f32 %v4935_v21, %v3439_v56 }
 0x2dd   : > { %v3400_v26 = vmax.f32 %v3398_v10, %v3399_v50  ;;  %v3418_v0 = vmax.f32 %v3416_v61, %v3417_v39  ;;  %v3406_v46 = vmax.f32 %v3404_v2, %v3405_v49  ;;  %v3423_v58 = vrot.slane %v3422_v19, 2  ;;  %v2689_v39 = vpop.f32.mrf.mxu1 }
 0x2de   : > { %v3436_v38 = vmax.f32 %v3434_v63, %v3435_v62  ;;  %v3383_v11 = vrot.slane %v3382_v34, 1  ;;  %v3413_v27 = vrot.slane %v3412_v60, 1  ;;  %v3441_v29 = vrot.slane %v3440_v57, 2 }
 0x2df   : > { %v3401_v4 = vrot.slane %v3400_v26, 1  ;;  %v4057_v17 = vrot.slane %v3713_v13, 3  ;;  %v3407_v35 = vrot.slane %v3406_v46, 1  ;;  %v3424_v55 = vmax.f32 %v3422_v19, %v3423_v58 }
 0x2e0   : > { %v3437_v51 = vrot.slane %v3436_v38, 1  ;;  %v3718_v6 = vmax.f32 %v6555_v20, 0.0  ;;  %v3384_v44 = vmax.f32 %v3382_v34, %v3383_v11  ;;  %v3442_v30 = vmax.f32 %v3440_v57, %v3441_v29 }
 0x2e1   : > { %v3402_v5 = vmax.f32 %v3400_v26, %v3401_v4  ;;  %v4050_v47 = vsel %vm3861_vm2, %v4049_v1, %v3708_v37  ;;  %v3719_v21 = vmax.f32 %v6565_v22, 0.0  ;;  %v3419_v43 = vrot.slane %v3418_v0, 1 }
 0x2e2   : > { %v3408_v7 = vmax.f32 %v3406_v46, %v3407_v35  ;;  %v3589_v33 = vadd.f32 %v6386_v25, %v3384_v44  ;;  %v3414_v13 = vmax.f32 %v3412_v60, %v3413_v27  ;;  %v3438_v12 = vmax.f32 %v3436_v38, %v3437_v51 }
 0x2e3   : > { %v3592_v59 = vadd.f32 %v6386_v25, %v3402_v5  ;;  %v3425_v28 = vrot.slane %v3424_v55, 1  ;;  %v3443_v8 = vrot.slane %v3442_v30, 1  ;;  %v3587_v41 = vadd.f32 %v6386_v25, %v6549_v52 }
 0x2e4   : > { %v3593_v20 = vadd.f32 %v6386_v25, %v3408_v7  ;;  %v3716_v36 = vmax.f32 %v6558_v42, 0.0  ;;  %v3717_v37 = vmax.f32 %v3589_v33, 0.0  ;;  %v3714_v22 = vmax.f32 %v6547_v24, 0.0 }
 0x2e5   : > { %v3720_v1 = vmax.f32 %v3592_v59, 0.0  ;;  %v4065_v31 = vrot.slane %v3718_v6, 6  ;;  %v4067_v18 = vrot.slane %v3719_v21, 5  ;;  %v3715_v45 = vmax.f32 %v3587_v41, 0.0 }
 0x2e6   : > { %v3721_v14 = vmax.f32 %v3593_v20, 0.0  ;;  %v4063_v10 = vrot.slane %v3717_v37, 7  ;;  %v3594_v61 = vadd.f32 %v6386_v25, %v3414_v13  ;;  %v3420_v2 = vmax.f32 %v3418_v0, %v3419_v43 }
 0x2e7   : > { %v4052_v63 = vsel %vm3864_vm3, %v6538_v53, %v4050_v47  ;;  %v6598_v52 = vadd.f32 %v6386_v25, %v3438_v12  ;;  %v3426_v42 = vmax.f32 %v3424_v55, %v3425_v28  ;;  %v3444_v32 = vmax.f32 %v3442_v30, %v3443_v8 }
 0x2e8   : > { %v4054_v24 = vsel %vm3867_vm4, %v6542_v48, %v4052_v63  ;;  %v4069_v40 = vrot.slane %v3720_v1, 4  ;;  %v4071_v23 = vrot.slane %v3721_v14, 3  ;;  %v4059_v56 = vrot.slane %v3714_v22, 2 }
 0x2e9   : > { %v4056_v50 = vsel %vm3870_vm5, %v6562_v54, %v4054_v24  ;;  %v4061_v62 = vrot.slane %v3715_v45, 1  ;;  %v3427_v53 = vrot.slane %v6578_v3, 4  ;;  %v3457_v19 = vrot.slane %v4938_v16, 4 }
 0x2ea   : > { %v4058_v49 = vsel %vm3873_vm6, %v4057_v17, %v4056_v50  ;;  %v4064_v34 = vsel %vm3861_vm2, %v4063_v10, %v3716_v36  ;;  %v3445_v26 = vrot.slane %v2686_v15, 4  ;;  %v3463_v57 = vrot.slane %v4939_v9, 4 }
 0x2eb   : > { %v4060_v60 = vsel %vm3876_vm7, %v4059_v56, %v4058_v49  ;;  %v3428_v0 = vmax.f32 %v6578_v3, %v3427_v53  ;;  %v3458_v46 = vmax.f32 %v4938_v16, %v3457_v19  ;;  %v3451_v54 = vrot.slane %v2689_v39, 4 }
 0x2ec   : > { %v4062_v48 = vsel %vm3879_vm8, %v4061_v62, %v4060_v60  ;;  %v3446_v38 = vmax.f32 %v2686_v15, %v3445_v26  ;;  %v3464_v58 = vmax.f32 %v4939_v9, %v3463_v57  ;;  %v3595_v11 = vadd.f32 %v6386_v25, %v3420_v2 }
 0x2ed   : > { %4120 = vxpose.xlu0.b32.cont [14/16] %v4062_v48, 128  ;;  %v3722_v27 = vmax.f32 %v3594_v61, 0.0  ;;  %v3429_v4 = vrot.slane %v3428_v0, 2  ;;  %v3459_v29 = vrot.slane %v3458_v46, 2  ;;  %v3452_v17 = vmax.f32 %v2689_v39, %v3451_v54 }
 0x2ee   : > { %v4066_v35 = vsel %vm3864_vm3, %v4065_v31, %v4064_v34  ;;  %v3447_v51 = vrot.slane %v3446_v38, 2  ;;  %v3465_v55 = vrot.slane %v3464_v58, 2  ;;  %v3723_v6 = vmax.f32 %v3595_v11, 0.0 }
 0x2ef   : > { %v4068_v44 = vsel %vm3867_vm4, %v4067_v18, %v4066_v35  ;;  %v3430_v5 = vmax.f32 %v3428_v0, %v3429_v4  ;;  %v3460_v3 = vmax.f32 %v3458_v46, %v3459_v29  ;;  %v3453_v16 = vrot.slane %v3452_v17, 2 }
 0x2f0   : > { %v4070_v30 = vsel %vm3870_vm5, %v4069_v40, %v4068_v44  ;;  %v3448_v15 = vmax.f32 %v3446_v38, %v3447_v51  ;;  %v3466_v47 = vmax.f32 %v3464_v58, %v3465_v55  ;;  %v4073_v43 = vrot.slane %v3722_v27, 2 }
 0x2f1   : > { %v4072_v21 = vsel %vm3873_vm6, %v4071_v23, %v4070_v30  ;;  %v3431_v7 = vrot.slane %v3430_v5, 1  ;;  %v3461_v33 = vrot.slane %v3460_v3, 1  ;;  %v3454_v13 = vmax.f32 %v3452_v17, %v3453_v16 }
 0x2f2   : > { %v4075_v59 = vrot.slane %v3723_v6, 1  ;;  %v3599_v12 = vadd.f32 %v6386_v25, %v3444_v32  ;;  %v3449_v20 = vrot.slane %v3448_v15, 1  ;;  %v3467_v28 = vrot.slane %v3466_v47, 1 }
 0x2f3   : > { %v4074_v8 = vsel %vm3876_vm7, %v4073_v43, %v4072_v21  ;;  %v3432_v41 = vmax.f32 %v3430_v5, %v3431_v7  ;;  %v3462_v36 = vmax.f32 %v3460_v3, %v3461_v33  ;;  %v3455_v37 = vrot.slane %v3454_v13, 1 }
 0x2f4   : > { %v4076_v1 = vsel %vm3879_vm8, %v4075_v59, %v4074_v8  ;;  %v3450_v22 = vmax.f32 %v3448_v15, %v3449_v20  ;;  %v3468_v9 = vmax.f32 %v3466_v47, %v3467_v28  ;;  %v3596_v31 = vadd.f32 %v6386_v25, %v3426_v42 }
 0x2f5   : > { %4121 = vxpose.xlu0.b32.cont [15/16] %v4076_v1, 128  ;;  %v3597_v18 = vadd.f32 %v6386_v25, %v3432_v41  ;;  %v3456_v14 = vmax.f32 %v3454_v13, %v3455_v37  ;;  %v3726_v45 = vmax.f32 %v6598_v52, 0.0  ;;  %v3602_v10 = vadd.f32 %v6386_v25, %v3462_v36 }
 0x2f6   : > { %v3600_v61 = vadd.f32 %v6386_v25, %v3450_v22  ;;  %v3727_v2 = vmax.f32 %v3599_v12, 0.0  ;;  %v3603_v24 = vadd.f32 %v6386_v25, %v3468_v9  ;;  %v3724_v23 = vmax.f32 %v3596_v31, 0.0 }
 0x2f7   : > { %v3725_v63 = vmax.f32 %v3597_v18, 0.0  ;;  %v3601_v32 = vadd.f32 %v6386_v25, %v3456_v14  ;;  %v4079_v42 = vrot.slane %v3726_v45, 6  ;;  %v3730_v49 = vmax.f32 %v3602_v10, 0.0 }
 0x2f8   : > { %v3728_v40 = vmax.f32 %v3600_v61, 0.0  ;;  %v4081_v52 = vrot.slane %v3727_v2, 5  ;;  %v3731_v19 = vmax.f32 %v3603_v24, 0.0 }
 0x2f9   : > { %v4077_v50 = vrot.slane %v3725_v63, 7  ;;  %v3729_v56 = vmax.f32 %v3601_v32, 0.0  ;;  %v4087_v26 = vrot.slane %v3730_v49, 2 }
 0x2fa   : > { %v4083_v39 = vrot.slane %v3728_v40, 4  ;;  %v4089_v48 = vrot.slane %v3731_v19, 1 }
 0x2fb   : > { %v4078_v62 = vsel %vm3861_vm2, %v4077_v50, %v3724_v23  ;;  %v4085_v53 = vrot.slane %v3729_v56, 3 }
 0x2fc   : > { %v4080_v34 = vsel %vm3864_vm3, %v4079_v42, %v4078_v62 }
 0x2fd   : > { %v4082_v60 = vsel %vm3867_vm4, %v4081_v52, %v4080_v34 }
 0x2fe   : > { %v4084_v25 = vsel %vm3870_vm5, %v4083_v39, %v4082_v60 }
 0x2ff   : > { %v4086_v57 = vsel %vm3873_vm6, %v4085_v53, %v4084_v25 }
 0x300   : > { %v4088_v0 = vsel %vm3876_vm7, %v4087_v26, %v4086_v57 }
 0x301   : > { %v4090_v46 = vsel %vm3879_vm8, %v4089_v48, %v4088_v0 }
 0x302   : > { %4122 = vxpose.xlu0.b32.end [16/16] %v4090_v46, 128 }
 0x342   : > { %v4123_v54 = vpop.trf.xlu0 }
 0x343   : > { %4139 = vst [vmem:[%s6635_s12] sm:$0xff] %v4123_v54 }
 0x346   : > { %v4124_v38 = vpop.trf.xlu0 }
 0x347   : > { %4140 = vst [vmem:[%s6635_s12 + $0x8] sm:$0xff] %v4124_v38 }
 0x34a   : > { %v4125_v58 = vpop.trf.xlu0 }
 0x34b   : > { %4141 = vst [vmem:[%s6635_s12 + $0x10] sm:$0xff] %v4125_v58 }
 0x34e   : > { %v4126_v11 = vpop.trf.xlu0 }
 0x34f   : > { %4142 = vst [vmem:[%s6635_s12 + $0x18] sm:$0xff] %v4126_v11 }
 0x352   : > { %v4127_v27 = vpop.trf.xlu0 }
 0x353   : > { %4143 = vst [vmem:[%s6635_s12 + $0x20] sm:$0xff] %v4127_v27 }
 0x356   : > { %v4128_v4 = vpop.trf.xlu0 }
 0x357   : > { %4144 = vst [vmem:[%s6635_s12 + $0x28] sm:$0xff] %v4128_v4 }
 0x35a   : > { %v4129_v29 = vpop.trf.xlu0 }
 0x35b   : > { %4145 = vst [vmem:[%s6635_s12 + $0x30] sm:$0xff] %v4129_v29 }
 0x35e   : > { %v4130_v17 = vpop.trf.xlu0 }
 0x35f   : > { %4146 = vst [vmem:[%s6635_s12 + $0x38] sm:$0xff] %v4130_v17 }
 0x362   : > { %v4131_v35 = vpop.trf.xlu0 }
 0x363   : > { %4147 = vst [vmem:[%s6635_s12 + $0x40] sm:$0xff] %v4131_v35 }
 0x366   : > { %v4132_v51 = vpop.trf.xlu0 }
 0x367   : > { %4148 = vst [vmem:[%s6635_s12 + $0x48] sm:$0xff] %v4132_v51 }
 0x36a   : > { %v4133_v55 = vpop.trf.xlu0 }
 0x36b   : > { %4149 = vst [vmem:[%s6635_s12 + $0x50] sm:$0xff] %v4133_v55 }
 0x36e   : > { %v4134_v6 = vpop.trf.xlu0 }
 0x36f   : > { %4150 = vst [vmem:[%s6635_s12 + $0x58] sm:$0xff] %v4134_v6 }
 0x372   : > { %v4135_v44 = vpop.trf.xlu0 }
 0x373   : > { %4151 = vst [vmem:[%s6635_s12 + $0x60] sm:$0xff] %v4135_v44 }
 0x376   : > { %v4136_v5 = vpop.trf.xlu0 }
 0x377   : > { %4152 = vst [vmem:[%s6635_s12 + $0x68] sm:$0xff] %v4136_v5 }
 0x37a   : > { %v4137_v3 = vpop.trf.xlu0 }
 0x37b   : > { %4153 = vst [vmem:[%s6635_s12 + $0x70] sm:$0xff] %v4137_v3 }
 0x37e   : > { %v4138_v16 = vpop.trf.xlu0 }
 0x37f   : > { %4154 = vst [vmem:[%s6635_s12 + $0x78] sm:$0xff] %v4138_v16 }
 0x380   : > { %5102 = shalt.err (!%p5099_p5)
}
 0x381   : > { %s5103_s7 = scalar_lea.hbm %s6657_s13, 2048  ;;  %s5107_s10 = scalar_lea.hbm %s6714_s5, 4096 }
 0x382   : > { %p5104_p6 = scmp.ne.s32.totalorder %s6657_s13, %s5103_s7  ;;  %p5108_p10 = scmp.lt.s32.totalorder %s6657_s13, %s6714_s5 }
 0x383   : > { %p5109_p11 = scmp.lt.s32.totalorder %s5107_s10, %s5103_s7 }
 0x384   : > { %p5105_p7 = pnand %p5104_p6, %p5240_p4 }
 0x385   : > { %p5110_p12 = por %p5109_p11, %p5108_p10 }
 0x386   : > { %p5106_p9 = pneg %p5105_p7 }
 0x388   : > { %p5111_p13 = pnand %p5110_p12, %p5106_p9 }
 0x38a   : > { %5114 = shalt.err (!%p5111_p13)
}
 0x38b   : > { %s5168_s14 = smov 128   ;;  %s5169_s16 = smov 8  }
 0x38c   : > { %4957 = dma.vmem_to_hbm [thread:$0]  (%p5240_p4), %s6659_s15, 2048, %s6657_s13, %s6664_s24, %s5168_s14, %s5168_s14, %s5169_s16  }
 0x38d PF: > { %p4963_p0 = scmp.ge.s32.totalorder %s5165_s23, 2  ;;  %s4185_s17 = sand.u32 1, %s5145_s18  }
 0x38e   : > { %s4186_s25 = scalar_lea.sflag [#allocation3], %s4185_s17 }
 0x38f   : > { %p4960_p1 = pnand %p4963_p0, %p5247_p8 }
 0x391   : > { %p4961_p2 = pneg %p4960_p1 }
 0x393   : > { %5140 = dma.done.wait (%p4961_p2), %s4186_s25, 2048  }
 0x394   : > { %5142 = vsyncadd (%p4961_p2), %s4186_s25, 4294965248  ;;  %s18_s23 = sadd.s32 1, %s5165_s23   ;;  %s6729_s18 = smov %s5149_s19 }
 0x395   : > { %p15_p3 = scmp.ge.s32.totalorder %s18_s23, 4   ;;  %s6730_s19 = smov %s5153_s20 }
 0x396   : > { %s6731_s20 = smov %s5253_s6  ;;  %s6732_s21 = smov %s5161_s22 }
 0x397   : > { %s6733_s22 = smov %s6735_s26  ;;  %17 = sbr.rel (!%p15_p3) target bundleno = 4 (0x4), region = 75 }
 0x39c   :  { %4191 = vsyncpa [#allocation3], 1 }
 0x39d   :  { %4193 = vsyncpa [#allocation3 + $0x1], 1 }

</bundles_post_ra>
